<compile_context>
chip_gen: v7x
topology: tpu7x:2x2x1
jax: 0.10.0
libtpu: 0.0.40
codegen_flags: <defaults>
</compile_context>

<pallas_src>
import functools
import math

import jax
import jax.numpy as jnp
from jax import lax
from jax.experimental import pallas as pl
from jax.experimental.pallas import tpu as pltpu  # noqa: F401  (TPU backend)


# ------------------------------- helpers -------------------------------------
def _layer_norm(z, gamma, beta, eps):
    # Matches the PyTorch LayerNormalization module: unbiased std (N-1) and
    # division by (std + eps), then affine.
    n = z.shape[-1]
    mean = jnp.mean(z, axis=-1, keepdims=True)
    var = jnp.sum((z - mean) ** 2, axis=-1, keepdims=True) / (n - 1)
    std = jnp.sqrt(var)
    return gamma * ((z - mean) / (std + eps)) + beta


# ------------------------------ fused kernel ----------------------------------
def _mba_kernel(q_ref, k_ref, v_ref,
                wq_ref, wk_ref, wv_ref,
                wo_ref, bo_ref,
                w1_ref, b1_ref, w2_ref, b2_ref,
                gbr_ref, bbr_ref, gf_ref, bf_ref,
                out_ref, attn_ref,
                *, B, S, d_k, d_v, d_model, n_branches, eps):
    f32 = jnp.float32
    q2 = q_ref[...]            # (B*S, d_model)
    k2 = k_ref[...]
    v2 = v_ref[...]

    # Fused QKV projections for all heads at once (weights pre-transposed;
    # 1/sqrt(d_k) is pre-folded into wq).
    qp = jnp.dot(q2, wq_ref[...], preferred_element_type=f32)   # (B*S, H*d_k)
    kp = jnp.dot(k2, wk_ref[...], preferred_element_type=f32)   # (B*S, H*d_k)
    vp = jnp.dot(v2, wv_ref[...], preferred_element_type=f32)   # (B*S, H*d_v)

    for b in range(B):
        r0 = b * S
        qb = qp[r0:r0 + S, :]
        kb = kp[r0:r0 + S, :]
        vb = vp[r0:r0 + S, :]
        x_res = q2[r0:r0 + S, :]

        branch_sum = jnp.zeros((S, d_model), f32)
        for h in range(n_branches):
            qh = qb[:, h * d_k:(h + 1) * d_k]                   # (S, d_k)
            kh = kb[:, h * d_k:(h + 1) * d_k]                   # (S, d_k)
            vh = vb[:, h * d_v:(h + 1) * d_v]                   # (S, d_v)

            # scores = (q_h / sqrt(d_k)) @ k_h^T  — contraction on last dims,
            # no explicit transpose op in the kernel.
            scores = lax.dot_general(qh, kh, (((1,), (1,)), ((), ())),
                                     preferred_element_type=f32)
            # TODO(synk): attn_mask (masked_fill_ with -1e9) not implemented;
            # this kernel supports attn_mask=None only.
            scores = scores - jnp.max(scores, axis=-1, keepdims=True)
            e = jnp.exp(scores)
            attn = e / jnp.sum(e, axis=-1, keepdims=True)       # (S, S)
            # TODO(synk): attention dropout is a no-op in eval mode.
            attn_ref[b, h, :, :] = attn

            ctx = jnp.dot(attn, vh, preferred_element_type=f32)  # (S, d_v)

            # Branch output projection (w_kp[h] pre-folded into wo/bo).
            o = jnp.dot(ctx, wo_ref[h], preferred_element_type=f32) + bo_ref[h]

            # Position-wise FFN: 1x1 convs == per-position matmuls.
            hdn = jnp.maximum(
                jnp.dot(o, w1_ref[h], preferred_element_type=f32) + b1_ref[h], 0.0)
            y = jnp.dot(hdn, w2_ref[h], preferred_element_type=f32) + b2_ref[h]
            # TODO(synk): FFN dropout is a no-op in eval mode.

            # Per-branch layer norm (w_a[h] pre-folded into gamma/beta).
            branch_sum = branch_sum + _layer_norm(o + y, gbr_ref[h], bbr_ref[h], eps)

        # Final residual + layer norm for this batch row block.
        out_ref[r0:r0 + S, :] = _layer_norm(x_res + branch_sum,
                                            gf_ref[...], bf_ref[...], eps)


# ------------------------------- module port ----------------------------------
class MultiBranchAttentionPallas:
    def __init__(self, d_k, d_v, d_model, d_ff, n_branches, dropout, key):
        self.d_k, self.d_v, self.d_model = d_k, d_v, d_model
        self.d_ff, self.n_branches = d_ff, n_branches
        self.dropout = dropout
        self.eps = 1e-6
        self.dff_b = d_ff // n_branches
        H = n_branches

        keys = jax.random.split(key, 10)

        def xavier(k, out_f, in_f):
            std = math.sqrt(2.0 / (in_f + out_f))
            return std * jax.random.normal(k, (out_f, in_f), jnp.float32)

        # Raw parameters in PyTorch (out, in) convention — used by the reference.
        w_q = xavier(keys[0], H * d_k, d_model)
        w_k = xavier(keys[1], H * d_k, d_model)
        w_v = xavier(keys[2], H * d_v, d_model)
        w_o = jnp.stack([xavier(kk, d_model, d_v) for kk in jax.random.split(keys[3], H)])
        b_o = jnp.zeros((H, d_model), jnp.float32)          # Linear wrapper zero-inits bias
        w_1 = jnp.stack([xavier(kk, self.dff_b, d_model) for kk in jax.random.split(keys[4], H)])
        b_1 = 0.1 * jax.random.normal(keys[5], (H, self.dff_b), jnp.float32)
        w_2 = jnp.stack([xavier(kk, d_model, self.dff_b) for kk in jax.random.split(keys[6], H)])
        b_2 = 0.1 * jax.random.normal(keys[7], (H, d_model), jnp.float32)
        w_kp = jax.random.uniform(keys[8], (H,), jnp.float32)
        w_kp = w_kp / jnp.sum(w_kp)
        w_a = jax.random.uniform(keys[9], (H,), jnp.float32)
        w_a = w_a / jnp.sum(w_a)
        g_br = jnp.ones((H, d_model), jnp.float32)
        bt_br = jnp.zeros((H, d_model), jnp.float32)
        g_f = jnp.ones((d_model,), jnp.float32)
        bt_f = jnp.zeros((d_model,), jnp.float32)

        self.raw = dict(w_q=w_q, w_k=w_k, w_v=w_v, w_o=w_o, b_o=b_o,
                        w_1=w_1, b_1=b_1, w_2=w_2, b_2=b_2,
                        w_kp=w_kp, w_a=w_a, g_br=g_br, bt_br=bt_br,
                        g_f=g_f, bt_f=bt_f)

        # ---- Pre-transposed / pre-folded weights for the fused kernel (done once) ----
        kp3 = w_kp[:, None, None]
        a2 = w_a[:, None]
        self.p_wq = w_q.T / math.sqrt(d_k)               # (dm, H*dk), scale folded in
        self.p_wk = w_k.T                                # (dm, H*dk)
        self.p_wv = w_v.T                                # (dm, H*dv)
        self.p_wo = jnp.transpose(w_o, (0, 2, 1)) * kp3  # (H, dv, dm), kappa folded in
        self.p_bo = (w_kp[:, None] * b_o)[:, None, :]    # (H, 1, dm)
        self.p_w1 = jnp.transpose(w_1, (0, 2, 1))        # (H, dm, dff_b)
        self.p_b1 = b_1[:, None, :]                      # (H, 1, dff_b)
        self.p_w2 = jnp.transpose(w_2, (0, 2, 1))        # (H, dff_b, dm)
        self.p_b2 = b_2[:, None, :]                      # (H, 1, dm)
        self.p_gbr = (a2 * g_br)[:, None, :]             # (H, 1, dm), alpha folded in
        self.p_bbr = (a2 * bt_br)[:, None, :]            # (H, 1, dm)
        self.p_gf = g_f[None, :]                         # (1, dm)
        self.p_bf = bt_f[None, :]                        # (1, dm)

    def forward(self, q, k, v, attn_mask=None):
        assert attn_mask is None  # TODO(synk): mask path not implemented in the kernel.
        B, S, dm = q.shape
        assert dm == self.d_model
        q2 = q.reshape(B * S, dm).astype(jnp.float32)
        k2 = k.reshape(B * S, dm).astype(jnp.float32)
        v2 = v.reshape(B * S, dm).astype(jnp.float32)

        args = (q2, k2, v2,
                self.p_wq, self.p_wk, self.p_wv,
                self.p_wo, self.p_bo,
                self.p_w1, self.p_b1, self.p_w2, self.p_b2,
                self.p_gbr, self.p_bbr, self.p_gf, self.p_bf)

        full = lambda a: pl.BlockSpec(a.shape, lambda *_: (0,) * a.ndim)
        kernel = functools.partial(
            _mba_kernel, B=B, S=S, d_k=self.d_k, d_v=self.d_v,
            d_model=self.d_model, n_branches=self.n_branches, eps=self.eps)

        out2, attn = pl.pallas_call(
            kernel,
            out_shape=(jax.ShapeDtypeStruct((B * S, dm), jnp.float32),
                       jax.ShapeDtypeStruct((B, self.n_branches, S, S), jnp.float32)),
            in_specs=[full(a) for a in args],
            out_specs=(pl.BlockSpec((B * S, dm), lambda *_: (0, 0)),
                       pl.BlockSpec((B, self.n_branches, S, S), lambda *_: (0, 0, 0, 0))),
        )(*args)

        return out2.reshape(B, S, dm), attn


# --------------------------- pure-JAX reference --------------------------------
def reference_forward(model, q, k, v):
    p = model.raw
    eps = model.eps
    B, S, dm = q.shape
    H, dk, dv = model.n_branches, model.d_k, model.d_v
    hi = lax.Precision.HIGHEST

    def lin(x, w):  # w: (out, in)
        return jnp.einsum("bsd,od->bso", x, w, precision=hi)

    def ln(z, g, b):
        mean = z.mean(-1, keepdims=True)
        std = jnp.sqrt(jnp.sum((z - mean) ** 2, -1, keepdims=True) / (z.shape[-1] - 1))
        return g * ((z - mean) / (std + eps)) + b

    qs = lin(q, p["w_q"]).reshape(B, S, H, dk).transpose(0, 2, 1, 3)
    ks = lin(k, p["w_k"]).reshape(B, S, H, dk).transpose(0, 2, 1, 3)
    vs = lin(v, p["w_v"]).reshape(B, S, H, dv).transpose(0, 2, 1, 3)
    scores = jnp.einsum("bhqd,bhkd->bhqk", qs, ks, precision=hi) / math.sqrt(dk)
    attn = jax.nn.softmax(scores, axis=-1)
    ctx = jnp.einsum("bhqk,bhkd->bhqd", attn, vs, precision=hi)
    ctx = ctx.transpose(0, 2, 1, 3).reshape(B, S, H * dv)

    outs = []
    for i in range(H):
        ci = ctx[..., i * dv:(i + 1) * dv]
        o = p["w_kp"][i] * (lin(ci, p["w_o"][i]) + p["b_o"][i])
        hdn = jax.nn.relu(lin(o, p["w_1"][i]) + p["b_1"][i])
        y = lin(hdn, p["w_2"][i]) + p["b_2"][i]
        outs.append(p["w_a"][i] * ln(o + y, p["g_br"][i], p["bt_br"][i]))
    out = sum(outs)
    return ln(q + out, p["g_f"], p["bt_f"]), attn


# ----------------------------------- main --------------------------------------
if __name__ == "__main__":
    d_k = d_v = 16
    d_model = 64
    d_ff = 128
    n_branches = 4
    dropout = 0.1
    B, S = 2, 8

    key = jax.random.PRNGKey(0)
    mkey, qk, kk, vk = jax.random.split(key, 4)
    model = MultiBranchAttentionPallas(d_k, d_v, d_model, d_ff, n_branches, dropout, mkey)

    q = jax.random.normal(qk, (B, S, d_model), jnp.float32)
    k = jax.random.normal(kk, (B, S, d_model), jnp.float32)
    v = jax.random.normal(vk, (B, S, d_model), jnp.float32)

    out, attn = model.forward(q, k, v, attn_mask=None)
    out = jax.block_until_ready(out)
    attn = jax.block_until_ready(attn)

    assert out.shape == (B, S, d_model), out.shape
    assert attn.shape == (B, n_branches, S, S), attn.shape
    assert jnp.all(jnp.isfinite(out)) and jnp.all(jnp.isfinite(attn))
    assert jnp.allclose(jnp.sum(attn, axis=-1), 1.0, atol=1e-4)

    # Cross-check against a pure-JAX reference of the PyTorch forward.
    out_ref, attn_ref = reference_forward(model, q, k, v)
    assert jnp.allclose(attn, attn_ref, atol=2e-2, rtol=2e-2)
    assert jnp.allclose(out, out_ref, atol=2e-2, rtol=2e-2)

    print("KERNEL_OK")
</pallas_src>

<mosaic_0001>
module attributes {stable_mosaic.version = 11 : i64} {
  func.func @_mba_kernel(%arg0: memref<16x64xf32, #tpu.memory_space<vmem>>, %arg1: memref<16x64xf32, #tpu.memory_space<vmem>>, %arg2: memref<16x64xf32, #tpu.memory_space<vmem>>, %arg3: memref<64x64xf32, #tpu.memory_space<vmem>>, %arg4: memref<64x64xf32, #tpu.memory_space<vmem>>, %arg5: memref<64x64xf32, #tpu.memory_space<vmem>>, %arg6: memref<4x16x64xf32, #tpu.memory_space<vmem>>, %arg7: memref<4x1x64xf32, #tpu.memory_space<vmem>>, %arg8: memref<4x64x32xf32, #tpu.memory_space<vmem>>, %arg9: memref<4x1x32xf32, #tpu.memory_space<vmem>>, %arg10: memref<4x32x64xf32, #tpu.memory_space<vmem>>, %arg11: memref<4x1x64xf32, #tpu.memory_space<vmem>>, %arg12: memref<4x1x64xf32, #tpu.memory_space<vmem>>, %arg13: memref<4x1x64xf32, #tpu.memory_space<vmem>>, %arg14: memref<1x64xf32, #tpu.memory_space<vmem>>, %arg15: memref<1x64xf32, #tpu.memory_space<vmem>>, %arg16: memref<16x64xf32, #tpu.memory_space<vmem>>, %arg17: memref<2x4x8x8xf32, #tpu.memory_space<vmem>>) attributes {dimension_semantics = [], scalar_prefetch = 0 : i64, scratch_operands = 0 : i64, tpu.core_type = #tpu.core_type<tc>} {
    %c0 = arith.constant 0 : index
    %c0_0 = arith.constant 0 : index
    %0 = vector.load %arg0[%c0, %c0_0] : memref<16x64xf32, #tpu.memory_space<vmem>>, vector<16x64xf32>
    %c0_1 = arith.constant 0 : index
    %c0_2 = arith.constant 0 : index
    %1 = vector.load %arg1[%c0_1, %c0_2] : memref<16x64xf32, #tpu.memory_space<vmem>>, vector<16x64xf32>
    %c0_3 = arith.constant 0 : index
    %c0_4 = arith.constant 0 : index
    %2 = vector.load %arg2[%c0_3, %c0_4] : memref<16x64xf32, #tpu.memory_space<vmem>>, vector<16x64xf32>
    %c0_5 = arith.constant 0 : index
    %c0_6 = arith.constant 0 : index
    %3 = vector.load %arg3[%c0_5, %c0_6] : memref<64x64xf32, #tpu.memory_space<vmem>>, vector<64x64xf32>
    %cst = arith.constant dense<0.000000e+00> : vector<16x64xf32>
    %4 = tpu.matmul %0, %3, %cst {dimension_numbers = #tpu.dot_dimension_numbers<[1], [0], [0], [1], [0, 0, 1, 1], [], []>} : vector<16x64xf32>, vector<64x64xf32>, vector<16x64xf32> -> vector<16x64xf32>
    %c0_7 = arith.constant 0 : index
    %c0_8 = arith.constant 0 : index
    %5 = vector.load %arg4[%c0_7, %c0_8] : memref<64x64xf32, #tpu.memory_space<vmem>>, vector<64x64xf32>
    %cst_9 = arith.constant dense<0.000000e+00> : vector<16x64xf32>
    %6 = tpu.matmul %1, %5, %cst_9 {dimension_numbers = #tpu.dot_dimension_numbers<[1], [0], [0], [1], [0, 0, 1, 1], [], []>} : vector<16x64xf32>, vector<64x64xf32>, vector<16x64xf32> -> vector<16x64xf32>
    %c0_10 = arith.constant 0 : index
    %c0_11 = arith.constant 0 : index
    %7 = vector.load %arg5[%c0_10, %c0_11] : memref<64x64xf32, #tpu.memory_space<vmem>>, vector<64x64xf32>
    %cst_12 = arith.constant dense<0.000000e+00> : vector<16x64xf32>
    %8 = tpu.matmul %2, %7, %cst_12 {dimension_numbers = #tpu.dot_dimension_numbers<[1], [0], [0], [1], [0, 0, 1, 1], [], []>} : vector<16x64xf32>, vector<64x64xf32>, vector<16x64xf32> -> vector<16x64xf32>
    %9 = vector.extract_strided_slice %4 {offsets = [0, 0], sizes = [8, 64], strides = [1, 1]} : vector<16x64xf32> to vector<8x64xf32>
    %10 = vector.extract_strided_slice %6 {offsets = [0, 0], sizes = [8, 64], strides = [1, 1]} : vector<16x64xf32> to vector<8x64xf32>
    %11 = vector.extract_strided_slice %8 {offsets = [0, 0], sizes = [8, 64], strides = [1, 1]} : vector<16x64xf32> to vector<8x64xf32>
    %12 = vector.extract_strided_slice %0 {offsets = [0, 0], sizes = [8, 64], strides = [1, 1]} : vector<16x64xf32> to vector<8x64xf32>
    %cst_13 = arith.constant 0.000000e+00 : f32
    %13 = vector.broadcast %cst_13 : f32 to vector<8x64xf32>
    %14 = vector.extract_strided_slice %9 {offsets = [0, 0], sizes = [8, 16], strides = [1, 1]} : vector<8x64xf32> to vector<8x16xf32>
    %15 = vector.extract_strided_slice %10 {offsets = [0, 0], sizes = [8, 16], strides = [1, 1]} : vector<8x64xf32> to vector<8x16xf32>
    %16 = vector.extract_strided_slice %11 {offsets = [0, 0], sizes = [8, 16], strides = [1, 1]} : vector<8x64xf32> to vector<8x16xf32>
    %cst_14 = arith.constant dense<0.000000e+00> : vector<8x8xf32>
    %17 = tpu.matmul %14, %15, %cst_14 {dimension_numbers = #tpu.dot_dimension_numbers<[1], [1], [0], [0], [0, 0, 1, 0], [], []>} : vector<8x16xf32>, vector<8x16xf32>, vector<8x8xf32> -> vector<8x8xf32>
    %cst_15 = arith.constant dense<0xFF800000> : vector<8xf32>
    %18 = vector.multi_reduction <maximumf>, %17, %cst_15 [1] : vector<8x8xf32> to vector<8xf32>
    %19 = vector.shape_cast %18 : vector<8xf32> to vector<8x1xf32>
    %20 = vector.broadcast %19 : vector<8x1xf32> to vector<8x8xf32>
    %21 = arith.subf %17, %20 : vector<8x8xf32>
    %22 = math.exp %21 : vector<8x8xf32>
    %cst_16 = arith.constant dense<0.000000e+00> : vector<8xf32>
    %23 = vector.multi_reduction <add>, %22, %cst_16 [1] : vector<8x8xf32> to vector<8xf32>
    %24 = vector.shape_cast %23 : vector<8xf32> to vector<8x1xf32>
    %25 = vector.broadcast %24 : vector<8x1xf32> to vector<8x8xf32>
    %26 = arith.divf %22, %25 : vector<8x8xf32>
    %c0_17 = arith.constant 0 : index
    %c0_18 = arith.constant 0 : index
    %c0_19 = arith.constant 0 : index
    %c0_20 = arith.constant 0 : index
    %27 = vector.load %arg17[%c0_17, %c0_18, %c0_19, %c0_20] : memref<2x4x8x8xf32, #tpu.memory_space<vmem>>, vector<1x1x8x8xf32>
    %28 = vector.shape_cast %27 : vector<1x1x8x8xf32> to vector<8x8xf32>
    %29 = vector.shape_cast %26 : vector<8x8xf32> to vector<1x1x8x8xf32>
    tpu.vector_store %arg17[%c0_17, %c0_18, %c0_19, %c0_20], %29 {strides = array<i32>} : memref<2x4x8x8xf32, #tpu.memory_space<vmem>>, vector<1x1x8x8xf32>,
    %cst_21 = arith.constant dense<0.000000e+00> : vector<8x16xf32>
    %30 = tpu.matmul %26, %16, %cst_21 {dimension_numbers = #tpu.dot_dimension_numbers<[1], [0], [0], [1], [0, 0, 1, 1], [], []>} : vector<8x8xf32>, vector<8x16xf32>, vector<8x16xf32> -> vector<8x16xf32>
    %c0_22 = arith.constant 0 : index
    %c0_23 = arith.constant 0 : index
    %c0_24 = arith.constant 0 : index
    %31 = vector.load %arg6[%c0_22, %c0_23, %c0_24] : memref<4x16x64xf32, #tpu.memory_space<vmem>>, vector<1x16x64xf32>
    %32 = vector.shape_cast %31 : vector<1x16x64xf32> to vector<16x64xf32>
    %cst_25 = arith.constant dense<0.000000e+00> : vector<8x64xf32>
    %33 = tpu.matmul %30, %32, %cst_25 {dimension_numbers = #tpu.dot_dimension_numbers<[1], [0], [0], [1], [0, 0, 1, 1], [], []>} : vector<8x16xf32>, vector<16x64xf32>, vector<8x64xf32> -> vector<8x64xf32>
    %c0_26 = arith.constant 0 : index
    %c0_27 = arith.constant 0 : index
    %c0_28 = arith.constant 0 : index
    %34 = vector.load %arg7[%c0_26, %c0_27, %c0_28] : memref<4x1x64xf32, #tpu.memory_space<vmem>>, vector<1x1x64xf32>
    %35 = vector.shape_cast %34 : vector<1x1x64xf32> to vector<1x64xf32>
    %36 = vector.broadcast %35 : vector<1x64xf32> to vector<8x64xf32>
    %37 = arith.addf %33, %36 : vector<8x64xf32>
    %c0_29 = arith.constant 0 : index
    %c0_30 = arith.constant 0 : index
    %c0_31 = arith.constant 0 : index
    %38 = vector.load %arg8[%c0_29, %c0_30, %c0_31] : memref<4x64x32xf32, #tpu.memory_space<vmem>>, vector<1x64x32xf32>
    %39 = vector.shape_cast %38 : vector<1x64x32xf32> to vector<64x32xf32>
    %cst_32 = arith.constant dense<0.000000e+00> : vector<8x32xf32>
    %40 = tpu.matmul %37, %39, %cst_32 {dimension_numbers = #tpu.dot_dimension_numbers<[1], [0], [0], [1], [0, 0, 1, 1], [], []>} : vector<8x64xf32>, vector<64x32xf32>, vector<8x32xf32> -> vector<8x32xf32>
    %c0_33 = arith.constant 0 : index
    %c0_34 = arith.constant 0 : index
    %c0_35 = arith.constant 0 : index
    %41 = vector.load %arg9[%c0_33, %c0_34, %c0_35] : memref<4x1x32xf32, #tpu.memory_space<vmem>>, vector<1x1x32xf32>
    %42 = vector.shape_cast %41 : vector<1x1x32xf32> to vector<1x32xf32>
    %43 = vector.broadcast %42 : vector<1x32xf32> to vector<8x32xf32>
    %44 = arith.addf %40, %43 : vector<8x32xf32>
    %cst_36 = arith.constant 0.000000e+00 : f32
    %45 = vector.broadcast %cst_36 : f32 to vector<8x32xf32>
    %46 = arith.maximumf %44, %45 : vector<8x32xf32>
    %c0_37 = arith.constant 0 : index
    %c0_38 = arith.constant 0 : index
    %c0_39 = arith.constant 0 : index
    %47 = vector.load %arg10[%c0_37, %c0_38, %c0_39] : memref<4x32x64xf32, #tpu.memory_space<vmem>>, vector<1x32x64xf32>
    %48 = vector.shape_cast %47 : vector<1x32x64xf32> to vector<32x64xf32>
    %cst_40 = arith.constant dense<0.000000e+00> : vector<8x64xf32>
    %49 = tpu.matmul %46, %48, %cst_40 {dimension_numbers = #tpu.dot_dimension_numbers<[1], [0], [0], [1], [0, 0, 1, 1], [], []>} : vector<8x32xf32>, vector<32x64xf32>, vector<8x64xf32> -> vector<8x64xf32>
    %c0_41 = arith.constant 0 : index
    %c0_42 = arith.constant 0 : index
    %c0_43 = arith.constant 0 : index
    %50 = vector.load %arg11[%c0_41, %c0_42, %c0_43] : memref<4x1x64xf32, #tpu.memory_space<vmem>>, vector<1x1x64xf32>
    %51 = vector.shape_cast %50 : vector<1x1x64xf32> to vector<1x64xf32>
    %52 = vector.broadcast %51 : vector<1x64xf32> to vector<8x64xf32>
    %53 = arith.addf %49, %52 : vector<8x64xf32>
    %54 = arith.addf %37, %53 : vector<8x64xf32>
    %c0_44 = arith.constant 0 : index
    %c0_45 = arith.constant 0 : index
    %c0_46 = arith.constant 0 : index
    %55 = vector.load %arg12[%c0_44, %c0_45, %c0_46] : memref<4x1x64xf32, #tpu.memory_space<vmem>>, vector<1x1x64xf32>
    %56 = vector.shape_cast %55 : vector<1x1x64xf32> to vector<1x64xf32>
    %c0_47 = arith.constant 0 : index
    %c0_48 = arith.constant 0 : index
    %c0_49 = arith.constant 0 : index
    %57 = vector.load %arg13[%c0_47, %c0_48, %c0_49] : memref<4x1x64xf32, #tpu.memory_space<vmem>>, vector<1x1x64xf32>
    %58 = vector.shape_cast %57 : vector<1x1x64xf32> to vector<1x64xf32>
    %cst_50 = arith.constant dense<0.000000e+00> : vector<8xf32>
    %59 = vector.multi_reduction <add>, %54, %cst_50 [1] : vector<8x64xf32> to vector<8xf32>
    %60 = vector.shape_cast %59 : vector<8xf32> to vector<8x1xf32>
    %cst_51 = arith.constant 6.400000e+01 : f32
    %61 = vector.broadcast %cst_51 : f32 to vector<8x1xf32>
    %62 = arith.divf %60, %61 : vector<8x1xf32>
    %63 = vector.broadcast %62 : vector<8x1xf32> to vector<8x64xf32>
    %64 = arith.subf %54, %63 : vector<8x64xf32>
    %65 = arith.mulf %64, %64 : vector<8x64xf32>
    %cst_52 = arith.constant dense<0.000000e+00> : vector<8xf32>
    %66 = vector.multi_reduction <add>, %65, %cst_52 [1] : vector<8x64xf32> to vector<8xf32>
    %67 = vector.shape_cast %66 : vector<8xf32> to vector<8x1xf32>
    %cst_53 = arith.constant 6.300000e+01 : f32
    %68 = vector.broadcast %cst_53 : f32 to vector<8x1xf32>
    %69 = arith.divf %67, %68 : vector<8x1xf32>
    %70 = math.sqrt %69 : vector<8x1xf32>
    %71 = vector.broadcast %62 : vector<8x1xf32> to vector<8x64xf32>
    %72 = arith.subf %54, %71 : vector<8x64xf32>
    %cst_54 = arith.constant 9.99999997E-7 : f32
    %73 = vector.broadcast %cst_54 : f32 to vector<8x1xf32>
    %74 = arith.addf %70, %73 : vector<8x1xf32>
    %75 = vector.broadcast %74 : vector<8x1xf32> to vector<8x64xf32>
    %76 = arith.divf %72, %75 : vector<8x64xf32>
    %77 = vector.broadcast %56 : vector<1x64xf32> to vector<8x64xf32>
    %78 = arith.mulf %77, %76 : vector<8x64xf32>
    %79 = vector.broadcast %58 : vector<1x64xf32> to vector<8x64xf32>
    %80 = arith.addf %78, %79 : vector<8x64xf32>
    %81 = arith.addf %13, %80 : vector<8x64xf32>
    %82 = vector.extract_strided_slice %9 {offsets = [0, 16], sizes = [8, 16], strides = [1, 1]} : vector<8x64xf32> to vector<8x16xf32>
    %83 = vector.extract_strided_slice %10 {offsets = [0, 16], sizes = [8, 16], strides = [1, 1]} : vector<8x64xf32> to vector<8x16xf32>
    %84 = vector.extract_strided_slice %11 {offsets = [0, 16], sizes = [8, 16], strides = [1, 1]} : vector<8x64xf32> to vector<8x16xf32>
    %cst_55 = arith.constant dense<0.000000e+00> : vector<8x8xf32>
    %85 = tpu.matmul %82, %83, %cst_55 {dimension_numbers = #tpu.dot_dimension_numbers<[1], [1], [0], [0], [0, 0, 1, 0], [], []>} : vector<8x16xf32>, vector<8x16xf32>, vector<8x8xf32> -> vector<8x8xf32>
    %cst_56 = arith.constant dense<0xFF800000> : vector<8xf32>
    %86 = vector.multi_reduction <maximumf>, %85, %cst_56 [1] : vector<8x8xf32> to vector<8xf32>
    %87 = vector.shape_cast %86 : vector<8xf32> to vector<8x1xf32>
    %88 = vector.broadcast %87 : vector<8x1xf32> to vector<8x8xf32>
    %89 = arith.subf %85, %88 : vector<8x8xf32>
    %90 = math.exp %89 : vector<8x8xf32>
    %cst_57 = arith.constant dense<0.000000e+00> : vector<8xf32>
    %91 = vector.multi_reduction <add>, %90, %cst_57 [1] : vector<8x8xf32> to vector<8xf32>
    %92 = vector.shape_cast %91 : vector<8xf32> to vector<8x1xf32>
    %93 = vector.broadcast %92 : vector<8x1xf32> to vector<8x8xf32>
    %94 = arith.divf %90, %93 : vector<8x8xf32>
    %c0_58 = arith.constant 0 : index
    %c1 = arith.constant 1 : index
    %c0_59 = arith.constant 0 : index
    %c0_60 = arith.constant 0 : index
    %95 = vector.load %arg17[%c0_58, %c1, %c0_59, %c0_60] : memref<2x4x8x8xf32, #tpu.memory_space<vmem>>, vector<1x1x8x8xf32>
    %96 = vector.shape_cast %95 : vector<1x1x8x8xf32> to vector<8x8xf32>
    %97 = vector.shape_cast %94 : vector<8x8xf32> to vector<1x1x8x8xf32>
    tpu.vector_store %arg17[%c0_58, %c1, %c0_59, %c0_60], %97 {strides = array<i32>} : memref<2x4x8x8xf32, #tpu.memory_space<vmem>>, vector<1x1x8x8xf32>,
    %cst_61 = arith.constant dense<0.000000e+00> : vector<8x16xf32>
    %98 = tpu.matmul %94, %84, %cst_61 {dimension_numbers = #tpu.dot_dimension_numbers<[1], [0], [0], [1], [0, 0, 1, 1], [], []>} : vector<8x8xf32>, vector<8x16xf32>, vector<8x16xf32> -> vector<8x16xf32>
    %c1_62 = arith.constant 1 : index
    %c0_63 = arith.constant 0 : index
    %c0_64 = arith.constant 0 : index
    %99 = vector.load %arg6[%c1_62, %c0_63, %c0_64] : memref<4x16x64xf32, #tpu.memory_space<vmem>>, vector<1x16x64xf32>
    %100 = vector.shape_cast %99 : vector<1x16x64xf32> to vector<16x64xf32>
    %cst_65 = arith.constant dense<0.000000e+00> : vector<8x64xf32>
    %101 = tpu.matmul %98, %100, %cst_65 {dimension_numbers = #tpu.dot_dimension_numbers<[1], [0], [0], [1], [0, 0, 1, 1], [], []>} : vector<8x16xf32>, vector<16x64xf32>, vector<8x64xf32> -> vector<8x64xf32>
    %c1_66 = arith.constant 1 : index
    %c0_67 = arith.constant 0 : index
    %c0_68 = arith.constant 0 : index
    %102 = vector.load %arg7[%c1_66, %c0_67, %c0_68] : memref<4x1x64xf32, #tpu.memory_space<vmem>>, vector<1x1x64xf32>
    %103 = vector.shape_cast %102 : vector<1x1x64xf32> to vector<1x64xf32>
    %104 = vector.broadcast %103 : vector<1x64xf32> to vector<8x64xf32>
    %105 = arith.addf %101, %104 : vector<8x64xf32>
    %c1_69 = arith.constant 1 : index
    %c0_70 = arith.constant 0 : index
    %c0_71 = arith.constant 0 : index
    %106 = vector.load %arg8[%c1_69, %c0_70, %c0_71] : memref<4x64x32xf32, #tpu.memory_space<vmem>>, vector<1x64x32xf32>
    %107 = vector.shape_cast %106 : vector<1x64x32xf32> to vector<64x32xf32>
    %cst_72 = arith.constant dense<0.000000e+00> : vector<8x32xf32>
    %108 = tpu.matmul %105, %107, %cst_72 {dimension_numbers = #tpu.dot_dimension_numbers<[1], [0], [0], [1], [0, 0, 1, 1], [], []>} : vector<8x64xf32>, vector<64x32xf32>, vector<8x32xf32> -> vector<8x32xf32>
    %c1_73 = arith.constant 1 : index
    %c0_74 = arith.constant 0 : index
    %c0_75 = arith.constant 0 : index
    %109 = vector.load %arg9[%c1_73, %c0_74, %c0_75] : memref<4x1x32xf32, #tpu.memory_space<vmem>>, vector<1x1x32xf32>
    %110 = vector.shape_cast %109 : vector<1x1x32xf32> to vector<1x32xf32>
    %111 = vector.broadcast %110 : vector<1x32xf32> to vector<8x32xf32>
    %112 = arith.addf %108, %111 : vector<8x32xf32>
    %cst_76 = arith.constant 0.000000e+00 : f32
    %113 = vector.broadcast %cst_76 : f32 to vector<8x32xf32>
    %114 = arith.maximumf %112, %113 : vector<8x32xf32>
    %c1_77 = arith.constant 1 : index
    %c0_78 = arith.constant 0 : index
    %c0_79 = arith.constant 0 : index
    %115 = vector.load %arg10[%c1_77, %c0_78, %c0_79] : memref<4x32x64xf32, #tpu.memory_space<vmem>>, vector<1x32x64xf32>
    %116 = vector.shape_cast %115 : vector<1x32x64xf32> to vector<32x64xf32>
    %cst_80 = arith.constant dense<0.000000e+00> : vector<8x64xf32>
    %117 = tpu.matmul %114, %116, %cst_80 {dimension_numbers = #tpu.dot_dimension_numbers<[1], [0], [0], [1], [0, 0, 1, 1], [], []>} : vector<8x32xf32>, vector<32x64xf32>, vector<8x64xf32> -> vector<8x64xf32>
    %c1_81 = arith.constant 1 : index
    %c0_82 = arith.constant 0 : index
    %c0_83 = arith.constant 0 : index
    %118 = vector.load %arg11[%c1_81, %c0_82, %c0_83] : memref<4x1x64xf32, #tpu.memory_space<vmem>>, vector<1x1x64xf32>
    %119 = vector.shape_cast %118 : vector<1x1x64xf32> to vector<1x64xf32>
    %120 = vector.broadcast %119 : vector<1x64xf32> to vector<8x64xf32>
    %121 = arith.addf %117, %120 : vector<8x64xf32>
    %122 = arith.addf %105, %121 : vector<8x64xf32>
    %c1_84 = arith.constant 1 : index
    %c0_85 = arith.constant 0 : index
    %c0_86 = arith.constant 0 : index
    %123 = vector.load %arg12[%c1_84, %c0_85, %c0_86] : memref<4x1x64xf32, #tpu.memory_space<vmem>>, vector<1x1x64xf32>
    %124 = vector.shape_cast %123 : vector<1x1x64xf32> to vector<1x64xf32>
    %c1_87 = arith.constant 1 : index
    %c0_88 = arith.constant 0 : index
    %c0_89 = arith.constant 0 : index
    %125 = vector.load %arg13[%c1_87, %c0_88, %c0_89] : memref<4x1x64xf32, #tpu.memory_space<vmem>>, vector<1x1x64xf32>
    %126 = vector.shape_cast %125 : vector<1x1x64xf32> to vector<1x64xf32>
    %cst_90 = arith.constant dense<0.000000e+00> : vector<8xf32>
    %127 = vector.multi_reduction <add>, %122, %cst_90 [1] : vector<8x64xf32> to vector<8xf32>
    %128 = vector.shape_cast %127 : vector<8xf32> to vector<8x1xf32>
    %cst_91 = arith.constant 6.400000e+01 : f32
    %129 = vector.broadcast %cst_91 : f32 to vector<8x1xf32>
    %130 = arith.divf %128, %129 : vector<8x1xf32>
    %131 = vector.broadcast %130 : vector<8x1xf32> to vector<8x64xf32>
    %132 = arith.subf %122, %131 : vector<8x64xf32>
    %133 = arith.mulf %132, %132 : vector<8x64xf32>
    %cst_92 = arith.constant dense<0.000000e+00> : vector<8xf32>
    %134 = vector.multi_reduction <add>, %133, %cst_92 [1] : vector<8x64xf32> to vector<8xf32>
    %135 = vector.shape_cast %134 : vector<8xf32> to vector<8x1xf32>
    %cst_93 = arith.constant 6.300000e+01 : f32
    %136 = vector.broadcast %cst_93 : f32 to vector<8x1xf32>
    %137 = arith.divf %135, %136 : vector<8x1xf32>
    %138 = math.sqrt %137 : vector<8x1xf32>
    %139 = vector.broadcast %130 : vector<8x1xf32> to vector<8x64xf32>
    %140 = arith.subf %122, %139 : vector<8x64xf32>
    %cst_94 = arith.constant 9.99999997E-7 : f32
    %141 = vector.broadcast %cst_94 : f32 to vector<8x1xf32>
    %142 = arith.addf %138, %141 : vector<8x1xf32>
    %143 = vector.broadcast %142 : vector<8x1xf32> to vector<8x64xf32>
    %144 = arith.divf %140, %143 : vector<8x64xf32>
    %145 = vector.broadcast %124 : vector<1x64xf32> to vector<8x64xf32>
    %146 = arith.mulf %145, %144 : vector<8x64xf32>
    %147 = vector.broadcast %126 : vector<1x64xf32> to vector<8x64xf32>
    %148 = arith.addf %146, %147 : vector<8x64xf32>
    %149 = arith.addf %81, %148 : vector<8x64xf32>
    %150 = vector.extract_strided_slice %9 {offsets = [0, 32], sizes = [8, 16], strides = [1, 1]} : vector<8x64xf32> to vector<8x16xf32>
    %151 = vector.extract_strided_slice %10 {offsets = [0, 32], sizes = [8, 16], strides = [1, 1]} : vector<8x64xf32> to vector<8x16xf32>
    %152 = vector.extract_strided_slice %11 {offsets = [0, 32], sizes = [8, 16], strides = [1, 1]} : vector<8x64xf32> to vector<8x16xf32>
    %cst_95 = arith.constant dense<0.000000e+00> : vector<8x8xf32>
    %153 = tpu.matmul %150, %151, %cst_95 {dimension_numbers = #tpu.dot_dimension_numbers<[1], [1], [0], [0], [0, 0, 1, 0], [], []>} : vector<8x16xf32>, vector<8x16xf32>, vector<8x8xf32> -> vector<8x8xf32>
    %cst_96 = arith.constant dense<0xFF800000> : vector<8xf32>
    %154 = vector.multi_reduction <maximumf>, %153, %cst_96 [1] : vector<8x8xf32> to vector<8xf32>
    %155 = vector.shape_cast %154 : vector<8xf32> to vector<8x1xf32>
    %156 = vector.broadcast %155 : vector<8x1xf32> to vector<8x8xf32>
    %157 = arith.subf %153, %156 : vector<8x8xf32>
    %158 = math.exp %157 : vector<8x8xf32>
    %cst_97 = arith.constant dense<0.000000e+00> : vector<8xf32>
    %159 = vector.multi_reduction <add>, %158, %cst_97 [1] : vector<8x8xf32> to vector<8xf32>
    %160 = vector.shape_cast %159 : vector<8xf32> to vector<8x1xf32>
    %161 = vector.broadcast %160 : vector<8x1xf32> to vector<8x8xf32>
    %162 = arith.divf %158, %161 : vector<8x8xf32>
    %c0_98 = arith.constant 0 : index
    %c2 = arith.constant 2 : index
    %c0_99 = arith.constant 0 : index
    %c0_100 = arith.constant 0 : index
    %163 = vector.load %arg17[%c0_98, %c2, %c0_99, %c0_100] : memref<2x4x8x8xf32, #tpu.memory_space<vmem>>, vector<1x1x8x8xf32>
    %164 = vector.shape_cast %163 : vector<1x1x8x8xf32> to vector<8x8xf32>
    %165 = vector.shape_cast %162 : vector<8x8xf32> to vector<1x1x8x8xf32>
    tpu.vector_store %arg17[%c0_98, %c2, %c0_99, %c0_100], %165 {strides = array<i32>} : memref<2x4x8x8xf32, #tpu.memory_space<vmem>>, vector<1x1x8x8xf32>,
    %cst_101 = arith.constant dense<0.000000e+00> : vector<8x16xf32>
    %166 = tpu.matmul %162, %152, %cst_101 {dimension_numbers = #tpu.dot_dimension_numbers<[1], [0], [0], [1], [0, 0, 1, 1], [], []>} : vector<8x8xf32>, vector<8x16xf32>, vector<8x16xf32> -> vector<8x16xf32>
    %c2_102 = arith.constant 2 : index
    %c0_103 = arith.constant 0 : index
    %c0_104 = arith.constant 0 : index
    %167 = vector.load %arg6[%c2_102, %c0_103, %c0_104] : memref<4x16x64xf32, #tpu.memory_space<vmem>>, vector<1x16x64xf32>
    %168 = vector.shape_cast %167 : vector<1x16x64xf32> to vector<16x64xf32>
    %cst_105 = arith.constant dense<0.000000e+00> : vector<8x64xf32>
    %169 = tpu.matmul %166, %168, %cst_105 {dimension_numbers = #tpu.dot_dimension_numbers<[1], [0], [0], [1], [0, 0, 1, 1], [], []>} : vector<8x16xf32>, vector<16x64xf32>, vector<8x64xf32> -> vector<8x64xf32>
    %c2_106 = arith.constant 2 : index
    %c0_107 = arith.constant 0 : index
    %c0_108 = arith.constant 0 : index
    %170 = vector.load %arg7[%c2_106, %c0_107, %c0_108] : memref<4x1x64xf32, #tpu.memory_space<vmem>>, vector<1x1x64xf32>
    %171 = vector.shape_cast %170 : vector<1x1x64xf32> to vector<1x64xf32>
    %172 = vector.broadcast %171 : vector<1x64xf32> to vector<8x64xf32>
    %173 = arith.addf %169, %172 : vector<8x64xf32>
    %c2_109 = arith.constant 2 : index
    %c0_110 = arith.constant 0 : index
    %c0_111 = arith.constant 0 : index
    %174 = vector.load %arg8[%c2_109, %c0_110, %c0_111] : memref<4x64x32xf32, #tpu.memory_space<vmem>>, vector<1x64x32xf32>
    %175 = vector.shape_cast %174 : vector<1x64x32xf32> to vector<64x32xf32>
    %cst_112 = arith.constant dense<0.000000e+00> : vector<8x32xf32>
    %176 = tpu.matmul %173, %175, %cst_112 {dimension_numbers = #tpu.dot_dimension_numbers<[1], [0], [0], [1], [0, 0, 1, 1], [], []>} : vector<8x64xf32>, vector<64x32xf32>, vector<8x32xf32> -> vector<8x32xf32>
    %c2_113 = arith.constant 2 : index
    %c0_114 = arith.constant 0 : index
    %c0_115 = arith.constant 0 : index
    %177 = vector.load %arg9[%c2_113, %c0_114, %c0_115] : memref<4x1x32xf32, #tpu.memory_space<vmem>>, vector<1x1x32xf32>
    %178 = vector.shape_cast %177 : vector<1x1x32xf32> to vector<1x32xf32>
    %179 = vector.broadcast %178 : vector<1x32xf32> to vector<8x32xf32>
    %180 = arith.addf %176, %179 : vector<8x32xf32>
    %cst_116 = arith.constant 0.000000e+00 : f32
    %181 = vector.broadcast %cst_116 : f32 to vector<8x32xf32>
    %182 = arith.maximumf %180, %181 : vector<8x32xf32>
    %c2_117 = arith.constant 2 : index
    %c0_118 = arith.constant 0 : index
    %c0_119 = arith.constant 0 : index
    %183 = vector.load %arg10[%c2_117, %c0_118, %c0_119] : memref<4x32x64xf32, #tpu.memory_space<vmem>>, vector<1x32x64xf32>
    %184 = vector.shape_cast %183 : vector<1x32x64xf32> to vector<32x64xf32>
    %cst_120 = arith.constant dense<0.000000e+00> : vector<8x64xf32>
    %185 = tpu.matmul %182, %184, %cst_120 {dimension_numbers = #tpu.dot_dimension_numbers<[1], [0], [0], [1], [0, 0, 1, 1], [], []>} : vector<8x32xf32>, vector<32x64xf32>, vector<8x64xf32> -> vector<8x64xf32>
    %c2_121 = arith.constant 2 : index
    %c0_122 = arith.constant 0 : index
    %c0_123 = arith.constant 0 : index
    %186 = vector.load %arg11[%c2_121, %c0_122, %c0_123] : memref<4x1x64xf32, #tpu.memory_space<vmem>>, vector<1x1x64xf32>
    %187 = vector.shape_cast %186 : vector<1x1x64xf32> to vector<1x64xf32>
    %188 = vector.broadcast %187 : vector<1x64xf32> to vector<8x64xf32>
    %189 = arith.addf %185, %188 : vector<8x64xf32>
    %190 = arith.addf %173, %189 : vector<8x64xf32>
    %c2_124 = arith.constant 2 : index
    %c0_125 = arith.constant 0 : index
    %c0_126 = arith.constant 0 : index
    %191 = vector.load %arg12[%c2_124, %c0_125, %c0_126] : memref<4x1x64xf32, #tpu.memory_space<vmem>>, vector<1x1x64xf32>
    %192 = vector.shape_cast %191 : vector<1x1x64xf32> to vector<1x64xf32>
    %c2_127 = arith.constant 2 : index
    %c0_128 = arith.constant 0 : index
    %c0_129 = arith.constant 0 : index
    %193 = vector.load %arg13[%c2_127, %c0_128, %c0_129] : memref<4x1x64xf32, #tpu.memory_space<vmem>>, vector<1x1x64xf32>
    %194 = vector.shape_cast %193 : vector<1x1x64xf32> to vector<1x64xf32>
    %cst_130 = arith.constant dense<0.000000e+00> : vector<8xf32>
    %195 = vector.multi_reduction <add>, %190, %cst_130 [1] : vector<8x64xf32> to vector<8xf32>
    %196 = vector.shape_cast %195 : vector<8xf32> to vector<8x1xf32>
    %cst_131 = arith.constant 6.400000e+01 : f32
    %197 = vector.broadcast %cst_131 : f32 to vector<8x1xf32>
    %198 = arith.divf %196, %197 : vector<8x1xf32>
    %199 = vector.broadcast %198 : vector<8x1xf32> to vector<8x64xf32>
    %200 = arith.subf %190, %199 : vector<8x64xf32>
    %201 = arith.mulf %200, %200 : vector<8x64xf32>
    %cst_132 = arith.constant dense<0.000000e+00> : vector<8xf32>
    %202 = vector.multi_reduction <add>, %201, %cst_132 [1] : vector<8x64xf32> to vector<8xf32>
    %203 = vector.shape_cast %202 : vector<8xf32> to vector<8x1xf32>
    %cst_133 = arith.constant 6.300000e+01 : f32
    %204 = vector.broadcast %cst_133 : f32 to vector<8x1xf32>
    %205 = arith.divf %203, %204 : vector<8x1xf32>
    %206 = math.sqrt %205 : vector<8x1xf32>
    %207 = vector.broadcast %198 : vector<8x1xf32> to vector<8x64xf32>
    %208 = arith.subf %190, %207 : vector<8x64xf32>
    %cst_134 = arith.constant 9.99999997E-7 : f32
    %209 = vector.broadcast %cst_134 : f32 to vector<8x1xf32>
    %210 = arith.addf %206, %209 : vector<8x1xf32>
    %211 = vector.broadcast %210 : vector<8x1xf32> to vector<8x64xf32>
    %212 = arith.divf %208, %211 : vector<8x64xf32>
    %213 = vector.broadcast %192 : vector<1x64xf32> to vector<8x64xf32>
    %214 = arith.mulf %213, %212 : vector<8x64xf32>
    %215 = vector.broadcast %194 : vector<1x64xf32> to vector<8x64xf32>
    %216 = arith.addf %214, %215 : vector<8x64xf32>
    %217 = arith.addf %149, %216 : vector<8x64xf32>
    %218 = vector.extract_strided_slice %9 {offsets = [0, 48], sizes = [8, 16], strides = [1, 1]} : vector<8x64xf32> to vector<8x16xf32>
    %219 = vector.extract_strided_slice %10 {offsets = [0, 48], sizes = [8, 16], strides = [1, 1]} : vector<8x64xf32> to vector<8x16xf32>
    %220 = vector.extract_strided_slice %11 {offsets = [0, 48], sizes = [8, 16], strides = [1, 1]} : vector<8x64xf32> to vector<8x16xf32>
    %cst_135 = arith.constant dense<0.000000e+00> : vector<8x8xf32>
    %221 = tpu.matmul %218, %219, %cst_135 {dimension_numbers = #tpu.dot_dimension_numbers<[1], [1], [0], [0], [0, 0, 1, 0], [], []>} : vector<8x16xf32>, vector<8x16xf32>, vector<8x8xf32> -> vector<8x8xf32>
    %cst_136 = arith.constant dense<0xFF800000> : vector<8xf32>
    %222 = vector.multi_reduction <maximumf>, %221, %cst_136 [1] : vector<8x8xf32> to vector<8xf32>
    %223 = vector.shape_cast %222 : vector<8xf32> to vector<8x1xf32>
    %224 = vector.broadcast %223 : vector<8x1xf32> to vector<8x8xf32>
    %225 = arith.subf %221, %224 : vector<8x8xf32>
    %226 = math.exp %225 : vector<8x8xf32>
    %cst_137 = arith.constant dense<0.000000e+00> : vector<8xf32>
    %227 = vector.multi_reduction <add>, %226, %cst_137 [1] : vector<8x8xf32> to vector<8xf32>
    %228 = vector.shape_cast %227 : vector<8xf32> to vector<8x1xf32>
    %229 = vector.broadcast %228 : vector<8x1xf32> to vector<8x8xf32>
    %230 = arith.divf %226, %229 : vector<8x8xf32>
    %c0_138 = arith.constant 0 : index
    %c3 = arith.constant 3 : index
    %c0_139 = arith.constant 0 : index
    %c0_140 = arith.constant 0 : index
    %231 = vector.load %arg17[%c0_138, %c3, %c0_139, %c0_140] : memref<2x4x8x8xf32, #tpu.memory_space<vmem>>, vector<1x1x8x8xf32>
    %232 = vector.shape_cast %231 : vector<1x1x8x8xf32> to vector<8x8xf32>
    %233 = vector.shape_cast %230 : vector<8x8xf32> to vector<1x1x8x8xf32>
    tpu.vector_store %arg17[%c0_138, %c3, %c0_139, %c0_140], %233 {strides = array<i32>} : memref<2x4x8x8xf32, #tpu.memory_space<vmem>>, vector<1x1x8x8xf32>,
    %cst_141 = arith.constant dense<0.000000e+00> : vector<8x16xf32>
    %234 = tpu.matmul %230, %220, %cst_141 {dimension_numbers = #tpu.dot_dimension_numbers<[1], [0], [0], [1], [0, 0, 1, 1], [], []>} : vector<8x8xf32>, vector<8x16xf32>, vector<8x16xf32> -> vector<8x16xf32>
    %c3_142 = arith.constant 3 : index
    %c0_143 = arith.constant 0 : index
    %c0_144 = arith.constant 0 : index
    %235 = vector.load %arg6[%c3_142, %c0_143, %c0_144] : memref<4x16x64xf32, #tpu.memory_space<vmem>>, vector<1x16x64xf32>
    %236 = vector.shape_cast %235 : vector<1x16x64xf32> to vector<16x64xf32>
    %cst_145 = arith.constant dense<0.000000e+00> : vector<8x64xf32>
    %237 = tpu.matmul %234, %236, %cst_145 {dimension_numbers = #tpu.dot_dimension_numbers<[1], [0], [0], [1], [0, 0, 1, 1], [], []>} : vector<8x16xf32>, vector<16x64xf32>, vector<8x64xf32> -> vector<8x64xf32>
    %c3_146 = arith.constant 3 : index
    %c0_147 = arith.constant 0 : index
    %c0_148 = arith.constant 0 : index
    %238 = vector.load %arg7[%c3_146, %c0_147, %c0_148] : memref<4x1x64xf32, #tpu.memory_space<vmem>>, vector<1x1x64xf32>
    %239 = vector.shape_cast %238 : vector<1x1x64xf32> to vector<1x64xf32>
    %240 = vector.broadcast %239 : vector<1x64xf32> to vector<8x64xf32>
    %241 = arith.addf %237, %240 : vector<8x64xf32>
    %c3_149 = arith.constant 3 : index
    %c0_150 = arith.constant 0 : index
    %c0_151 = arith.constant 0 : index
    %242 = vector.load %arg8[%c3_149, %c0_150, %c0_151] : memref<4x64x32xf32, #tpu.memory_space<vmem>>, vector<1x64x32xf32>
    %243 = vector.shape_cast %242 : vector<1x64x32xf32> to vector<64x32xf32>
    %cst_152 = arith.constant dense<0.000000e+00> : vector<8x32xf32>
    %244 = tpu.matmul %241, %243, %cst_152 {dimension_numbers = #tpu.dot_dimension_numbers<[1], [0], [0], [1], [0, 0, 1, 1], [], []>} : vector<8x64xf32>, vector<64x32xf32>, vector<8x32xf32> -> vector<8x32xf32>
    %c3_153 = arith.constant 3 : index
    %c0_154 = arith.constant 0 : index
    %c0_155 = arith.constant 0 : index
    %245 = vector.load %arg9[%c3_153, %c0_154, %c0_155] : memref<4x1x32xf32, #tpu.memory_space<vmem>>, vector<1x1x32xf32>
    %246 = vector.shape_cast %245 : vector<1x1x32xf32> to vector<1x32xf32>
    %247 = vector.broadcast %246 : vector<1x32xf32> to vector<8x32xf32>
    %248 = arith.addf %244, %247 : vector<8x32xf32>
    %cst_156 = arith.constant 0.000000e+00 : f32
    %249 = vector.broadcast %cst_156 : f32 to vector<8x32xf32>
    %250 = arith.maximumf %248, %249 : vector<8x32xf32>
    %c3_157 = arith.constant 3 : index
    %c0_158 = arith.constant 0 : index
    %c0_159 = arith.constant 0 : index
    %251 = vector.load %arg10[%c3_157, %c0_158, %c0_159] : memref<4x32x64xf32, #tpu.memory_space<vmem>>, vector<1x32x64xf32>
    %252 = vector.shape_cast %251 : vector<1x32x64xf32> to vector<32x64xf32>
    %cst_160 = arith.constant dense<0.000000e+00> : vector<8x64xf32>
    %253 = tpu.matmul %250, %252, %cst_160 {dimension_numbers = #tpu.dot_dimension_numbers<[1], [0], [0], [1], [0, 0, 1, 1], [], []>} : vector<8x32xf32>, vector<32x64xf32>, vector<8x64xf32> -> vector<8x64xf32>
    %c3_161 = arith.constant 3 : index
    %c0_162 = arith.constant 0 : index
    %c0_163 = arith.constant 0 : index
    %254 = vector.load %arg11[%c3_161, %c0_162, %c0_163] : memref<4x1x64xf32, #tpu.memory_space<vmem>>, vector<1x1x64xf32>
    %255 = vector.shape_cast %254 : vector<1x1x64xf32> to vector<1x64xf32>
    %256 = vector.broadcast %255 : vector<1x64xf32> to vector<8x64xf32>
    %257 = arith.addf %253, %256 : vector<8x64xf32>
    %258 = arith.addf %241, %257 : vector<8x64xf32>
    %c3_164 = arith.constant 3 : index
    %c0_165 = arith.constant 0 : index
    %c0_166 = arith.constant 0 : index
    %259 = vector.load %arg12[%c3_164, %c0_165, %c0_166] : memref<4x1x64xf32, #tpu.memory_space<vmem>>, vector<1x1x64xf32>
    %260 = vector.shape_cast %259 : vector<1x1x64xf32> to vector<1x64xf32>
    %c3_167 = arith.constant 3 : index
    %c0_168 = arith.constant 0 : index
    %c0_169 = arith.constant 0 : index
    %261 = vector.load %arg13[%c3_167, %c0_168, %c0_169] : memref<4x1x64xf32, #tpu.memory_space<vmem>>, vector<1x1x64xf32>
    %262 = vector.shape_cast %261 : vector<1x1x64xf32> to vector<1x64xf32>
    %cst_170 = arith.constant dense<0.000000e+00> : vector<8xf32>
    %263 = vector.multi_reduction <add>, %258, %cst_170 [1] : vector<8x64xf32> to vector<8xf32>
    %264 = vector.shape_cast %263 : vector<8xf32> to vector<8x1xf32>
    %cst_171 = arith.constant 6.400000e+01 : f32
    %265 = vector.broadcast %cst_171 : f32 to vector<8x1xf32>
    %266 = arith.divf %264, %265 : vector<8x1xf32>
    %267 = vector.broadcast %266 : vector<8x1xf32> to vector<8x64xf32>
    %268 = arith.subf %258, %267 : vector<8x64xf32>
    %269 = arith.mulf %268, %268 : vector<8x64xf32>
    %cst_172 = arith.constant dense<0.000000e+00> : vector<8xf32>
    %270 = vector.multi_reduction <add>, %269, %cst_172 [1] : vector<8x64xf32> to vector<8xf32>
    %271 = vector.shape_cast %270 : vector<8xf32> to vector<8x1xf32>
    %cst_173 = arith.constant 6.300000e+01 : f32
    %272 = vector.broadcast %cst_173 : f32 to vector<8x1xf32>
    %273 = arith.divf %271, %272 : vector<8x1xf32>
    %274 = math.sqrt %273 : vector<8x1xf32>
    %275 = vector.broadcast %266 : vector<8x1xf32> to vector<8x64xf32>
    %276 = arith.subf %258, %275 : vector<8x64xf32>
    %cst_174 = arith.constant 9.99999997E-7 : f32
    %277 = vector.broadcast %cst_174 : f32 to vector<8x1xf32>
    %278 = arith.addf %274, %277 : vector<8x1xf32>
    %279 = vector.broadcast %278 : vector<8x1xf32> to vector<8x64xf32>
    %280 = arith.divf %276, %279 : vector<8x64xf32>
    %281 = vector.broadcast %260 : vector<1x64xf32> to vector<8x64xf32>
    %282 = arith.mulf %281, %280 : vector<8x64xf32>
    %283 = vector.broadcast %262 : vector<1x64xf32> to vector<8x64xf32>
    %284 = arith.addf %282, %283 : vector<8x64xf32>
    %285 = arith.addf %217, %284 : vector<8x64xf32>
    %286 = arith.addf %12, %285 : vector<8x64xf32>
    %c0_175 = arith.constant 0 : index
    %c0_176 = arith.constant 0 : index
    %287 = vector.load %arg14[%c0_175, %c0_176] : memref<1x64xf32, #tpu.memory_space<vmem>>, vector<1x64xf32>
    %c0_177 = arith.constant 0 : index
    %c0_178 = arith.constant 0 : index
    %288 = vector.load %arg15[%c0_177, %c0_178] : memref<1x64xf32, #tpu.memory_space<vmem>>, vector<1x64xf32>
    %cst_179 = arith.constant dense<0.000000e+00> : vector<8xf32>
    %289 = vector.multi_reduction <add>, %286, %cst_179 [1] : vector<8x64xf32> to vector<8xf32>
    %290 = vector.shape_cast %289 : vector<8xf32> to vector<8x1xf32>
    %cst_180 = arith.constant 6.400000e+01 : f32
    %291 = vector.broadcast %cst_180 : f32 to vector<8x1xf32>
    %292 = arith.divf %290, %291 : vector<8x1xf32>
    %293 = vector.broadcast %292 : vector<8x1xf32> to vector<8x64xf32>
    %294 = arith.subf %286, %293 : vector<8x64xf32>
    %295 = arith.mulf %294, %294 : vector<8x64xf32>
    %cst_181 = arith.constant dense<0.000000e+00> : vector<8xf32>
    %296 = vector.multi_reduction <add>, %295, %cst_181 [1] : vector<8x64xf32> to vector<8xf32>
    %297 = vector.shape_cast %296 : vector<8xf32> to vector<8x1xf32>
    %cst_182 = arith.constant 6.300000e+01 : f32
    %298 = vector.broadcast %cst_182 : f32 to vector<8x1xf32>
    %299 = arith.divf %297, %298 : vector<8x1xf32>
    %300 = math.sqrt %299 : vector<8x1xf32>
    %301 = vector.broadcast %292 : vector<8x1xf32> to vector<8x64xf32>
    %302 = arith.subf %286, %301 : vector<8x64xf32>
    %cst_183 = arith.constant 9.99999997E-7 : f32
    %303 = vector.broadcast %cst_183 : f32 to vector<8x1xf32>
    %304 = arith.addf %300, %303 : vector<8x1xf32>
    %305 = vector.broadcast %304 : vector<8x1xf32> to vector<8x64xf32>
    %306 = arith.divf %302, %305 : vector<8x64xf32>
    %307 = vector.broadcast %287 : vector<1x64xf32> to vector<8x64xf32>
    %308 = arith.mulf %307, %306 : vector<8x64xf32>
    %309 = vector.broadcast %288 : vector<1x64xf32> to vector<8x64xf32>
    %310 = arith.addf %308, %309 : vector<8x64xf32>
    %c0_184 = arith.constant 0 : index
    %c0_185 = arith.constant 0 : index
    %311 = vector.load %arg16[%c0_184, %c0_185] : memref<16x64xf32, #tpu.memory_space<vmem>>, vector<8x64xf32>
    tpu.vector_store %arg16[%c0_184, %c0_185], %310 {strides = array<i32>} : memref<16x64xf32, #tpu.memory_space<vmem>>, vector<8x64xf32>,
    %312 = vector.extract_strided_slice %4 {offsets = [8, 0], sizes = [8, 64], strides = [1, 1]} : vector<16x64xf32> to vector<8x64xf32>
    %313 = vector.extract_strided_slice %6 {offsets = [8, 0], sizes = [8, 64], strides = [1, 1]} : vector<16x64xf32> to vector<8x64xf32>
    %314 = vector.extract_strided_slice %8 {offsets = [8, 0], sizes = [8, 64], strides = [1, 1]} : vector<16x64xf32> to vector<8x64xf32>
    %315 = vector.extract_strided_slice %0 {offsets = [8, 0], sizes = [8, 64], strides = [1, 1]} : vector<16x64xf32> to vector<8x64xf32>
    %cst_186 = arith.constant 0.000000e+00 : f32
    %316 = vector.broadcast %cst_186 : f32 to vector<8x64xf32>
    %317 = vector.extract_strided_slice %312 {offsets = [0, 0], sizes = [8, 16], strides = [1, 1]} : vector<8x64xf32> to vector<8x16xf32>
    %318 = vector.extract_strided_slice %313 {offsets = [0, 0], sizes = [8, 16], strides = [1, 1]} : vector<8x64xf32> to vector<8x16xf32>
    %319 = vector.extract_strided_slice %314 {offsets = [0, 0], sizes = [8, 16], strides = [1, 1]} : vector<8x64xf32> to vector<8x16xf32>
    %cst_187 = arith.constant dense<0.000000e+00> : vector<8x8xf32>
    %320 = tpu.matmul %317, %318, %cst_187 {dimension_numbers = #tpu.dot_dimension_numbers<[1], [1], [0], [0], [0, 0, 1, 0], [], []>} : vector<8x16xf32>, vector<8x16xf32>, vector<8x8xf32> -> vector<8x8xf32>
    %cst_188 = arith.constant dense<0xFF800000> : vector<8xf32>
    %321 = vector.multi_reduction <maximumf>, %320, %cst_188 [1] : vector<8x8xf32> to vector<8xf32>
    %322 = vector.shape_cast %321 : vector<8xf32> to vector<8x1xf32>
    %323 = vector.broadcast %322 : vector<8x1xf32> to vector<8x8xf32>
    %324 = arith.subf %320, %323 : vector<8x8xf32>
    %325 = math.exp %324 : vector<8x8xf32>
    %cst_189 = arith.constant dense<0.000000e+00> : vector<8xf32>
    %326 = vector.multi_reduction <add>, %325, %cst_189 [1] : vector<8x8xf32> to vector<8xf32>
    %327 = vector.shape_cast %326 : vector<8xf32> to vector<8x1xf32>
    %328 = vector.broadcast %327 : vector<8x1xf32> to vector<8x8xf32>
    %329 = arith.divf %325, %328 : vector<8x8xf32>
    %c1_190 = arith.constant 1 : index
    %c0_191 = arith.constant 0 : index
    %c0_192 = arith.constant 0 : index
    %c0_193 = arith.constant 0 : index
    %330 = vector.load %arg17[%c1_190, %c0_191, %c0_192, %c0_193] : memref<2x4x8x8xf32, #tpu.memory_space<vmem>>, vector<1x1x8x8xf32>
    %331 = vector.shape_cast %330 : vector<1x1x8x8xf32> to vector<8x8xf32>
    %332 = vector.shape_cast %329 : vector<8x8xf32> to vector<1x1x8x8xf32>
    tpu.vector_store %arg17[%c1_190, %c0_191, %c0_192, %c0_193], %332 {strides = array<i32>} : memref<2x4x8x8xf32, #tpu.memory_space<vmem>>, vector<1x1x8x8xf32>,
    %cst_194 = arith.constant dense<0.000000e+00> : vector<8x16xf32>
    %333 = tpu.matmul %329, %319, %cst_194 {dimension_numbers = #tpu.dot_dimension_numbers<[1], [0], [0], [1], [0, 0, 1, 1], [], []>} : vector<8x8xf32>, vector<8x16xf32>, vector<8x16xf32> -> vector<8x16xf32>
    %c0_195 = arith.constant 0 : index
    %c0_196 = arith.constant 0 : index
    %c0_197 = arith.constant 0 : index
    %334 = vector.load %arg6[%c0_195, %c0_196, %c0_197] : memref<4x16x64xf32, #tpu.memory_space<vmem>>, vector<1x16x64xf32>
    %335 = vector.shape_cast %334 : vector<1x16x64xf32> to vector<16x64xf32>
    %cst_198 = arith.constant dense<0.000000e+00> : vector<8x64xf32>
    %336 = tpu.matmul %333, %335, %cst_198 {dimension_numbers = #tpu.dot_dimension_numbers<[1], [0], [0], [1], [0, 0, 1, 1], [], []>} : vector<8x16xf32>, vector<16x64xf32>, vector<8x64xf32> -> vector<8x64xf32>
    %c0_199 = arith.constant 0 : index
    %c0_200 = arith.constant 0 : index
    %c0_201 = arith.constant 0 : index
    %337 = vector.load %arg7[%c0_199, %c0_200, %c0_201] : memref<4x1x64xf32, #tpu.memory_space<vmem>>, vector<1x1x64xf32>
    %338 = vector.shape_cast %337 : vector<1x1x64xf32> to vector<1x64xf32>
    %339 = vector.broadcast %338 : vector<1x64xf32> to vector<8x64xf32>
    %340 = arith.addf %336, %339 : vector<8x64xf32>
    %c0_202 = arith.constant 0 : index
    %c0_203 = arith.constant 0 : index
    %c0_204 = arith.constant 0 : index
    %341 = vector.load %arg8[%c0_202, %c0_203, %c0_204] : memref<4x64x32xf32, #tpu.memory_space<vmem>>, vector<1x64x32xf32>
    %342 = vector.shape_cast %341 : vector<1x64x32xf32> to vector<64x32xf32>
    %cst_205 = arith.constant dense<0.000000e+00> : vector<8x32xf32>
    %343 = tpu.matmul %340, %342, %cst_205 {dimension_numbers = #tpu.dot_dimension_numbers<[1], [0], [0], [1], [0, 0, 1, 1], [], []>} : vector<8x64xf32>, vector<64x32xf32>, vector<8x32xf32> -> vector<8x32xf32>
    %c0_206 = arith.constant 0 : index
    %c0_207 = arith.constant 0 : index
    %c0_208 = arith.constant 0 : index
    %344 = vector.load %arg9[%c0_206, %c0_207, %c0_208] : memref<4x1x32xf32, #tpu.memory_space<vmem>>, vector<1x1x32xf32>
    %345 = vector.shape_cast %344 : vector<1x1x32xf32> to vector<1x32xf32>
    %346 = vector.broadcast %345 : vector<1x32xf32> to vector<8x32xf32>
    %347 = arith.addf %343, %346 : vector<8x32xf32>
    %cst_209 = arith.constant 0.000000e+00 : f32
    %348 = vector.broadcast %cst_209 : f32 to vector<8x32xf32>
    %349 = arith.maximumf %347, %348 : vector<8x32xf32>
    %c0_210 = arith.constant 0 : index
    %c0_211 = arith.constant 0 : index
    %c0_212 = arith.constant 0 : index
    %350 = vector.load %arg10[%c0_210, %c0_211, %c0_212] : memref<4x32x64xf32, #tpu.memory_space<vmem>>, vector<1x32x64xf32>
    %351 = vector.shape_cast %350 : vector<1x32x64xf32> to vector<32x64xf32>
    %cst_213 = arith.constant dense<0.000000e+00> : vector<8x64xf32>
    %352 = tpu.matmul %349, %351, %cst_213 {dimension_numbers = #tpu.dot_dimension_numbers<[1], [0], [0], [1], [0, 0, 1, 1], [], []>} : vector<8x32xf32>, vector<32x64xf32>, vector<8x64xf32> -> vector<8x64xf32>
    %c0_214 = arith.constant 0 : index
    %c0_215 = arith.constant 0 : index
    %c0_216 = arith.constant 0 : index
    %353 = vector.load %arg11[%c0_214, %c0_215, %c0_216] : memref<4x1x64xf32, #tpu.memory_space<vmem>>, vector<1x1x64xf32>
    %354 = vector.shape_cast %353 : vector<1x1x64xf32> to vector<1x64xf32>
    %355 = vector.broadcast %354 : vector<1x64xf32> to vector<8x64xf32>
    %356 = arith.addf %352, %355 : vector<8x64xf32>
    %357 = arith.addf %340, %356 : vector<8x64xf32>
    %c0_217 = arith.constant 0 : index
    %c0_218 = arith.constant 0 : index
    %c0_219 = arith.constant 0 : index
    %358 = vector.load %arg12[%c0_217, %c0_218, %c0_219] : memref<4x1x64xf32, #tpu.memory_space<vmem>>, vector<1x1x64xf32>
    %359 = vector.shape_cast %358 : vector<1x1x64xf32> to vector<1x64xf32>
    %c0_220 = arith.constant 0 : index
    %c0_221 = arith.constant 0 : index
    %c0_222 = arith.constant 0 : index
    %360 = vector.load %arg13[%c0_220, %c0_221, %c0_222] : memref<4x1x64xf32, #tpu.memory_space<vmem>>, vector<1x1x64xf32>
    %361 = vector.shape_cast %360 : vector<1x1x64xf32> to vector<1x64xf32>
    %cst_223 = arith.constant dense<0.000000e+00> : vector<8xf32>
    %362 = vector.multi_reduction <add>, %357, %cst_223 [1] : vector<8x64xf32> to vector<8xf32>
    %363 = vector.shape_cast %362 : vector<8xf32> to vector<8x1xf32>
    %cst_224 = arith.constant 6.400000e+01 : f32
    %364 = vector.broadcast %cst_224 : f32 to vector<8x1xf32>
    %365 = arith.divf %363, %364 : vector<8x1xf32>
    %366 = vector.broadcast %365 : vector<8x1xf32> to vector<8x64xf32>
    %367 = arith.subf %357, %366 : vector<8x64xf32>
    %368 = arith.mulf %367, %367 : vector<8x64xf32>
    %cst_225 = arith.constant dense<0.000000e+00> : vector<8xf32>
    %369 = vector.multi_reduction <add>, %368, %cst_225 [1] : vector<8x64xf32> to vector<8xf32>
    %370 = vector.shape_cast %369 : vector<8xf32> to vector<8x1xf32>
    %cst_226 = arith.constant 6.300000e+01 : f32
    %371 = vector.broadcast %cst_226 : f32 to vector<8x1xf32>
    %372 = arith.divf %370, %371 : vector<8x1xf32>
    %373 = math.sqrt %372 : vector<8x1xf32>
    %374 = vector.broadcast %365 : vector<8x1xf32> to vector<8x64xf32>
    %375 = arith.subf %357, %374 : vector<8x64xf32>
    %cst_227 = arith.constant 9.99999997E-7 : f32
    %376 = vector.broadcast %cst_227 : f32 to vector<8x1xf32>
    %377 = arith.addf %373, %376 : vector<8x1xf32>
    %378 = vector.broadcast %377 : vector<8x1xf32> to vector<8x64xf32>
    %379 = arith.divf %375, %378 : vector<8x64xf32>
    %380 = vector.broadcast %359 : vector<1x64xf32> to vector<8x64xf32>
    %381 = arith.mulf %380, %379 : vector<8x64xf32>
    %382 = vector.broadcast %361 : vector<1x64xf32> to vector<8x64xf32>
    %383 = arith.addf %381, %382 : vector<8x64xf32>
    %384 = arith.addf %316, %383 : vector<8x64xf32>
    %385 = vector.extract_strided_slice %312 {offsets = [0, 16], sizes = [8, 16], strides = [1, 1]} : vector<8x64xf32> to vector<8x16xf32>
    %386 = vector.extract_strided_slice %313 {offsets = [0, 16], sizes = [8, 16], strides = [1, 1]} : vector<8x64xf32> to vector<8x16xf32>
    %387 = vector.extract_strided_slice %314 {offsets = [0, 16], sizes = [8, 16], strides = [1, 1]} : vector<8x64xf32> to vector<8x16xf32>
    %cst_228 = arith.constant dense<0.000000e+00> : vector<8x8xf32>
    %388 = tpu.matmul %385, %386, %cst_228 {dimension_numbers = #tpu.dot_dimension_numbers<[1], [1], [0], [0], [0, 0, 1, 0], [], []>} : vector<8x16xf32>, vector<8x16xf32>, vector<8x8xf32> -> vector<8x8xf32>
    %cst_229 = arith.constant dense<0xFF800000> : vector<8xf32>
    %389 = vector.multi_reduction <maximumf>, %388, %cst_229 [1] : vector<8x8xf32> to vector<8xf32>
    %390 = vector.shape_cast %389 : vector<8xf32> to vector<8x1xf32>
    %391 = vector.broadcast %390 : vector<8x1xf32> to vector<8x8xf32>
    %392 = arith.subf %388, %391 : vector<8x8xf32>
    %393 = math.exp %392 : vector<8x8xf32>
    %cst_230 = arith.constant dense<0.000000e+00> : vector<8xf32>
    %394 = vector.multi_reduction <add>, %393, %cst_230 [1] : vector<8x8xf32> to vector<8xf32>
    %395 = vector.shape_cast %394 : vector<8xf32> to vector<8x1xf32>
    %396 = vector.broadcast %395 : vector<8x1xf32> to vector<8x8xf32>
    %397 = arith.divf %393, %396 : vector<8x8xf32>
    %c1_231 = arith.constant 1 : index
    %c1_232 = arith.constant 1 : index
    %c0_233 = arith.constant 0 : index
    %c0_234 = arith.constant 0 : index
    %398 = vector.load %arg17[%c1_231, %c1_232, %c0_233, %c0_234] : memref<2x4x8x8xf32, #tpu.memory_space<vmem>>, vector<1x1x8x8xf32>
    %399 = vector.shape_cast %398 : vector<1x1x8x8xf32> to vector<8x8xf32>
    %400 = vector.shape_cast %397 : vector<8x8xf32> to vector<1x1x8x8xf32>
    tpu.vector_store %arg17[%c1_231, %c1_232, %c0_233, %c0_234], %400 {strides = array<i32>} : memref<2x4x8x8xf32, #tpu.memory_space<vmem>>, vector<1x1x8x8xf32>,
    %cst_235 = arith.constant dense<0.000000e+00> : vector<8x16xf32>
    %401 = tpu.matmul %397, %387, %cst_235 {dimension_numbers = #tpu.dot_dimension_numbers<[1], [0], [0], [1], [0, 0, 1, 1], [], []>} : vector<8x8xf32>, vector<8x16xf32>, vector<8x16xf32> -> vector<8x16xf32>
    %c1_236 = arith.constant 1 : index
    %c0_237 = arith.constant 0 : index
    %c0_238 = arith.constant 0 : index
    %402 = vector.load %arg6[%c1_236, %c0_237, %c0_238] : memref<4x16x64xf32, #tpu.memory_space<vmem>>, vector<1x16x64xf32>
    %403 = vector.shape_cast %402 : vector<1x16x64xf32> to vector<16x64xf32>
    %cst_239 = arith.constant dense<0.000000e+00> : vector<8x64xf32>
    %404 = tpu.matmul %401, %403, %cst_239 {dimension_numbers = #tpu.dot_dimension_numbers<[1], [0], [0], [1], [0, 0, 1, 1], [], []>} : vector<8x16xf32>, vector<16x64xf32>, vector<8x64xf32> -> vector<8x64xf32>
    %c1_240 = arith.constant 1 : index
    %c0_241 = arith.constant 0 : index
    %c0_242 = arith.constant 0 : index
    %405 = vector.load %arg7[%c1_240, %c0_241, %c0_242] : memref<4x1x64xf32, #tpu.memory_space<vmem>>, vector<1x1x64xf32>
    %406 = vector.shape_cast %405 : vector<1x1x64xf32> to vector<1x64xf32>
    %407 = vector.broadcast %406 : vector<1x64xf32> to vector<8x64xf32>
    %408 = arith.addf %404, %407 : vector<8x64xf32>
    %c1_243 = arith.constant 1 : index
    %c0_244 = arith.constant 0 : index
    %c0_245 = arith.constant 0 : index
    %409 = vector.load %arg8[%c1_243, %c0_244, %c0_245] : memref<4x64x32xf32, #tpu.memory_space<vmem>>, vector<1x64x32xf32>
    %410 = vector.shape_cast %409 : vector<1x64x32xf32> to vector<64x32xf32>
    %cst_246 = arith.constant dense<0.000000e+00> : vector<8x32xf32>
    %411 = tpu.matmul %408, %410, %cst_246 {dimension_numbers = #tpu.dot_dimension_numbers<[1], [0], [0], [1], [0, 0, 1, 1], [], []>} : vector<8x64xf32>, vector<64x32xf32>, vector<8x32xf32> -> vector<8x32xf32>
    %c1_247 = arith.constant 1 : index
    %c0_248 = arith.constant 0 : index
    %c0_249 = arith.constant 0 : index
    %412 = vector.load %arg9[%c1_247, %c0_248, %c0_249] : memref<4x1x32xf32, #tpu.memory_space<vmem>>, vector<1x1x32xf32>
    %413 = vector.shape_cast %412 : vector<1x1x32xf32> to vector<1x32xf32>
    %414 = vector.broadcast %413 : vector<1x32xf32> to vector<8x32xf32>
    %415 = arith.addf %411, %414 : vector<8x32xf32>
    %cst_250 = arith.constant 0.000000e+00 : f32
    %416 = vector.broadcast %cst_250 : f32 to vector<8x32xf32>
    %417 = arith.maximumf %415, %416 : vector<8x32xf32>
    %c1_251 = arith.constant 1 : index
    %c0_252 = arith.constant 0 : index
    %c0_253 = arith.constant 0 : index
    %418 = vector.load %arg10[%c1_251, %c0_252, %c0_253] : memref<4x32x64xf32, #tpu.memory_space<vmem>>, vector<1x32x64xf32>
    %419 = vector.shape_cast %418 : vector<1x32x64xf32> to vector<32x64xf32>
    %cst_254 = arith.constant dense<0.000000e+00> : vector<8x64xf32>
    %420 = tpu.matmul %417, %419, %cst_254 {dimension_numbers = #tpu.dot_dimension_numbers<[1], [0], [0], [1], [0, 0, 1, 1], [], []>} : vector<8x32xf32>, vector<32x64xf32>, vector<8x64xf32> -> vector<8x64xf32>
    %c1_255 = arith.constant 1 : index
    %c0_256 = arith.constant 0 : index
    %c0_257 = arith.constant 0 : index
    %421 = vector.load %arg11[%c1_255, %c0_256, %c0_257] : memref<4x1x64xf32, #tpu.memory_space<vmem>>, vector<1x1x64xf32>
    %422 = vector.shape_cast %421 : vector<1x1x64xf32> to vector<1x64xf32>
    %423 = vector.broadcast %422 : vector<1x64xf32> to vector<8x64xf32>
    %424 = arith.addf %420, %423 : vector<8x64xf32>
    %425 = arith.addf %408, %424 : vector<8x64xf32>
    %c1_258 = arith.constant 1 : index
    %c0_259 = arith.constant 0 : index
    %c0_260 = arith.constant 0 : index
    %426 = vector.load %arg12[%c1_258, %c0_259, %c0_260] : memref<4x1x64xf32, #tpu.memory_space<vmem>>, vector<1x1x64xf32>
    %427 = vector.shape_cast %426 : vector<1x1x64xf32> to vector<1x64xf32>
    %c1_261 = arith.constant 1 : index
    %c0_262 = arith.constant 0 : index
    %c0_263 = arith.constant 0 : index
    %428 = vector.load %arg13[%c1_261, %c0_262, %c0_263] : memref<4x1x64xf32, #tpu.memory_space<vmem>>, vector<1x1x64xf32>
    %429 = vector.shape_cast %428 : vector<1x1x64xf32> to vector<1x64xf32>
    %cst_264 = arith.constant dense<0.000000e+00> : vector<8xf32>
    %430 = vector.multi_reduction <add>, %425, %cst_264 [1] : vector<8x64xf32> to vector<8xf32>
    %431 = vector.shape_cast %430 : vector<8xf32> to vector<8x1xf32>
    %cst_265 = arith.constant 6.400000e+01 : f32
    %432 = vector.broadcast %cst_265 : f32 to vector<8x1xf32>
    %433 = arith.divf %431, %432 : vector<8x1xf32>
    %434 = vector.broadcast %433 : vector<8x1xf32> to vector<8x64xf32>
    %435 = arith.subf %425, %434 : vector<8x64xf32>
    %436 = arith.mulf %435, %435 : vector<8x64xf32>
    %cst_266 = arith.constant dense<0.000000e+00> : vector<8xf32>
    %437 = vector.multi_reduction <add>, %436, %cst_266 [1] : vector<8x64xf32> to vector<8xf32>
    %438 = vector.shape_cast %437 : vector<8xf32> to vector<8x1xf32>
    %cst_267 = arith.constant 6.300000e+01 : f32
    %439 = vector.broadcast %cst_267 : f32 to vector<8x1xf32>
    %440 = arith.divf %438, %439 : vector<8x1xf32>
    %441 = math.sqrt %440 : vector<8x1xf32>
    %442 = vector.broadcast %433 : vector<8x1xf32> to vector<8x64xf32>
    %443 = arith.subf %425, %442 : vector<8x64xf32>
    %cst_268 = arith.constant 9.99999997E-7 : f32
    %444 = vector.broadcast %cst_268 : f32 to vector<8x1xf32>
    %445 = arith.addf %441, %444 : vector<8x1xf32>
    %446 = vector.broadcast %445 : vector<8x1xf32> to vector<8x64xf32>
    %447 = arith.divf %443, %446 : vector<8x64xf32>
    %448 = vector.broadcast %427 : vector<1x64xf32> to vector<8x64xf32>
    %449 = arith.mulf %448, %447 : vector<8x64xf32>
    %450 = vector.broadcast %429 : vector<1x64xf32> to vector<8x64xf32>
    %451 = arith.addf %449, %450 : vector<8x64xf32>
    %452 = arith.addf %384, %451 : vector<8x64xf32>
    %453 = vector.extract_strided_slice %312 {offsets = [0, 32], sizes = [8, 16], strides = [1, 1]} : vector<8x64xf32> to vector<8x16xf32>
    %454 = vector.extract_strided_slice %313 {offsets = [0, 32], sizes = [8, 16], strides = [1, 1]} : vector<8x64xf32> to vector<8x16xf32>
    %455 = vector.extract_strided_slice %314 {offsets = [0, 32], sizes = [8, 16], strides = [1, 1]} : vector<8x64xf32> to vector<8x16xf32>
    %cst_269 = arith.constant dense<0.000000e+00> : vector<8x8xf32>
    %456 = tpu.matmul %453, %454, %cst_269 {dimension_numbers = #tpu.dot_dimension_numbers<[1], [1], [0], [0], [0, 0, 1, 0], [], []>} : vector<8x16xf32>, vector<8x16xf32>, vector<8x8xf32> -> vector<8x8xf32>
    %cst_270 = arith.constant dense<0xFF800000> : vector<8xf32>
    %457 = vector.multi_reduction <maximumf>, %456, %cst_270 [1] : vector<8x8xf32> to vector<8xf32>
    %458 = vector.shape_cast %457 : vector<8xf32> to vector<8x1xf32>
    %459 = vector.broadcast %458 : vector<8x1xf32> to vector<8x8xf32>
    %460 = arith.subf %456, %459 : vector<8x8xf32>
    %461 = math.exp %460 : vector<8x8xf32>
    %cst_271 = arith.constant dense<0.000000e+00> : vector<8xf32>
    %462 = vector.multi_reduction <add>, %461, %cst_271 [1] : vector<8x8xf32> to vector<8xf32>
    %463 = vector.shape_cast %462 : vector<8xf32> to vector<8x1xf32>
    %464 = vector.broadcast %463 : vector<8x1xf32> to vector<8x8xf32>
    %465 = arith.divf %461, %464 : vector<8x8xf32>
    %c1_272 = arith.constant 1 : index
    %c2_273 = arith.constant 2 : index
    %c0_274 = arith.constant 0 : index
    %c0_275 = arith.constant 0 : index
    %466 = vector.load %arg17[%c1_272, %c2_273, %c0_274, %c0_275] : memref<2x4x8x8xf32, #tpu.memory_space<vmem>>, vector<1x1x8x8xf32>
    %467 = vector.shape_cast %466 : vector<1x1x8x8xf32> to vector<8x8xf32>
    %468 = vector.shape_cast %465 : vector<8x8xf32> to vector<1x1x8x8xf32>
    tpu.vector_store %arg17[%c1_272, %c2_273, %c0_274, %c0_275], %468 {strides = array<i32>} : memref<2x4x8x8xf32, #tpu.memory_space<vmem>>, vector<1x1x8x8xf32>,
    %cst_276 = arith.constant dense<0.000000e+00> : vector<8x16xf32>
    %469 = tpu.matmul %465, %455, %cst_276 {dimension_numbers = #tpu.dot_dimension_numbers<[1], [0], [0], [1], [0, 0, 1, 1], [], []>} : vector<8x8xf32>, vector<8x16xf32>, vector<8x16xf32> -> vector<8x16xf32>
    %c2_277 = arith.constant 2 : index
    %c0_278 = arith.constant 0 : index
    %c0_279 = arith.constant 0 : index
    %470 = vector.load %arg6[%c2_277, %c0_278, %c0_279] : memref<4x16x64xf32, #tpu.memory_space<vmem>>, vector<1x16x64xf32>
    %471 = vector.shape_cast %470 : vector<1x16x64xf32> to vector<16x64xf32>
    %cst_280 = arith.constant dense<0.000000e+00> : vector<8x64xf32>
    %472 = tpu.matmul %469, %471, %cst_280 {dimension_numbers = #tpu.dot_dimension_numbers<[1], [0], [0], [1], [0, 0, 1, 1], [], []>} : vector<8x16xf32>, vector<16x64xf32>, vector<8x64xf32> -> vector<8x64xf32>
    %c2_281 = arith.constant 2 : index
    %c0_282 = arith.constant 0 : index
    %c0_283 = arith.constant 0 : index
    %473 = vector.load %arg7[%c2_281, %c0_282, %c0_283] : memref<4x1x64xf32, #tpu.memory_space<vmem>>, vector<1x1x64xf32>
    %474 = vector.shape_cast %473 : vector<1x1x64xf32> to vector<1x64xf32>
    %475 = vector.broadcast %474 : vector<1x64xf32> to vector<8x64xf32>
    %476 = arith.addf %472, %475 : vector<8x64xf32>
    %c2_284 = arith.constant 2 : index
    %c0_285 = arith.constant 0 : index
    %c0_286 = arith.constant 0 : index
    %477 = vector.load %arg8[%c2_284, %c0_285, %c0_286] : memref<4x64x32xf32, #tpu.memory_space<vmem>>, vector<1x64x32xf32>
    %478 = vector.shape_cast %477 : vector<1x64x32xf32> to vector<64x32xf32>
    %cst_287 = arith.constant dense<0.000000e+00> : vector<8x32xf32>
    %479 = tpu.matmul %476, %478, %cst_287 {dimension_numbers = #tpu.dot_dimension_numbers<[1], [0], [0], [1], [0, 0, 1, 1], [], []>} : vector<8x64xf32>, vector<64x32xf32>, vector<8x32xf32> -> vector<8x32xf32>
    %c2_288 = arith.constant 2 : index
    %c0_289 = arith.constant 0 : index
    %c0_290 = arith.constant 0 : index
    %480 = vector.load %arg9[%c2_288, %c0_289, %c0_290] : memref<4x1x32xf32, #tpu.memory_space<vmem>>, vector<1x1x32xf32>
    %481 = vector.shape_cast %480 : vector<1x1x32xf32> to vector<1x32xf32>
    %482 = vector.broadcast %481 : vector<1x32xf32> to vector<8x32xf32>
    %483 = arith.addf %479, %482 : vector<8x32xf32>
    %cst_291 = arith.constant 0.000000e+00 : f32
    %484 = vector.broadcast %cst_291 : f32 to vector<8x32xf32>
    %485 = arith.maximumf %483, %484 : vector<8x32xf32>
    %c2_292 = arith.constant 2 : index
    %c0_293 = arith.constant 0 : index
    %c0_294 = arith.constant 0 : index
    %486 = vector.load %arg10[%c2_292, %c0_293, %c0_294] : memref<4x32x64xf32, #tpu.memory_space<vmem>>, vector<1x32x64xf32>
    %487 = vector.shape_cast %486 : vector<1x32x64xf32> to vector<32x64xf32>
    %cst_295 = arith.constant dense<0.000000e+00> : vector<8x64xf32>
    %488 = tpu.matmul %485, %487, %cst_295 {dimension_numbers = #tpu.dot_dimension_numbers<[1], [0], [0], [1], [0, 0, 1, 1], [], []>} : vector<8x32xf32>, vector<32x64xf32>, vector<8x64xf32> -> vector<8x64xf32>
    %c2_296 = arith.constant 2 : index
    %c0_297 = arith.constant 0 : index
    %c0_298 = arith.constant 0 : index
    %489 = vector.load %arg11[%c2_296, %c0_297, %c0_298] : memref<4x1x64xf32, #tpu.memory_space<vmem>>, vector<1x1x64xf32>
    %490 = vector.shape_cast %489 : vector<1x1x64xf32> to vector<1x64xf32>
    %491 = vector.broadcast %490 : vector<1x64xf32> to vector<8x64xf32>
    %492 = arith.addf %488, %491 : vector<8x64xf32>
    %493 = arith.addf %476, %492 : vector<8x64xf32>
    %c2_299 = arith.constant 2 : index
    %c0_300 = arith.constant 0 : index
    %c0_301 = arith.constant 0 : index
    %494 = vector.load %arg12[%c2_299, %c0_300, %c0_301] : memref<4x1x64xf32, #tpu.memory_space<vmem>>, vector<1x1x64xf32>
    %495 = vector.shape_cast %494 : vector<1x1x64xf32> to vector<1x64xf32>
    %c2_302 = arith.constant 2 : index
    %c0_303 = arith.constant 0 : index
    %c0_304 = arith.constant 0 : index
    %496 = vector.load %arg13[%c2_302, %c0_303, %c0_304] : memref<4x1x64xf32, #tpu.memory_space<vmem>>, vector<1x1x64xf32>
    %497 = vector.shape_cast %496 : vector<1x1x64xf32> to vector<1x64xf32>
    %cst_305 = arith.constant dense<0.000000e+00> : vector<8xf32>
    %498 = vector.multi_reduction <add>, %493, %cst_305 [1] : vector<8x64xf32> to vector<8xf32>
    %499 = vector.shape_cast %498 : vector<8xf32> to vector<8x1xf32>
    %cst_306 = arith.constant 6.400000e+01 : f32
    %500 = vector.broadcast %cst_306 : f32 to vector<8x1xf32>
    %501 = arith.divf %499, %500 : vector<8x1xf32>
    %502 = vector.broadcast %501 : vector<8x1xf32> to vector<8x64xf32>
    %503 = arith.subf %493, %502 : vector<8x64xf32>
    %504 = arith.mulf %503, %503 : vector<8x64xf32>
    %cst_307 = arith.constant dense<0.000000e+00> : vector<8xf32>
    %505 = vector.multi_reduction <add>, %504, %cst_307 [1] : vector<8x64xf32> to vector<8xf32>
    %506 = vector.shape_cast %505 : vector<8xf32> to vector<8x1xf32>
    %cst_308 = arith.constant 6.300000e+01 : f32
    %507 = vector.broadcast %cst_308 : f32 to vector<8x1xf32>
    %508 = arith.divf %506, %507 : vector<8x1xf32>
    %509 = math.sqrt %508 : vector<8x1xf32>
    %510 = vector.broadcast %501 : vector<8x1xf32> to vector<8x64xf32>
    %511 = arith.subf %493, %510 : vector<8x64xf32>
    %cst_309 = arith.constant 9.99999997E-7 : f32
    %512 = vector.broadcast %cst_309 : f32 to vector<8x1xf32>
    %513 = arith.addf %509, %512 : vector<8x1xf32>
    %514 = vector.broadcast %513 : vector<8x1xf32> to vector<8x64xf32>
    %515 = arith.divf %511, %514 : vector<8x64xf32>
    %516 = vector.broadcast %495 : vector<1x64xf32> to vector<8x64xf32>
    %517 = arith.mulf %516, %515 : vector<8x64xf32>
    %518 = vector.broadcast %497 : vector<1x64xf32> to vector<8x64xf32>
    %519 = arith.addf %517, %518 : vector<8x64xf32>
    %520 = arith.addf %452, %519 : vector<8x64xf32>
    %521 = vector.extract_strided_slice %312 {offsets = [0, 48], sizes = [8, 16], strides = [1, 1]} : vector<8x64xf32> to vector<8x16xf32>
    %522 = vector.extract_strided_slice %313 {offsets = [0, 48], sizes = [8, 16], strides = [1, 1]} : vector<8x64xf32> to vector<8x16xf32>
    %523 = vector.extract_strided_slice %314 {offsets = [0, 48], sizes = [8, 16], strides = [1, 1]} : vector<8x64xf32> to vector<8x16xf32>
    %cst_310 = arith.constant dense<0.000000e+00> : vector<8x8xf32>
    %524 = tpu.matmul %521, %522, %cst_310 {dimension_numbers = #tpu.dot_dimension_numbers<[1], [1], [0], [0], [0, 0, 1, 0], [], []>} : vector<8x16xf32>, vector<8x16xf32>, vector<8x8xf32> -> vector<8x8xf32>
    %cst_311 = arith.constant dense<0xFF800000> : vector<8xf32>
    %525 = vector.multi_reduction <maximumf>, %524, %cst_311 [1] : vector<8x8xf32> to vector<8xf32>
    %526 = vector.shape_cast %525 : vector<8xf32> to vector<8x1xf32>
    %527 = vector.broadcast %526 : vector<8x1xf32> to vector<8x8xf32>
    %528 = arith.subf %524, %527 : vector<8x8xf32>
    %529 = math.exp %528 : vector<8x8xf32>
    %cst_312 = arith.constant dense<0.000000e+00> : vector<8xf32>
    %530 = vector.multi_reduction <add>, %529, %cst_312 [1] : vector<8x8xf32> to vector<8xf32>
    %531 = vector.shape_cast %530 : vector<8xf32> to vector<8x1xf32>
    %532 = vector.broadcast %531 : vector<8x1xf32> to vector<8x8xf32>
    %533 = arith.divf %529, %532 : vector<8x8xf32>
    %c1_313 = arith.constant 1 : index
    %c3_314 = arith.constant 3 : index
    %c0_315 = arith.constant 0 : index
    %c0_316 = arith.constant 0 : index
    %534 = vector.load %arg17[%c1_313, %c3_314, %c0_315, %c0_316] : memref<2x4x8x8xf32, #tpu.memory_space<vmem>>, vector<1x1x8x8xf32>
    %535 = vector.shape_cast %534 : vector<1x1x8x8xf32> to vector<8x8xf32>
    %536 = vector.shape_cast %533 : vector<8x8xf32> to vector<1x1x8x8xf32>
    tpu.vector_store %arg17[%c1_313, %c3_314, %c0_315, %c0_316], %536 {strides = array<i32>} : memref<2x4x8x8xf32, #tpu.memory_space<vmem>>, vector<1x1x8x8xf32>,
    %cst_317 = arith.constant dense<0.000000e+00> : vector<8x16xf32>
    %537 = tpu.matmul %533, %523, %cst_317 {dimension_numbers = #tpu.dot_dimension_numbers<[1], [0], [0], [1], [0, 0, 1, 1], [], []>} : vector<8x8xf32>, vector<8x16xf32>, vector<8x16xf32> -> vector<8x16xf32>
    %c3_318 = arith.constant 3 : index
    %c0_319 = arith.constant 0 : index
    %c0_320 = arith.constant 0 : index
    %538 = vector.load %arg6[%c3_318, %c0_319, %c0_320] : memref<4x16x64xf32, #tpu.memory_space<vmem>>, vector<1x16x64xf32>
    %539 = vector.shape_cast %538 : vector<1x16x64xf32> to vector<16x64xf32>
    %cst_321 = arith.constant dense<0.000000e+00> : vector<8x64xf32>
    %540 = tpu.matmul %537, %539, %cst_321 {dimension_numbers = #tpu.dot_dimension_numbers<[1], [0], [0], [1], [0, 0, 1, 1], [], []>} : vector<8x16xf32>, vector<16x64xf32>, vector<8x64xf32> -> vector<8x64xf32>
    %c3_322 = arith.constant 3 : index
    %c0_323 = arith.constant 0 : index
    %c0_324 = arith.constant 0 : index
    %541 = vector.load %arg7[%c3_322, %c0_323, %c0_324] : memref<4x1x64xf32, #tpu.memory_space<vmem>>, vector<1x1x64xf32>
    %542 = vector.shape_cast %541 : vector<1x1x64xf32> to vector<1x64xf32>
    %543 = vector.broadcast %542 : vector<1x64xf32> to vector<8x64xf32>
    %544 = arith.addf %540, %543 : vector<8x64xf32>
    %c3_325 = arith.constant 3 : index
    %c0_326 = arith.constant 0 : index
    %c0_327 = arith.constant 0 : index
    %545 = vector.load %arg8[%c3_325, %c0_326, %c0_327] : memref<4x64x32xf32, #tpu.memory_space<vmem>>, vector<1x64x32xf32>
    %546 = vector.shape_cast %545 : vector<1x64x32xf32> to vector<64x32xf32>
    %cst_328 = arith.constant dense<0.000000e+00> : vector<8x32xf32>
    %547 = tpu.matmul %544, %546, %cst_328 {dimension_numbers = #tpu.dot_dimension_numbers<[1], [0], [0], [1], [0, 0, 1, 1], [], []>} : vector<8x64xf32>, vector<64x32xf32>, vector<8x32xf32> -> vector<8x32xf32>
    %c3_329 = arith.constant 3 : index
    %c0_330 = arith.constant 0 : index
    %c0_331 = arith.constant 0 : index
    %548 = vector.load %arg9[%c3_329, %c0_330, %c0_331] : memref<4x1x32xf32, #tpu.memory_space<vmem>>, vector<1x1x32xf32>
    %549 = vector.shape_cast %548 : vector<1x1x32xf32> to vector<1x32xf32>
    %550 = vector.broadcast %549 : vector<1x32xf32> to vector<8x32xf32>
    %551 = arith.addf %547, %550 : vector<8x32xf32>
    %cst_332 = arith.constant 0.000000e+00 : f32
    %552 = vector.broadcast %cst_332 : f32 to vector<8x32xf32>
    %553 = arith.maximumf %551, %552 : vector<8x32xf32>
    %c3_333 = arith.constant 3 : index
    %c0_334 = arith.constant 0 : index
    %c0_335 = arith.constant 0 : index
    %554 = vector.load %arg10[%c3_333, %c0_334, %c0_335] : memref<4x32x64xf32, #tpu.memory_space<vmem>>, vector<1x32x64xf32>
    %555 = vector.shape_cast %554 : vector<1x32x64xf32> to vector<32x64xf32>
    %cst_336 = arith.constant dense<0.000000e+00> : vector<8x64xf32>
    %556 = tpu.matmul %553, %555, %cst_336 {dimension_numbers = #tpu.dot_dimension_numbers<[1], [0], [0], [1], [0, 0, 1, 1], [], []>} : vector<8x32xf32>, vector<32x64xf32>, vector<8x64xf32> -> vector<8x64xf32>
    %c3_337 = arith.constant 3 : index
    %c0_338 = arith.constant 0 : index
    %c0_339 = arith.constant 0 : index
    %557 = vector.load %arg11[%c3_337, %c0_338, %c0_339] : memref<4x1x64xf32, #tpu.memory_space<vmem>>, vector<1x1x64xf32>
    %558 = vector.shape_cast %557 : vector<1x1x64xf32> to vector<1x64xf32>
    %559 = vector.broadcast %558 : vector<1x64xf32> to vector<8x64xf32>
    %560 = arith.addf %556, %559 : vector<8x64xf32>
    %561 = arith.addf %544, %560 : vector<8x64xf32>
    %c3_340 = arith.constant 3 : index
    %c0_341 = arith.constant 0 : index
    %c0_342 = arith.constant 0 : index
    %562 = vector.load %arg12[%c3_340, %c0_341, %c0_342] : memref<4x1x64xf32, #tpu.memory_space<vmem>>, vector<1x1x64xf32>
    %563 = vector.shape_cast %562 : vector<1x1x64xf32> to vector<1x64xf32>
    %c3_343 = arith.constant 3 : index
    %c0_344 = arith.constant 0 : index
    %c0_345 = arith.constant 0 : index
    %564 = vector.load %arg13[%c3_343, %c0_344, %c0_345] : memref<4x1x64xf32, #tpu.memory_space<vmem>>, vector<1x1x64xf32>
    %565 = vector.shape_cast %564 : vector<1x1x64xf32> to vector<1x64xf32>
    %cst_346 = arith.constant dense<0.000000e+00> : vector<8xf32>
    %566 = vector.multi_reduction <add>, %561, %cst_346 [1] : vector<8x64xf32> to vector<8xf32>
    %567 = vector.shape_cast %566 : vector<8xf32> to vector<8x1xf32>
    %cst_347 = arith.constant 6.400000e+01 : f32
    %568 = vector.broadcast %cst_347 : f32 to vector<8x1xf32>
    %569 = arith.divf %567, %568 : vector<8x1xf32>
    %570 = vector.broadcast %569 : vector<8x1xf32> to vector<8x64xf32>
    %571 = arith.subf %561, %570 : vector<8x64xf32>
    %572 = arith.mulf %571, %571 : vector<8x64xf32>
    %cst_348 = arith.constant dense<0.000000e+00> : vector<8xf32>
    %573 = vector.multi_reduction <add>, %572, %cst_348 [1] : vector<8x64xf32> to vector<8xf32>
    %574 = vector.shape_cast %573 : vector<8xf32> to vector<8x1xf32>
    %cst_349 = arith.constant 6.300000e+01 : f32
    %575 = vector.broadcast %cst_349 : f32 to vector<8x1xf32>
    %576 = arith.divf %574, %575 : vector<8x1xf32>
    %577 = math.sqrt %576 : vector<8x1xf32>
    %578 = vector.broadcast %569 : vector<8x1xf32> to vector<8x64xf32>
    %579 = arith.subf %561, %578 : vector<8x64xf32>
    %cst_350 = arith.constant 9.99999997E-7 : f32
    %580 = vector.broadcast %cst_350 : f32 to vector<8x1xf32>
    %581 = arith.addf %577, %580 : vector<8x1xf32>
    %582 = vector.broadcast %581 : vector<8x1xf32> to vector<8x64xf32>
    %583 = arith.divf %579, %582 : vector<8x64xf32>
    %584 = vector.broadcast %563 : vector<1x64xf32> to vector<8x64xf32>
    %585 = arith.mulf %584, %583 : vector<8x64xf32>
    %586 = vector.broadcast %565 : vector<1x64xf32> to vector<8x64xf32>
    %587 = arith.addf %585, %586 : vector<8x64xf32>
    %588 = arith.addf %520, %587 : vector<8x64xf32>
    %589 = arith.addf %315, %588 : vector<8x64xf32>
    %c0_351 = arith.constant 0 : index
    %c0_352 = arith.constant 0 : index
    %590 = vector.load %arg14[%c0_351, %c0_352] : memref<1x64xf32, #tpu.memory_space<vmem>>, vector<1x64xf32>
    %c0_353 = arith.constant 0 : index
    %c0_354 = arith.constant 0 : index
    %591 = vector.load %arg15[%c0_353, %c0_354] : memref<1x64xf32, #tpu.memory_space<vmem>>, vector<1x64xf32>
    %cst_355 = arith.constant dense<0.000000e+00> : vector<8xf32>
    %592 = vector.multi_reduction <add>, %589, %cst_355 [1] : vector<8x64xf32> to vector<8xf32>
    %593 = vector.shape_cast %592 : vector<8xf32> to vector<8x1xf32>
    %cst_356 = arith.constant 6.400000e+01 : f32
    %594 = vector.broadcast %cst_356 : f32 to vector<8x1xf32>
    %595 = arith.divf %593, %594 : vector<8x1xf32>
    %596 = vector.broadcast %595 : vector<8x1xf32> to vector<8x64xf32>
    %597 = arith.subf %589, %596 : vector<8x64xf32>
    %598 = arith.mulf %597, %597 : vector<8x64xf32>
    %cst_357 = arith.constant dense<0.000000e+00> : vector<8xf32>
    %599 = vector.multi_reduction <add>, %598, %cst_357 [1] : vector<8x64xf32> to vector<8xf32>
    %600 = vector.shape_cast %599 : vector<8xf32> to vector<8x1xf32>
    %cst_358 = arith.constant 6.300000e+01 : f32
    %601 = vector.broadcast %cst_358 : f32 to vector<8x1xf32>
    %602 = arith.divf %600, %601 : vector<8x1xf32>
    %603 = math.sqrt %602 : vector<8x1xf32>
    %604 = vector.broadcast %595 : vector<8x1xf32> to vector<8x64xf32>
    %605 = arith.subf %589, %604 : vector<8x64xf32>
    %cst_359 = arith.constant 9.99999997E-7 : f32
    %606 = vector.broadcast %cst_359 : f32 to vector<8x1xf32>
    %607 = arith.addf %603, %606 : vector<8x1xf32>
    %608 = vector.broadcast %607 : vector<8x1xf32> to vector<8x64xf32>
    %609 = arith.divf %605, %608 : vector<8x64xf32>
    %610 = vector.broadcast %590 : vector<1x64xf32> to vector<8x64xf32>
    %611 = arith.mulf %610, %609 : vector<8x64xf32>
    %612 = vector.broadcast %591 : vector<1x64xf32> to vector<8x64xf32>
    %613 = arith.addf %611, %612 : vector<8x64xf32>
    %c8 = arith.constant 8 : index
    %c0_360 = arith.constant 0 : index
    %614 = vector.load %arg16[%c8, %c0_360] : memref<16x64xf32, #tpu.memory_space<vmem>>, vector<8x64xf32>
    tpu.vector_store %arg16[%c8, %c0_360], %613 {strides = array<i32>} : memref<16x64xf32, #tpu.memory_space<vmem>>, vector<8x64xf32>,
    return
  }
}

</mosaic_0001>

<bundles_post_ra>
// kernel: tpu_custom_call.1
= control target key start
LH: loop header
LB: loop body
LE: loop exit
PB: predicated region body
PF: predicated region fallthrough
CT: control target
= control target key end

     0   :  { %s6493_s0 = inlined_call_operand.hbm [shape: f32[16,64], index: 0, kind: input, shape index: {}]   ;;  %s6494_s1 = inlined_call_operand.hbm [shape: f32[16,64], index: 1, kind: input, shape index: {}]   ;;  %s6495_s2 = inlined_call_operand.hbm [shape: f32[16,64], index: 2, kind: input, shape index: {}]   ;;  %s6496_s3 = inlined_call_operand.vmem [shape: f32[64,64], index: 3, kind: input, shape index: {}]   ;;  %s6497_s4 = inlined_call_operand.vmem [shape: f32[64,64], index: 4, kind: input, shape index: {}]   ;;  %s6498_s5 = inlined_call_operand.vmem [shape: f32[64,64], index: 5, kind: input, shape index: {}]   ;;  %s6499_s6 = inlined_call_operand.vmem [shape: f32[4,16,64], index: 6, kind: input, shape index: {}]   ;;  %s6500_s7 = inlined_call_operand.vmem [shape: f32[4,1,64], index: 7, kind: input, shape index: {}]   ;;  %s6501_s8 = inlined_call_operand.vmem [shape: f32[4,64,32], index: 8, kind: input, shape index: {}]   ;;  %s6502_s9 = inlined_call_operand.vmem [shape: f32[4,1,32], index: 9, kind: input, shape index: {}]   ;;  %s6503_s10 = inlined_call_operand.vmem [shape: f32[4,32,64], index: 10, kind: input, shape index: {}]   ;;  %s6504_s11 = inlined_call_operand.vmem [shape: f32[4,1,64], index: 11, kind: input, shape index: {}]   ;;  %s6505_s12 = inlined_call_operand.vmem [shape: f32[4,1,64], index: 12, kind: input, shape index: {}]   ;;  %s6506_s13 = inlined_call_operand.vmem [shape: f32[4,1,64], index: 13, kind: input, shape index: {}]   ;;  %s6507_s14 = inlined_call_operand.vmem [shape: f32[1,64], index: 14, kind: input, shape index: {}]   ;;  %s6508_s15 = inlined_call_operand.vmem [shape: f32[1,64], index: 15, kind: input, shape index: {}]   ;;  %s6509_s16 = inlined_call_operand.hbm [shape: f32[16,64], index: 16, kind: output, shape index: {0}]   ;;  %s6510_s17 = inlined_call_operand.hbm [shape: f32[2,4,8,8], index: 17, kind: output, shape index: {1}]  }
   0x1   :  { %6514 = sst [smem:[#allocation15_spill]] %s6493_s0 }
   0x2   :  { %6515 = sst [smem:[#allocation16_spill]] %s6494_s1 }
   0x3   :  { %6516 = sst [smem:[#allocation17_spill]] %s6509_s16 }
   0x4   :  { %23 = vsyncpa [#allocation3], 0 }
   0x5   :  { %24 = vsyncpa [#allocation6], 0 }
   0x6   :  { %25 = vsyncpa [#allocation4], 0 }
   0x7   :  { %26 = vsyncpa [#allocation10], 0  ;;  %s5446_s24 = smov [#allocation5]   ;;  %s5447_s26 = smov [#allocation2]  }
   0x8   :  { %s44_s25 = sshll.u32 %s5446_s24, 4  ;;  %s32_s27 = sshll.u32 %s5447_s26, 4  ;;  %s45_s25 = int_to_ptr.vmem [resolvable:$true] %s44_s25  ;;  %s5549_s27 = int_to_ptr.vmem [resolvable:$true] %s32_s27 }
   0x9   :  { %s6517_s0 = sld [smem:[#allocation16_spill]] }
   0xf   :  { %s5328_s30 = scalar_lea.hbm %s6517_s0, 256 }
  0x10   :  { %p5329_p0 = scmp.ne.s32.totalorder %s6517_s0, %s5328_s30  ;;  %p5332_p1 = scmp.lt.u32.totalorder %s5328_s30, %s6517_s0 }
  0x12   :  { %p5334_p2 = pnand %p5332_p1, %p5329_p0 }
  0x14   :  { %5337 = shalt.err (!%p5334_p2)
}
  0x15   :  { %s5338_s21 = scalar_lea.vmem %s45_s25, 256  ;;  %p5343_p4 = scmp.lt.s32.totalorder %s45_s25, %s45_s25 }
  0x16   :  { %p5339_p3 = scmp.ne.s32.totalorder %s45_s25, %s5338_s21  ;;  %p5344_p5 = scmp.lt.s32.totalorder %s5338_s21, %s5338_s21 }
  0x18   :  { %p5345_p6 = por %p5344_p5, %p5343_p4 }
  0x1a   :  { %p5346_p7 = pnand %p5345_p6, %p5339_p3 }
  0x1c   :  { %5349 = shalt.err (!%p5346_p7)
}
  0x1d   :  { %s5448_s22 = smov 128   ;;  %s5449_s23 = smov 8  }
  0x1e   :  { %50 = dma.hbm_to_vmem [thread:$0]  %s6517_s0, 256, %s45_s25, [#allocation6], %s5448_s22, %s5448_s22, %s5449_s23  }
  0x1f   :  { %s6518_s30 = sld [smem:[#allocation15_spill]] }
  0x25   :  { %s5350_s18 = scalar_lea.hbm %s6518_s30, 256 }
  0x26   :  { %p5351_p8 = scmp.ne.s32.totalorder %s6518_s30, %s5350_s18  ;;  %p5354_p9 = scmp.lt.u32.totalorder %s5350_s18, %s6518_s30 }
  0x28   :  { %p5356_p10 = pnand %p5354_p9, %p5351_p8 }
  0x2a   :  { %5359 = shalt.err (!%p5356_p10)
}
  0x2b   :  { %s5360_s16 = scalar_lea.vmem %s5549_s27, 256  ;;  %p5365_p12 = scmp.lt.s32.totalorder %s5549_s27, %s5549_s27 }
  0x2c   :  { %p5361_p11 = scmp.ne.s32.totalorder %s5549_s27, %s5360_s16  ;;  %p5366_p13 = scmp.lt.s32.totalorder %s5360_s16, %s5360_s16 }
  0x2e   :  { %p5367_p0 = por %p5366_p13, %p5365_p12 }
  0x30   :  { %p5368_p1 = pnand %p5367_p0, %p5361_p11 }
  0x32   :  { %5371 = shalt.err (!%p5368_p1)
}
  0x33   :  { %38 = dma.hbm_to_vmem [thread:$0]  %s6518_s30, 256, %s5549_s27, [#allocation3], %s5448_s22, %s5448_s22, %s5449_s23  }
  0x34   :  { %s5450_s24 = smov [#allocation7]   ;;  %s5372_s18 = scalar_lea.hbm %s6495_s2, 256 }
  0x35   :  { %s56_s26 = sshll.u32 %s5450_s24, 4  ;;  %p5373_p2 = scmp.ne.s32.totalorder %s6495_s2, %s5372_s18  ;;  %s57_s26 = int_to_ptr.vmem [resolvable:$true] %s56_s26 }
  0x36   :  { %p5376_p3 = scmp.lt.u32.totalorder %s5372_s18, %s6495_s2 }
  0x38   :  { %p5378_p4 = pnand %p5376_p3, %p5373_p2 }
  0x3a   :  { %5381 = shalt.err (!%p5378_p4)
}
  0x3b   :  { %s5382_s21 = scalar_lea.vmem %s57_s26, 256  ;;  %p5387_p6 = scmp.lt.s32.totalorder %s57_s26, %s57_s26 }
  0x3c   :  { %p5383_p5 = scmp.ne.s32.totalorder %s57_s26, %s5382_s21  ;;  %p5388_p7 = scmp.lt.s32.totalorder %s5382_s21, %s5382_s21 }
  0x3e   :  { %p5389_p8 = por %p5388_p7, %p5387_p6 }
  0x40   :  { %p5390_p9 = pnand %p5389_p8, %p5383_p5 }
  0x42   :  { %5393 = shalt.err (!%p5390_p9)
}
  0x43   :  { %62 = dma.hbm_to_vmem [thread:$0]  %s6495_s2, 256, %s57_s26, [#allocation6], %s5448_s22, %s5448_s22, %s5449_s23  }
  0x44   :  { %5438 = dma.done.wait [#allocation3], 256  }
  0x45   :  { %5439 = vsyncadd [#allocation3], 4294967040 }
  0x46   :  { %5440 = dma.done.wait [#allocation6], 512  }
  0x47   :  { %5441 = vsyncadd [#allocation6], 4294966784  ;;  %v194_v0 = vld [vmem:[%s6497_s4] sm:$0xff]  ;;  %v195_v1 = vld [vmem:[%s6497_s4 + $0x8] sm:$0xff]  ;;  %vm112_vm0 = vcmask 523264   ;;  %v5451_v28 = vmov 0.0  }
  0x48   :  { %v104_v2 = vld [vmem:[%s6496_s3] sm:$0xff]  ;;  %v5041_v3 = vpack.c.bf16 %v195_v1, %v194_v0  ;;  %v105_v4 = vld [vmem:[%s6496_s3 + $0x8] sm:$0xff]  ;;  %v196_v5 = vld [vmem:[%s6497_s4 + $0x10] sm:$0xff]  ;;  %vm5452_vm1 = vmmov 0   ;;  %vm372_vm2 = vcmask 130048   ;;  %vm449_vm3 = vcmask 64512  }
  0x49   :  { %v197_v6 = vld [vmem:[%s6497_s4 + $0x18] sm:$0xff]  ;;  %v5025_v7 = vpack.c.bf16 %v105_v4, %v104_v2  ;;  %v106_v9 = vld [vmem:[%s6496_s3 + $0x10] sm:$0xff]  ;;  %v198_v11 = vld [vmem:[%s6497_s4 + $0x20] sm:$0xff]  ;;  %v5454_v57 = vmov 0.0|0.0   ;;  %vm717_vm4 = vcmask 261120   ;;  %s5455_s25 = smov 96  }
  0x4a   :  { %v5045_v8 = vpack.c.bf16 %v197_v6, %v196_v5  ;;  %v107_v10 = vld [vmem:[%s6496_s3 + $0x18] sm:$0xff]  ;;  %5042 = vmatprep.subr.bf16.mxu1 %v5041_v3  ;;  %v199_v13 = vld [vmem:[%s6497_s4 + $0x28] sm:$0xff]  ;;  %v108_v14 = vld [vmem:[%s6496_s3 + $0x20] sm:$0xff]  ;;  %s5456_s0 = smov 80  }
  0x4b   :  { %v5029_v12 = vpack.c.bf16 %v107_v10, %v106_v9  ;;  %v109_v15 = vld [vmem:[%s6496_s3 + $0x28] sm:$0xff]  ;;  %5044 = vmatpush3.bf16.msra.mxu1 %v5041_v3  ;;  %5026 = vmatprep.subr.bf16.mxu0 %v5025_v7  ;;  %v5049_v16 = vpack.c.bf16 %v199_v13, %v198_v11  ;;  %v100_v17 = vld [vmem:[#allocation5] sm:$0xff]  ;;  %v201_v20 = vld [vmem:[%s6497_s4 + $0x38] sm:$0xff] }
  0x4c   :  { %5028 = vmatpush3.bf16.msra.mxu0 %v5025_v7  ;;  %5046 = vmatprep.subr.bf16.mxu1 %v5045_v8  ;;  %v5033_v18 = vpack.c.bf16 %v109_v15, %v108_v14  ;;  %v200_v19 = vld [vmem:[%s6497_s4 + $0x30] sm:$0xff]  ;;  %v98_v21 = vld [vmem:[#allocation2] sm:$0xff]  ;;  %v111_v23 = vld [vmem:[%s6496_s3 + $0x38] sm:$0xff] }
  0x4d   :  { %5030 = vmatprep.subr.bf16.mxu0 %v5029_v12  ;;  %4627 = vmatprep.mubr.msk.f32.mxu1 %vm112_vm0, %v100_v17  ;;  %v110_v22 = vld [vmem:[%s6496_s3 + $0x30] sm:$0xff]  ;;  %v5053_v24 = vpack.c.bf16 %v201_v20, %v200_v19  ;;  %v101_v26 = vld [vmem:[#allocation5 + $0x8] sm:$0xff]  ;;  %v99_v27 = vld [vmem:[#allocation2 + $0x8] sm:$0xff]  ;;  %s5453_s3 = smov 112  }
  0x4e   :  { %4608 = vmatprep.mubr.msk.f32.mxu0 %vm112_vm0, %v98_v21  ;;  %v5037_v25 = vpack.c.bf16 %v111_v23, %v110_v22  ;;  %v283_v33 = vld [vmem:[%s6498_s5] sm:$0xff]  ;;  %v284_v34 = vld [vmem:[%s6498_s5 + $0x8] sm:$0xff]  ;;  %v285_v35 = vld [vmem:[%s6498_s5 + $0x10] sm:$0xff] }
  0x4f   :  { %5048 = vmatpush3.bf16.msra.mxu1 %v5045_v8  ;;  %v5057_v36 = vpack.c.bf16 %v284_v34, %v283_v33  ;;  %v286_v37 = vld [vmem:[%s6498_s5 + $0x18] sm:$0xff]  ;;  %v287_v39 = vld [vmem:[%s6498_s5 + $0x20] sm:$0xff]  ;;  %v288_v40 = vld [vmem:[%s6498_s5 + $0x28] sm:$0xff] }
  0x50   :  { %5032 = vmatpush3.bf16.msra.mxu0 %v5029_v12  ;;  %5050 = vmatprep.subr.bf16.mxu1 %v5049_v16  ;;  %v5061_v38 = vpack.c.bf16 %v286_v37, %v285_v35  ;;  %v102_v41 = vld [vmem:[#allocation7] sm:$0xff]  ;;  %v5065_v42 = vpack.c.bf16 %v288_v40, %v287_v39  ;;  %v289_v43 = vld [vmem:[%s6498_s5 + $0x30] sm:$0xff]  ;;  %v290_v44 = vld [vmem:[%s6498_s5 + $0x38] sm:$0xff] }
  0x51   :  { %5034 = vmatprep.subr.bf16.mxu0 %v5033_v18  ;;  %v5069_v45 = vpack.c.bf16 %v290_v44, %v289_v43  ;;  %v103_v46 = vld [vmem:[#allocation7 + $0x8] sm:$0xff]  ;;  %v535_v59 = vld [vmem:[%s6499_s6] sm:$0xff]  ;;  %v619_v3 = vld [vmem:[%s6501_s8 + $0x10] sm:$0xff] }
  0x52   :  { %v536_v60 = vld [vmem:[%s6499_s6 + $0x8] sm:$0xff]  ;;  %v617_v0 = vld [vmem:[%s6501_s8] sm:$0xff]  ;;  %v620_v4 = vld [vmem:[%s6501_s8 + $0x18] sm:$0xff] }
  0x53   :  { %5052 = vmatpush3.bf16.msra.mxu1 %v5049_v16  ;;  %v5718_v62 = vpack.c.bf16 %v536_v60, %v535_v59  ;;  %v618_v1 = vld [vmem:[%s6501_s8 + $0x8] sm:$0xff]  ;;  %v5742_v7 = vpack.c.bf16 %v620_v4, %v619_v3  ;;  %v621_v8 = vld [vmem:[%s6501_s8 + $0x20] sm:$0xff]  ;;  %v623_v11 = vld [vmem:[%s6501_s8 + $0x30] sm:$0xff] }
  0x54   :  { %5036 = vmatpush3.bf16.msra.mxu0 %v5033_v18  ;;  %5054 = vmatprep.subr.bf16.mxu1 %v5053_v24  ;;  %v5732_v2 = vpack.c.bf16 %v618_v1, %v617_v0  ;;  %v622_v9 = vld [vmem:[%s6501_s8 + $0x28] sm:$0xff]  ;;  %v624_v12 = vld [vmem:[%s6501_s8 + $0x38] sm:$0xff]  ;;  %v706_v14 = vld [vmem:[%s6503_s10] sm:$0xff] }
  0x55   :  { %5038 = vmatprep.subr.bf16.mxu0 %v5037_v25  ;;  %v5754_v10 = vpack.c.bf16 %v622_v9, %v621_v8  ;;  %v5764_v13 = vpack.c.bf16 %v624_v12, %v623_v11  ;;  %v707_v15 = vld [vmem:[%s6503_s10 + $0x8] sm:$0xff]  ;;  %v5782_v17 = vld [vmem:[%s6500_s7] ss:$0 sm:$0xff]  ;;  %v708_v23 = vld [vmem:[%s6503_s10 + $0x10] sm:$0xff] }
  0x56   :  { %v5775_v16 = vpack.c.bf16 %v707_v15, %v706_v14  ;;  %v4210_v60 = vld [vmem:[%s6501_s8 + $0x58] sm:$0xff]  ;;  %v4212_v0 = vld [vmem:[%s6501_s8 + $0x68] sm:$0xff]  ;;  %v4218_v9 = vld [vmem:[%s6503_s10 + $0x20] sm:$0xff] }
  0x57   :  { %5056 = vmatpush3.bf16.msra.mxu1 %v5053_v24  ;;  %v709_v24 = vld [vmem:[%s6503_s10 + $0x18] sm:$0xff]  ;;  %v4219_v11 = vld [vmem:[%s6503_s10 + $0x28] sm:$0xff]  ;;  %v4220_v12 = vld [vmem:[%s6503_s10 + $0x30] sm:$0xff] }
  0x58   :  { %5040 = vmatpush3.bf16.msra.mxu0 %v5037_v25  ;;  %4649 = vmatprep.subr.mxu1 %v5451_v28  ;;  %v5802_v25 = vpack.c.bf16 %v709_v24, %v708_v23  ;;  %v5892_v14 = vpack.c.bf16 %v4219_v11, %v4218_v9  ;;  %v4221_v15 = vld [vmem:[%s6503_s10 + $0x38] sm:$0xff]  ;;  %v5918_v24 = vld [vmem:[%s6502_s9 + $0x1] ss:$0 sm:$0xff] }
  0x59   :  { %5058 = vmatprep.subr.bf16.mxu0 %v5057_v36 }
  0x5a   :  { %4628 = vmatmul.mubr.msk.f32.vlgmr.msra.gmra.mrb[0].mxu1 %vm112_vm0, %v101_v26  ;;  %v5809_v26 = vld [vmem:[%s6502_s9] ss:$0 sm:$0xff] }
  0x5b   :  { %4609 = vmatmul.mubr.msk.f32.vlgmr.msra.gmra.mrb[0].mxu0 %vm112_vm0, %v99_v27  ;;  %4651 = vmatprep.mubr.msk.f32.mxu1 %vm5452_vm1, %v5451_v28 }
  0x5c   :  { %4646 = vmatprep.mubr.msk.f32.mxu0 %vm112_vm0, %v102_v41  ;;  %5060 = vmatpush3.bf16.msra.mxu0 %v5057_v36 }
  0x5d   :  { %5062 = vmatprep.subr.bf16.mxu0 %v5061_v38 }
  0x60   :  { %5064 = vmatpush3.bf16.msra.mxu0 %v5061_v38 }
  0x61   :  { %5066 = vmatprep.subr.bf16.mxu0 %v5065_v42 }
  0x64   :  { %5068 = vmatpush3.bf16.msra.mxu0 %v5065_v42 }
  0x65   :  { %5070 = vmatprep.subr.bf16.mxu0 %v5069_v45 }
  0x68   :  { %5072 = vmatpush3.bf16.msra.mxu0 %v5069_v45  ;;  %v4202_v45 = vld [vmem:[%s6499_s6 + $0x10] sm:$0xff] }
  0x69   :  { %5088 = vmatprep.subr.bf16.mxu0 %v5454_v57 }
  0x6b   :  { %4647 = vmatmul.mubr.msk.f32.vlgmr.msra.gmra.mrb[2].mxu0 %vm112_vm0, %v103_v46  ;;  %v4203_v46 = vld [vmem:[%s6499_s6 + $0x18] sm:$0xff] }
  0x6c   :  { %4693 = vmatprep.mubr.msk.f32.mxu0 %vm5452_vm1, %v5451_v28  ;;  %5090 = vmatpush3.bf16.msra.mxu0 %v5775_v16 }
  0x6d   :  { %5091 = vmatprep.subr.bf16.mxu0 %v5454_v57 }
  0x70   :  { %5093 = vmatpush3.bf16.msra.mxu0 %v5802_v25 }
  0x71   :  { %4701 = vmatprep.subr.mxu0 %v5451_v28 }
 0x12d   :  { %v5656_v29 = vpop.f32.mrb[0].mxu1 }
 0x12e   :  { %v5658_v30 = vpop.f32.mrb[1].mxu1  ;;  %v5660_v31 = vpop.f32.mrb[0].mxu0 }
 0x12f   :  { %833 = vrot.lane.b32.xlu1 %v5658_v30, %s5453_s3  ;;  %4650 = vmatpush3.xpose.msk.msra.mxu1 %vm372_vm2, %v5658_v30  ;;  %v5666_v32 = vpop.f32.mrb[1].mxu0 }
 0x130   :  { %4654 = vmatprep.subr.mxu1 %v5451_v28 }
 0x132   :  { %4652 = vmatmul.mubr.msk.f32.vlgmr.msra.gmra.mrb[2].mxu1 %vm372_vm2, %v5666_v32 }
 0x133   :  { %831 = vrot.lane.b32.xlu1 %v5666_v32, %s5453_s3  ;;  %4656 = vmatprep.mubr.msk.f32.mxu1 %vm5452_vm1, %v5451_v28 }
 0x13e   :  { %v5705_v55 = vpop.f32.mrb[2].mxu0 }
 0x13f   :  { %v5707_v56 = vpop.f32.mrb[3].mxu0 }
 0x140   :  { %4655 = vmatpush3.msra.mxu1 %v5707_v56 }
 0x141   :  { %5073 = vmatprep.subr.bf16.mxu1 %v5454_v57 }
 0x1a1   :  { %v834_v18 = vpop.permute.xlu1 %833 }
 0x1a5   :  { %v832_v22 = vpop.permute.xlu1 %831 }
 0x205   :  { %v445_v47 = vpop.f32.mrb[2].mxu1 }
 0x206   :  { %v4653_v48 = vpop.f32.mrb[3].mxu1  ;;  %v450_v49 = vsel %vm449_vm3, %v445_v47, -inf }
 0x207   :  { %451 = vmax.xlane.f32.xlu0 %v450_v49 }
 0x294   :  { %v452_v50 = vpop.xlane.xlu0 %451 }
 0x295   :  { %v453_v51 = vsub.f32 %v445_v47, %v452_v50  ;;  %v5830_v47 = vpack.c.bf16 %v4203_v46, %v4202_v45 }
 0x297   :  { %v454_v52 = vmul.f32 1.442695, %v453_v51 }
 0x299   :  { %5254 = vpow2.f32 %v454_v52 }
 0x2a3   :  { %v5255_v53 = vpop.eup %5254 }
 0x2a4   :  { %v456_v54 = vsel %vm449_vm3, %v5255_v53, 0.0 }
 0x2a5   :  { %457 = vadd.xlane.f32.xlu0 %v456_v54  ;;  %v4208_v54 = vld [vmem:[%s6501_s8 + $0x48] sm:$0xff] }
 0x332   :  { %v458_v58 = vpop.xlane.xlu0 %457 }
 0x333   :  { %5256 = vrcp.f32 %v458_v58  ;;  %v4209_v58 = vld [vmem:[%s6501_s8 + $0x50] sm:$0xff] }
 0x33d   :  { %v5257_v61 = vpop.eup %5256 }
 0x33e   :  { %v460_v63 = vmul.f32 %v5257_v61, %v5255_v53  ;;  %v4207_v53 = vld [vmem:[%s6501_s8 + $0x40] sm:$0xff]  ;;  %v5855_v61 = vpack.c.bf16 %v4210_v60, %v4209_v58  ;;  %v4238_v60 = vld [vmem:[%s6501_s8 + $0x88] sm:$0xff] }
 0x33f   :  { %v5849_v59 = vpack.c.bf16 %v4208_v54, %v4207_v53  ;;  %v4237_v58 = vld [vmem:[%s6501_s8 + $0x80] sm:$0xff] }
 0x340   :  { %461 = vst.msk [vmem:[#allocation9] sm:$0xff] %vm449_vm3, %v460_v63  ;;  %4657 = vmatmul.mubr.msk.f32.vlgmr.msra.gmra.mrb[4].mxu1 %vm449_vm3, %v460_v63  ;;  %v4211_v63 = vld [vmem:[%s6501_s8 + $0x60] sm:$0xff] }
 0x341   :  { %5075 = vmatpush3.bf16.msra.mxu1 %v5718_v62  ;;  %4663 = vmatprep.mubr.msk.f32.mxu1 %vm5452_vm1, %v5451_v28  ;;  %v5865_v1 = vpack.c.bf16 %v4212_v0, %v4211_v63  ;;  %v4239_v63 = vld [vmem:[%s6501_s8 + $0x90] sm:$0xff]  ;;  %v5963_v0 = vpack.c.bf16 %v4238_v60, %v4237_v58 }
 0x342   :  { %5076 = vmatprep.subr.bf16.mxu1 %v5454_v57 }
 0x413   :  { %v531_v5 = vpop.f32.mrb[4].mxu1 }
 0x414   :  { %v4658_v6 = vpop.f32.mrb[5].mxu1  ;;  %4664 = vmatmul.mubr.msk.f32.vlgmr.msra.gmra.mrb[6].mxu1 %vm372_vm2, %v531_v5  ;;  %v4213_v5 = vld [vmem:[%s6501_s8 + $0x70] sm:$0xff] }
 0x415   :  { %5078 = vmatpush3.bf16.msra.mxu1 %v5732_v2  ;;  %4682 = vmatprep.mubr.msk.f32.mxu1 %vm5452_vm1, %v5451_v28  ;;  %v4214_v6 = vld [vmem:[%s6501_s8 + $0x78] sm:$0xff] }
 0x416   :  { %5079 = vmatprep.subr.bf16.mxu1 %v5454_v57  ;;  %v5879_v8 = vpack.c.bf16 %v4214_v6, %v4213_v5  ;;  %v4241_v5 = vld [vmem:[%s6501_s8 + $0xa0] sm:$0xff]  ;;  %v4242_v6 = vld [vmem:[%s6501_s8 + $0xa8] sm:$0xff] }
 0x417   :  { %v5979_v9 = vpack.c.bf16 %v4242_v6, %v4241_v5 }
 0x419   :  { %5081 = vmatpush3.bf16.msra.mxu1 %v5742_v7 }
 0x41a   :  { %5082 = vmatprep.subr.bf16.mxu1 %v5454_v57 }
 0x41d   :  { %5084 = vmatpush3.bf16.msra.mxu1 %v5754_v10 }
 0x41e   :  { %5085 = vmatprep.subr.bf16.mxu1 %v5454_v57 }
 0x421   :  { %5087 = vmatpush3.bf16.msra.mxu1 %v5764_v13 }
 0x422   :  { %4696 = vmatprep.subr.mxu1 %v5451_v28 }
 0x4e7   :  { %v613_v19 = vpop.f32.mrb[6].mxu1 }
 0x4e8   :  { %v5785_v20 = vadd.f32 %v5782_v17, %v613_v19  ;;  %v4665_v21 = vpop.f32.mrb[7].mxu1  ;;  %v5906_v19 = vld [vmem:[%s6500_s7 + $0x1] ss:$0 sm:$0xff] }
 0x4ea   :  { %4683 = vmatmul.mubr.msk.f32.vlgmr.msra.gmra.mrb[8].mxu1 %vm112_vm0, %v5785_v20 }
 0x4eb   :  { %4697 = vmatpush3.xpose.msk.msra.mxu1 %vm372_vm2, %v834_v18  ;;  %4698 = vmatprep.mubr.msk.f32.mxu1 %vm5452_vm1, %v5451_v28  ;;  %v5898_v18 = vpack.c.bf16 %v4221_v15, %v4220_v12  ;;  %v4243_v15 = vld [vmem:[%s6501_s8 + $0xb0] sm:$0xff] }
 0x4ec   :  { %5094 = vmatprep.subr.bf16.mxu1 %v5454_v57 }
 0x4ee   :  { %4699 = vmatmul.mubr.msk.f32.vlgmr.msra.gmra.mrb[10].mxu1 %vm372_vm2, %v832_v22 }
 0x4ef   :  { %4710 = vmatprep.mubr.msk.f32.mxu1 %vm5452_vm1, %v5451_v28  ;;  %5096 = vmatpush3.bf16.msra.mxu1 %v5830_v47 }
 0x4f0   :  { %5109 = vmatprep.subr.bf16.mxu1 %v5454_v57 }
 0x5bd   :  { %v701_v27 = vpop.f32.mrb[8].mxu1 }
 0x5be   :  { %v702_v33 = vadd.f32 %v5809_v26, %v701_v27  ;;  %v4684_v34 = vpop.f32.mrb[9].mxu1 }
 0x5c0   :  { %v705_v35 = vmax.f32 %v702_v33, 0.0 }
 0x5c1   :  { %v905_v36 = vpop.f32.mrb[10].mxu1 }
 0x5c2   :  { %4694 = vmatmul.mubr.msk.f32.vlgmr.msra.gmra.mrb[4].mxu0 %vm717_vm4, %v705_v35  ;;  %v4700_v37 = vpop.f32.mrb[11].mxu1  ;;  %v909_v38 = vsel %vm449_vm3, %v905_v36, -inf }
 0x5c3   :  { %910 = vmax.xlane.f32.xlu0 %v909_v38  ;;  %4703 = vmatprep.mubr.msk.f32.mxu0 %vm5452_vm1, %v5451_v28 }
 0x5d9   :  { %923 = vrot.lane.b32.xlu0 %v5707_v56, %s5453_s3 }
 0x5dd   :  { %1302 = vrot.lane.b32.xlu0 %v5658_v30, %s5455_s25 }
 0x5e1   :  { %1300 = vrot.lane.b32.xlu0 %v5666_v32, %s5455_s25 }
 0x650   :  { %v911_v39 = vpop.xlane.xlu0 %910 }
 0x651   :  { %v912_v40 = vsub.f32 %v905_v36, %v911_v39 }
 0x653   :  { %v913_v41 = vmul.f32 1.442695, %v912_v40 }
 0x654   :  { %v924_v42 = vpop.permute.xlu0 %923 }
 0x655   :  { %5258 = vpow2.f32 %v913_v41  ;;  %4702 = vmatpush3.msra.mxu0 %v924_v42 }
 0x656   :  { %5097 = vmatprep.subr.bf16.mxu0 %v5454_v57 }
 0x658   :  { %v1303_v35 = vpop.permute.xlu0 %1302 }
 0x65c   :  { %v1301_v37 = vpop.permute.xlu0 %1300 }
 0x65f   :  { %v5259_v43 = vpop.eup %5258 }
 0x660   :  { %v915_v44 = vsel %vm449_vm3, %v5259_v43, 0.0 }
 0x661   :  { %916 = vadd.xlane.f32.xlu1 %v915_v44 }
 0x695   :  { %v5834_v48 = vpop.f32.mrb[4].mxu0 }
 0x696   :  { %v4695_v49 = vpop.f32.mrb[5].mxu0 }
 0x6ee   :  { %v917_v50 = vpop.xlane.xlu1 %916 }
 0x6ef   :  { %5260 = vrcp.f32 %v917_v50  ;;  %v4232_v50 = vld [vmem:[%s6499_s6 + $0x20] sm:$0xff] }
 0x6f9   :  { %v5261_v51 = vpop.eup %5260 }
 0x6fa   :  { %v919_v52 = vmul.f32 %v5261_v51, %v5259_v43  ;;  %v4233_v51 = vld [vmem:[%s6499_s6 + $0x28] sm:$0xff] }
 0x6fc   :  { %921 = vst.msk [vmem:[#allocation9 + $0x8] sm:$0xff] %vm449_vm3, %v919_v52  ;;  %4704 = vmatmul.mubr.msk.f32.vlgmr.msra.gmra.mrb[6].mxu0 %vm449_vm3, %v919_v52  ;;  %v5945_v52 = vpack.c.bf16 %v4233_v51, %v4232_v50 }
 0x6fd   :  { %4729 = vmatprep.mubr.msk.f32.mxu0 %vm5452_vm1, %v5451_v28  ;;  %5099 = vmatpush3.bf16.msra.mxu0 %v5849_v59 }
 0x6fe   :  { %5100 = vmatprep.subr.bf16.mxu0 %v5454_v57 }
 0x701   :  { %5102 = vmatpush3.bf16.msra.mxu0 %v5855_v61 }
 0x702   :  { %5103 = vmatprep.subr.bf16.mxu0 %v5454_v57 }
 0x705   :  { %5105 = vmatpush3.bf16.msra.mxu0 %v5865_v1 }
 0x706   :  { %5106 = vmatprep.subr.bf16.mxu0 %v5454_v57 }
 0x709   :  { %5108 = vmatpush3.bf16.msra.mxu0 %v5879_v8 }
 0x70a   :  { %5115 = vmatprep.subr.bf16.mxu0 %v5454_v57 }
 0x7cf   :  { %v995_v3 = vpop.f32.mrb[6].mxu0 }
 0x7d0   :  { %v4705_v4 = vpop.f32.mrb[7].mxu0  ;;  %4711 = vmatmul.mubr.msk.f32.vlgmr.msra.gmra.mrb[12].mxu1 %vm372_vm2, %v995_v3  ;;  %v4240_v3 = vld [vmem:[%s6501_s8 + $0x98] sm:$0xff] }
 0x7d1   :  { %4740 = vmatprep.mubr.msk.f32.mxu1 %vm5452_vm1, %v5451_v28  ;;  %5111 = vmatpush3.bf16.msra.mxu1 %v5892_v14  ;;  %v5969_v4 = vpack.c.bf16 %v4240_v3, %v4239_v63 }
 0x7d2   :  { %5112 = vmatprep.subr.bf16.mxu1 %v5454_v57 }
 0x7d5   :  { %5114 = vmatpush3.bf16.msra.mxu1 %v5898_v18 }
 0x7d6   :  { %4743 = vmatprep.subr.mxu1 %v5451_v28 }
 0x8a3   :  { %v1079_v21 = vpop.f32.mrb[12].mxu1 }
 0x8a4   :  { %v5909_v22 = vadd.f32 %v5906_v19, %v1079_v21  ;;  %v4712_v23 = vpop.f32.mrb[13].mxu1  ;;  %v4244_v21 = vld [vmem:[%s6501_s8 + $0xb8] sm:$0xff] }
 0x8a5   :  { %v5993_v23 = vpack.c.bf16 %v4244_v21, %v4243_v15 }
 0x8a6   :  { %4730 = vmatmul.mubr.msk.f32.vlgmr.msra.gmra.mrb[8].mxu0 %vm112_vm0, %v5909_v22 }
 0x8a7   :  { %4757 = vmatprep.mubr.msk.f32.mxu0 %vm5452_vm1, %v5451_v28  ;;  %5117 = vmatpush3.bf16.msra.mxu0 %v5945_v52 }
 0x8a8   :  { %5130 = vmatprep.subr.bf16.mxu0 %v5454_v57 }
 0x979   :  { %v1169_v27 = vpop.f32.mrb[8].mxu0 }
 0x97a   :  { %v1170_v33 = vadd.f32 %v5918_v24, %v1169_v27  ;;  %v4731_v34 = vpop.f32.mrb[9].mxu0  ;;  %v4248_v27 = vld [vmem:[%s6503_s10 + $0x40] sm:$0xff] }
 0x97b   :  { %v4250_v34 = vld [vmem:[%s6503_s10 + $0x50] sm:$0xff] }
 0x97c   :  { %v1173_v36 = vmax.f32 %v1170_v33, 0.0  ;;  %v4249_v33 = vld [vmem:[%s6503_s10 + $0x48] sm:$0xff] }
 0x97e   :  { %4741 = vmatmul.mubr.msk.f32.vlgmr.msra.gmra.mrb[14].mxu1 %vm717_vm4, %v1173_v36  ;;  %v4251_v36 = vld [vmem:[%s6503_s10 + $0x58] sm:$0xff] }
 0x97f   :  { %4744 = vmatpush3.xpose.msk.msra.mxu1 %vm372_vm2, %v1303_v35  ;;  %4745 = vmatprep.mubr.msk.f32.mxu1 %vm5452_vm1, %v5451_v28  ;;  %v6006_v35 = vpack.c.bf16 %v4249_v33, %v4248_v27 }
 0x980   :  { %4748 = vmatprep.subr.mxu1 %v5451_v28 }
 0x982   :  { %4746 = vmatmul.mubr.msk.f32.vlgmr.msra.gmra.mrb[16].mxu1 %vm372_vm2, %v1301_v37  ;;  %v6012_v37 = vpack.c.bf16 %v4251_v36, %v4250_v34  ;;  %v4267_v34 = vld [vmem:[%s6501_s8 + $0xc0] sm:$0xff]  ;;  %v4268_v36 = vld [vmem:[%s6501_s8 + $0xc8] sm:$0xff] }
 0x983   :  { %4750 = vmatprep.mubr.msk.f32.mxu1 %vm5452_vm1, %v5451_v28 }
 0xa51   :  { %v5929_v38 = vpop.f32.mrb[14].mxu1 }
 0xa52   :  { %v4742_v39 = vpop.f32.mrb[15].mxu1 }
 0xa53   :  { %v6020_v39 = vld [vmem:[%s6500_s7 + $0x2] ss:$0 sm:$0xff] }
 0xa55   :  { %v1374_v40 = vpop.f32.mrb[16].mxu1 }
 0xa56   :  { %v4747_v41 = vpop.f32.mrb[17].mxu1  ;;  %v1378_v42 = vsel %vm449_vm3, %v1374_v40, -inf }
 0xa57   :  { %1379 = vmax.xlane.f32.xlu0 %v1378_v42 }
 0xae4   :  { %v1380_v43 = vpop.xlane.xlu0 %1379 }
 0xae5   :  { %v1381_v44 = vsub.f32 %v1374_v40, %v1380_v43  ;;  %v6032_v43 = vld [vmem:[%s6502_s9 + $0x2] ss:$0 sm:$0xff] }
 0xae7   :  { %v1382_v45 = vmul.f32 1.442695, %v1381_v44 }
 0xae9   :  { %5262 = vpow2.f32 %v1382_v45 }
 0xaf3   :  { %v5263_v46 = vpop.eup %5262 }
 0xaf4   :  { %v1384_v49 = vsel %vm449_vm3, %v5263_v46, 0.0 }
 0xaf5   :  { %1385 = vadd.xlane.f32.xlu1 %v1384_v49 }
 0xb06   :  { %1391 = vrot.lane.b32.xlu1 %v5707_v56, %s5455_s25 }
 0xb0a   :  { %1770 = vrot.lane.b32.xlu1 %v5658_v30, %s5456_s0 }
 0xb0e   :  { %1768 = vrot.lane.b32.xlu1 %v5666_v32, %s5456_s0 }
 0xb82   :  { %v1386_v53 = vpop.xlane.xlu1 %1385 }
 0xb83   :  { %5264 = vrcp.f32 %v1386_v53 }
 0xb86   :  { %v1392_v30 = vpop.permute.xlu1 %1391 }
 0xb87   :  { %4749 = vmatpush3.msra.mxu1 %v1392_v30 }
 0xb88   :  { %5118 = vmatprep.subr.bf16.mxu1 %v5454_v57 }
 0xb8a   :  { %v1771_v49 = vpop.permute.xlu1 %1770 }
 0xb8d   :  { %v5265_v32 = vpop.eup %5264 }
 0xb8e   :  { %v1388_v54 = vmul.f32 %v5265_v32, %v5263_v46  ;;  %v1769_v51 = vpop.permute.xlu1 %1768 }
 0xb90   :  { %1390 = vst.msk [vmem:[#allocation9 + $0x10] sm:$0xff] %vm449_vm3, %v1388_v54  ;;  %4751 = vmatmul.mubr.msk.f32.vlgmr.msra.gmra.mrb[18].mxu1 %vm449_vm3, %v1388_v54 }
 0xb91   :  { %4776 = vmatprep.mubr.msk.f32.mxu1 %vm5452_vm1, %v5451_v28  ;;  %5120 = vmatpush3.bf16.msra.mxu1 %v5963_v0 }
 0xb92   :  { %5121 = vmatprep.subr.bf16.mxu1 %v5454_v57 }
 0xb95   :  { %5123 = vmatpush3.bf16.msra.mxu1 %v5969_v4 }
 0xb96   :  { %5124 = vmatprep.subr.bf16.mxu1 %v5454_v57 }
 0xb99   :  { %5126 = vmatpush3.bf16.msra.mxu1 %v5979_v9 }
 0xb9a   :  { %5127 = vmatprep.subr.bf16.mxu1 %v5454_v57 }
 0xb9d   :  { %5129 = vmatpush3.bf16.msra.mxu1 %v5993_v23 }
 0xb9e   :  { %5136 = vmatprep.subr.bf16.mxu1 %v5454_v57 }
 0xc63   :  { %v1463_v11 = vpop.f32.mrb[18].mxu1 }
 0xc64   :  { %v4752_v12 = vpop.f32.mrb[19].mxu1  ;;  %4758 = vmatmul.mubr.msk.f32.vlgmr.msra.gmra.mrb[10].mxu0 %vm372_vm2, %v1463_v11 }
 0xc65   :  { %4787 = vmatprep.mubr.msk.f32.mxu0 %vm5452_vm1, %v5451_v28  ;;  %5132 = vmatpush3.bf16.msra.mxu0 %v6006_v35  ;;  %v4262_v12 = vld [vmem:[%s6499_s6 + $0x30] sm:$0xff] }
 0xc66   :  { %5133 = vmatprep.subr.bf16.mxu0 %v5454_v57 }
 0xc69   :  { %5135 = vmatpush3.bf16.msra.mxu0 %v6012_v37 }
 0xc6a   :  { %4790 = vmatprep.subr.mxu0 %v5451_v28 }
 0xd37   :  { %v1547_v40 = vpop.f32.mrb[10].mxu0 }
 0xd38   :  { %v6023_v41 = vadd.f32 %v6020_v39, %v1547_v40  ;;  %v4759_v42 = vpop.f32.mrb[11].mxu0  ;;  %v4269_v40 = vld [vmem:[%s6501_s8 + $0xd0] sm:$0xff] }
 0xd39   :  { %v6073_v42 = vpack.c.bf16 %v4268_v36, %v4267_v34 }
 0xd3a   :  { %4777 = vmatmul.mubr.msk.f32.vlgmr.msra.gmra.mrb[20].mxu1 %vm112_vm0, %v6023_v41 }
 0xd3b   :  { %4804 = vmatprep.mubr.msk.f32.mxu1 %vm5452_vm1, %v5451_v28 }
 0xe0d   :  { %v1637_v44 = vpop.f32.mrb[20].mxu1 }
 0xe0e   :  { %v1638_v45 = vadd.f32 %v6032_v43, %v1637_v44  ;;  %v4778_v46 = vpop.f32.mrb[21].mxu1  ;;  %v4270_v44 = vld [vmem:[%s6501_s8 + $0xd8] sm:$0xff] }
 0xe0f   :  { %v4271_v46 = vld [vmem:[%s6501_s8 + $0xe0] sm:$0xff] }
 0xe10   :  { %v1641_v50 = vmax.f32 %v1638_v45, 0.0  ;;  %v6079_v45 = vpack.c.bf16 %v4270_v44, %v4269_v40 }
 0xe12   :  { %4788 = vmatmul.mubr.msk.f32.vlgmr.msra.gmra.mrb[12].mxu0 %vm717_vm4, %v1641_v50 }
 0xe13   :  { %4791 = vmatpush3.xpose.msk.msra.mxu0 %vm372_vm2, %v1771_v49  ;;  %4792 = vmatprep.mubr.msk.f32.mxu0 %vm5452_vm1, %v5451_v28  ;;  %v4272_v49 = vld [vmem:[%s6501_s8 + $0xe8] sm:$0xff] }
 0xe14   :  { %4795 = vmatprep.subr.mxu0 %v5451_v28  ;;  %v6089_v50 = vpack.c.bf16 %v4272_v49, %v4271_v46 }
 0xe16   :  { %4793 = vmatmul.mubr.msk.f32.vlgmr.msra.gmra.mrb[14].mxu0 %vm372_vm2, %v1769_v51 }
 0xe17   :  { %4797 = vmatprep.mubr.msk.f32.mxu0 %vm5452_vm1, %v5451_v28 }
 0xee5   :  { %v6043_v53 = vpop.f32.mrb[12].mxu0 }
 0xee6   :  { %v4789_v30 = vpop.f32.mrb[13].mxu0 }
 0xee9   :  { %v1842_v32 = vpop.f32.mrb[14].mxu0 }
 0xeea   :  { %v4794_v54 = vpop.f32.mrb[15].mxu0  ;;  %v1846_v58 = vsel %vm449_vm3, %v1842_v32, -inf }
 0xeeb   :  { %1847 = vmax.xlane.f32.xlu0 %v1846_v58  ;;  %v4274_v54 = vld [vmem:[%s6501_s8 + $0xf8] sm:$0xff] }
 0xf01   :  { %1859 = vrot.lane.b32.xlu0 %v5707_v56, %s5456_s0  ;;  %v4263_v56 = vld [vmem:[%s6499_s6 + $0x38] sm:$0xff] }
 0xf02   :  { %v6056_v15 = vpack.c.bf16 %v4263_v56, %v4262_v12  ;;  %v6130_v12 = vld [vmem:[%s6500_s7 + $0x3] ss:$0 sm:$0xff] }
 0xf04   :  { %5138 = vmatpush3.bf16.msra.mxu1 %v6056_v15 }
 0xf05   :  { %5151 = vmatprep.subr.bf16.mxu1 %v5454_v57 }
 0xf78   :  { %v1848_v60 = vpop.xlane.xlu0 %1847 }
 0xf79   :  { %v1849_v63 = vsub.f32 %v1842_v32, %v1848_v60  ;;  %v4273_v32 = vld [vmem:[%s6501_s8 + $0xf0] sm:$0xff]  ;;  %v4278_v60 = vld [vmem:[%s6503_s10 + $0x60] sm:$0xff] }
 0xf7a   :  { %v6103_v58 = vpack.c.bf16 %v4274_v54, %v4273_v32 }
 0xf7b   :  { %v1850_v3 = vmul.f32 1.442695, %v1849_v63  ;;  %v4279_v63 = vld [vmem:[%s6503_s10 + $0x68] sm:$0xff] }
 0xf7c   :  { %v1860_v5 = vpop.permute.xlu0 %1859 }
 0xf7d   :  { %5266 = vpow2.f32 %v1850_v3  ;;  %4796 = vmatpush3.msra.mxu0 %v1860_v5  ;;  %v4280_v3 = vld [vmem:[%s6503_s10 + $0x70] sm:$0xff]  ;;  %v6116_v5 = vpack.c.bf16 %v4279_v63, %v4278_v60 }
 0xf7e   :  { %5139 = vmatprep.subr.bf16.mxu0 %v5454_v57 }
 0xf87   :  { %v5267_v6 = vpop.eup %5266 }
 0xf88   :  { %v1852_v11 = vsel %vm449_vm3, %v5267_v6, 0.0 }
 0xf89   :  { %1853 = vadd.xlane.f32.xlu1 %v1852_v11 }
0x1016   :  { %v1854_v21 = vpop.xlane.xlu1 %1853 }
0x1017   :  { %5268 = vrcp.f32 %v1854_v21 }
0x1021   :  { %v5269_v27 = vpop.eup %5268 }
0x1022   :  { %v1856_v33 = vmul.f32 %v5269_v27, %v5267_v6  ;;  %v4281_v6 = vld [vmem:[%s6503_s10 + $0x78] sm:$0xff] }
0x1023   :  { %v6122_v11 = vpack.c.bf16 %v4281_v6, %v4280_v3 }
0x1024   :  { %1858 = vst.msk [vmem:[#allocation9 + $0x18] sm:$0xff] %vm449_vm3, %v1856_v33  ;;  %4798 = vmatmul.mubr.msk.f32.vlgmr.msra.gmra.mrb[16].mxu0 %vm449_vm3, %v1856_v33  ;;  %v6144_v33 = vld [vmem:[%s6502_s9 + $0x3] ss:$0 sm:$0xff] }
0x1025   :  { %4823 = vmatprep.mubr.msk.f32.mxu0 %vm5452_vm1, %v5451_v28  ;;  %5141 = vmatpush3.bf16.msra.mxu0 %v6073_v42 }
0x1026   :  { %5142 = vmatprep.subr.bf16.mxu0 %v5454_v57 }
0x1029   :  { %5144 = vmatpush3.bf16.msra.mxu0 %v6079_v45 }
0x102a   :  { %5145 = vmatprep.subr.bf16.mxu0 %v5454_v57 }
0x102d   :  { %5147 = vmatpush3.bf16.msra.mxu0 %v6089_v50 }
0x102e   :  { %5148 = vmatprep.subr.bf16.mxu0 %v5454_v57 }
0x1031   :  { %5150 = vmatpush3.bf16.msra.mxu0 %v6103_v58 }
0x1032   :  { %5157 = vmatprep.subr.bf16.mxu0 %v5454_v57 }
0x10f7   :  { %v1931_v51 = vpop.f32.mrb[16].mxu0 }
0x10f8   :  { %v4799_v30 = vpop.f32.mrb[17].mxu0  ;;  %4805 = vmatmul.mubr.msk.f32.vlgmr.msra.gmra.mrb[22].mxu1 %vm372_vm2, %v1931_v51 }
0x10f9   :  { %4834 = vmatprep.mubr.msk.f32.mxu1 %vm5452_vm1, %v5451_v28  ;;  %5153 = vmatpush3.bf16.msra.mxu1 %v6116_v5 }
0x10fa   :  { %5154 = vmatprep.subr.bf16.mxu1 %v5454_v57 }
0x10fd   :  { %5156 = vmatpush3.bf16.msra.mxu1 %v6122_v11 }
0x10fe   :  { %4837 = vmatprep.subr.mxu1 %v5451_v28 }
0x11cb   :  { %v2015_v56 = vpop.f32.mrb[22].mxu1 }
0x11cc   :  { %v6133_v21 = vadd.f32 %v6130_v12, %v2015_v56  ;;  %v4806_v27 = vpop.f32.mrb[23].mxu1 }
0x11ce   :  { %4824 = vmatmul.mubr.msk.f32.vlgmr.msra.gmra.mrb[18].mxu0 %vm112_vm0, %v6133_v21 }
0x11cf   :  { %5159 = vmatpush3.bf16.msra.mxu0 %v5718_v62  ;;  %4851 = vmatprep.mubr.msk.f32.mxu0 %vm5452_vm1, %v5451_v28 }
0x11d0   :  { %5172 = vmatprep.subr.bf16.mxu0 %v5454_v57 }
0x12a1   :  { %v2105_v34 = vpop.f32.mrb[18].mxu0 }
0x12a2   :  { %v2106_v36 = vadd.f32 %v6144_v33, %v2105_v34  ;;  %v4825_v40 = vpop.f32.mrb[19].mxu0 }
0x12a4   :  { %v2109_v44 = vmax.f32 %v2106_v36, 0.0 }
0x12a6   :  { %4835 = vmatmul.mubr.msk.f32.vlgmr.msra.gmra.mrb[24].mxu1 %vm717_vm4, %v2109_v44 }
0x12a7   :  { %4838 = vmatpush3.xpose.msk.msra.mxu1 %vm372_vm2, %v5656_v29  ;;  %4839 = vmatprep.mubr.msk.f32.mxu1 %vm5452_vm1, %v5451_v28 }
0x12a8   :  { %4842 = vmatprep.subr.mxu1 %v5451_v28 }
0x12aa   :  { %4840 = vmatmul.mubr.msk.f32.vlgmr.msra.gmra.mrb[26].mxu1 %vm372_vm2, %v5660_v31 }
0x12ab   :  { %4843 = vmatpush3.msra.mxu1 %v5705_v55  ;;  %4844 = vmatprep.mubr.msk.f32.mxu1 %vm5452_vm1, %v5451_v28 }
0x12ac   :  { %5160 = vmatprep.subr.bf16.mxu1 %v5454_v57 }
0x1379   :  { %v6159_v62 = vpop.f32.mrb[24].mxu1 }
0x137a   :  { %v4836_v46 = vpop.f32.mrb[25].mxu1 }
0x137d   :  { %v2346_v49 = vpop.f32.mrb[26].mxu1 }
0x137e   :  { %v4841_v51 = vpop.f32.mrb[27].mxu1  ;;  %v2350_v30 = vsel %vm449_vm3, %v2346_v49, -inf }
0x137f   :  { %2351 = vmax.xlane.f32.xlu0 %v2350_v30 }
0x1395   :  { %2729 = vrot.lane.b32.xlu0 %v5660_v31, %s5453_s3 }
0x140c   :  { %v2352_v32 = vpop.xlane.xlu0 %2351 }
0x140d   :  { %v2353_v54 = vsub.f32 %v2346_v49, %v2352_v32 }
0x140f   :  { %v2354_v60 = vmul.f32 1.442695, %v2353_v54 }
0x1411   :  { %5270 = vpow2.f32 %v2354_v60 }
0x141b   :  { %v5271_v63 = vpop.eup %5270 }
0x141c   :  { %v2356_v3 = vsel %vm449_vm3, %v5271_v63, 0.0 }
0x141d   :  { %2357 = vadd.xlane.f32.xlu1 %v2356_v3 }
0x142e   :  { %2731 = vrot.lane.b32.xlu1 %v5656_v29, %s5453_s3 }
0x14aa   :  { %v2358_v6 = vpop.xlane.xlu1 %2357 }
0x14ab   :  { %5272 = vrcp.f32 %v2358_v6 }
0x14ae   :  { %v2732_v44 = vpop.permute.xlu1 %2731 }
0x14b5   :  { %v5273_v56 = vpop.eup %5272 }
0x14b6   :  { %v2360_v27 = vmul.f32 %v5273_v56, %v5271_v63 }
0x14b8   :  { %2362 = vst.msk [vmem:[#allocation9 + $0x20] sm:$0xff] %vm449_vm3, %v2360_v27  ;;  %4845 = vmatmul.mubr.msk.f32.vlgmr.msra.gmra.mrb[28].mxu1 %vm449_vm3, %v2360_v27 }
0x14b9   :  { %5162 = vmatpush3.bf16.msra.mxu1 %v5732_v2  ;;  %4870 = vmatprep.mubr.msk.f32.mxu1 %vm5452_vm1, %v5451_v28 }
0x14ba   :  { %5163 = vmatprep.subr.bf16.mxu1 %v5454_v57 }
0x14bd   :  { %5165 = vmatpush3.bf16.msra.mxu1 %v5742_v7 }
0x14be   :  { %5166 = vmatprep.subr.bf16.mxu1 %v5454_v57 }
0x14c1   :  { %5168 = vmatpush3.bf16.msra.mxu1 %v5754_v10 }
0x14c2   :  { %5169 = vmatprep.subr.bf16.mxu1 %v5454_v57 }
0x14c5   :  { %5171 = vmatpush3.bf16.msra.mxu1 %v5764_v13 }
0x14c6   :  { %5178 = vmatprep.subr.bf16.mxu1 %v5454_v57 }
0x158b   :  { %v2432_v34 = vpop.f32.mrb[28].mxu1 }
0x158c   :  { %v4846_v36 = vpop.f32.mrb[29].mxu1  ;;  %4852 = vmatmul.mubr.msk.f32.vlgmr.msra.gmra.mrb[20].mxu0 %vm372_vm2, %v2432_v34 }
0x158d   :  { %5174 = vmatpush3.bf16.msra.mxu0 %v5775_v16  ;;  %4881 = vmatprep.mubr.msk.f32.mxu0 %vm5452_vm1, %v5451_v28 }
0x158e   :  { %5175 = vmatprep.subr.bf16.mxu0 %v5454_v57 }
0x1591   :  { %5177 = vmatpush3.bf16.msra.mxu0 %v5802_v25 }
0x1592   :  { %4884 = vmatprep.subr.mxu0 %v5451_v28 }
0x165f   :  { %v2514_v2 = vpop.f32.mrb[20].mxu0 }
0x1660   :  { %v6187_v7 = vadd.f32 %v5782_v17, %v2514_v2  ;;  %v4853_v10 = vpop.f32.mrb[21].mxu0  ;;  %v2730_v17 = vpop.permute.xlu0 %2729 }
0x1662   :  { %4871 = vmatmul.mubr.msk.f32.vlgmr.msra.gmra.mrb[30].mxu1 %vm112_vm0, %v6187_v7 }
0x1663   :  { %5180 = vmatpush3.bf16.msra.mxu1 %v5830_v47  ;;  %4898 = vmatprep.mubr.msk.f32.mxu1 %vm5452_vm1, %v5451_v28 }
0x1664   :  { %5193 = vmatprep.subr.bf16.mxu1 %v5454_v57 }
0x1735   :  { %v2602_v13 = vpop.f32.mrb[30].mxu1 }
0x1736   :  { %v2603_v16 = vadd.f32 %v5809_v26, %v2602_v13  ;;  %v4872_v25 = vpop.f32.mrb[31].mxu1 }
0x1738   :  { %v2606_v40 = vmax.f32 %v2603_v16, 0.0 }
0x173a   :  { %4882 = vmatmul.mubr.msk.f32.vlgmr.msra.gmra.mrb[22].mxu0 %vm717_vm4, %v2606_v40 }
0x173b   :  { %4885 = vmatpush3.xpose.msk.msra.mxu0 %vm372_vm2, %v2732_v44  ;;  %4886 = vmatprep.mubr.msk.f32.mxu0 %vm5452_vm1, %v5451_v28 }
0x173c   :  { %4889 = vmatprep.subr.mxu0 %v5451_v28 }
0x173e   :  { %4887 = vmatmul.mubr.msk.f32.vlgmr.msra.gmra.mrb[24].mxu0 %vm372_vm2, %v2730_v17 }
0x173f   :  { %4891 = vmatprep.mubr.msk.f32.mxu0 %vm5452_vm1, %v5451_v28 }
0x180d   :  { %v6204_v47 = vpop.f32.mrb[22].mxu0 }
0x180e   :  { %v4883_v26 = vpop.f32.mrb[23].mxu0 }
0x1811   :  { %v2803_v46 = vpop.f32.mrb[24].mxu0 }
0x1812   :  { %v4888_v49 = vpop.f32.mrb[25].mxu0  ;;  %v2807_v51 = vsel %vm449_vm3, %v2803_v46, -inf }
0x1813   :  { %2808 = vmax.xlane.f32.xlu1 %v2807_v51 }
0x1824   :  { %2821 = vrot.lane.b32.xlu1 %v5705_v55, %s5453_s3  ;;  %s5457_s3 = smov [#allocation9]  }
0x1828   :  { %3190 = vrot.lane.b32.xlu1 %v5660_v31, %s5455_s25 }
0x18a0   :  { %v2809_v30 = vpop.xlane.xlu1 %2808 }
0x18a1   :  { %v2810_v32 = vsub.f32 %v2803_v46, %v2809_v30 }
0x18a3   :  { %v2811_v54 = vmul.f32 1.442695, %v2810_v32 }
0x18a4   :  { %v2822_v60 = vpop.permute.xlu1 %2821 }
0x18a5   :  { %5274 = vpow2.f32 %v2811_v54  ;;  %4890 = vmatpush3.msra.mxu0 %v2822_v60 }
0x18a6   :  { %5181 = vmatprep.subr.bf16.mxu0 %v5454_v57 }
0x18af   :  { %v5275_v63 = vpop.eup %5274 }
0x18b0   :  { %v2813_v3 = vsel %vm449_vm3, %v5275_v63, 0.0 }
0x18b1   :  { %2814 = vadd.xlane.f32.xlu0 %v2813_v3 }
0x18c7   :  { %3192 = vrot.lane.b32.xlu0 %v5656_v29, %s5455_s25 }
0x193e   :  { %v2815_v6 = vpop.xlane.xlu0 %2814 }
0x193f   :  { %5276 = vrcp.f32 %v2815_v6 }
0x1942   :  { %v3193_v10 = vpop.permute.xlu0 %3192 }
0x1949   :  { %v5277_v56 = vpop.eup %5276 }
0x194a   :  { %v2817_v27 = vmul.f32 %v5277_v56, %v5275_v63  ;;  %v4223_v56 = vld [vmem:[%s6504_s11 + $0x1] ss:$0 sm:$0xff] }
0x194c   :  { %2819 = vst.msk [vmem:[#allocation9 + $0x28] sm:$0xff] %vm449_vm3, %v2817_v27  ;;  %4892 = vmatmul.mubr.msk.f32.vlgmr.msra.gmra.mrb[26].mxu0 %vm449_vm3, %v2817_v27 }
0x194d   :  { %5183 = vmatpush3.bf16.msra.mxu0 %v5849_v59  ;;  %4917 = vmatprep.mubr.msk.f32.mxu0 %vm5452_vm1, %v5451_v28 }
0x194e   :  { %5184 = vmatprep.subr.bf16.mxu0 %v5454_v57 }
0x1951   :  { %5186 = vmatpush3.bf16.msra.mxu0 %v5855_v61 }
0x1952   :  { %5187 = vmatprep.subr.bf16.mxu0 %v5454_v57 }
0x1955   :  { %5189 = vmatpush3.bf16.msra.mxu0 %v5865_v1 }
0x1956   :  { %5190 = vmatprep.subr.bf16.mxu0 %v5454_v57 }
0x1959   :  { %5192 = vmatpush3.bf16.msra.mxu0 %v5879_v8 }
0x195a   :  { %5199 = vmatprep.subr.bf16.mxu0 %v5454_v57 }
0x1a1f   :  { %v2893_v34 = vpop.f32.mrb[26].mxu0 }
0x1a20   :  { %v4893_v36 = vpop.f32.mrb[27].mxu0  ;;  %4899 = vmatmul.mubr.msk.f32.vlgmr.msra.gmra.mrb[32].mxu1 %vm372_vm2, %v2893_v34 }
0x1a21   :  { %5195 = vmatpush3.bf16.msra.mxu1 %v5892_v14  ;;  %4928 = vmatprep.mubr.msk.f32.mxu1 %vm5452_vm1, %v5451_v28 }
0x1a22   :  { %5196 = vmatprep.subr.bf16.mxu1 %v5454_v57 }
0x1a25   :  { %5198 = vmatpush3.bf16.msra.mxu1 %v5898_v18 }
0x1a26   :  { %4931 = vmatprep.subr.mxu1 %v5451_v28 }
0x1af3   :  { %v2975_v59 = vpop.f32.mrb[32].mxu1 }
0x1af4   :  { %v6235_v61 = vadd.f32 %v5906_v19, %v2975_v59  ;;  %v4900_v1 = vpop.f32.mrb[33].mxu1  ;;  %v3191_v19 = vpop.permute.xlu1 %3190 }
0x1af6   :  { %4918 = vmatmul.mubr.msk.f32.vlgmr.msra.gmra.mrb[28].mxu0 %vm112_vm0, %v6235_v61 }
0x1af7   :  { %5201 = vmatpush3.bf16.msra.mxu0 %v5945_v52  ;;  %4945 = vmatprep.mubr.msk.f32.mxu0 %vm5452_vm1, %v5451_v28 }
0x1af8   :  { %5214 = vmatprep.subr.bf16.mxu0 %v5454_v57 }
0x1bc9   :  { %v3063_v8 = vpop.f32.mrb[28].mxu0 }
0x1bca   :  { %v3064_v14 = vadd.f32 %v5918_v24, %v3063_v8  ;;  %v4919_v18 = vpop.f32.mrb[29].mxu0 }
0x1bcc   :  { %v3067_v2 = vmax.f32 %v3064_v14, 0.0 }
0x1bce   :  { %4929 = vmatmul.mubr.msk.f32.vlgmr.msra.gmra.mrb[34].mxu1 %vm717_vm4, %v3067_v2  ;;  %v1257_v2 = vadd.f32 %v4223_v56, %v5929_v38 }
0x1bcf   :  { %4932 = vmatpush3.xpose.msk.msra.mxu1 %vm372_vm2, %v3193_v10  ;;  %4933 = vmatprep.mubr.msk.f32.mxu1 %vm5452_vm1, %v5451_v28 }
0x1bd0   :  { %4936 = vmatprep.subr.mxu1 %v5451_v28 }
0x1bd2   :  { %4934 = vmatmul.mubr.msk.f32.vlgmr.msra.gmra.mrb[36].mxu1 %vm372_vm2, %v3191_v19 }
0x1bd3   :  { %4938 = vmatprep.mubr.msk.f32.mxu1 %vm5452_vm1, %v5451_v28 }
0x1ca1   :  { %v6252_v52 = vpop.f32.mrb[34].mxu1 }
0x1ca2   :  { %v4930_v24 = vpop.f32.mrb[35].mxu1  ;;  %v3149_v27 = vadd.f32 %v4223_v56, %v6252_v52 }
0x1ca4   :  { %v6305_v34 = vadd.f32 %v3149_v27, %v6235_v61 }
0x1ca5   :  { %v3264_v13 = vpop.f32.mrb[36].mxu1 }
0x1ca6   :  { %v4935_v16 = vpop.f32.mrb[37].mxu1  ;;  %v3268_v25 = vsel %vm449_vm3, %v3264_v13, -inf  ;;  %v3155_v36 = vsel %vm112_vm0, %v6305_v34, 0.0 }
0x1ca7   :  { %3269 = vmax.xlane.f32.xlu1 %v3268_v25 }
0x1cb8   :  { %3281 = vrot.lane.b32.xlu1 %v5705_v55, %s5455_s25  ;;  %s4165_s25 = sshll.u32 %s5457_s3, 4  ;;  %s4166_s25 = int_to_ptr.vmem [resolvable:$true] %s4165_s25 }
0x1cb9   :  { %p5399_p11 = scmp.lt.s32.totalorder %s4166_s25, %s4166_s25 }
0x1cbc   :  { %3650 = vrot.lane.b32.xlu1 %v5660_v31, %s5456_s0 }
0x1d34   :  { %v3270_v40 = vpop.xlane.xlu1 %3269 }
0x1d35   :  { %v3271_v44 = vsub.f32 %v3264_v13, %v3270_v40  ;;  %v6323_v13 = vadd.f32 %v1257_v2, %v5909_v22  ;;  %v4283_v40 = vld [vmem:[%s6504_s11 + $0x3] ss:$0 sm:$0xff] }
0x1d37   :  { %v3272_v17 = vmul.f32 1.442695, %v3271_v44 }
0x1d38   :  { %v3282_v26 = vpop.permute.xlu1 %3281 }
0x1d39   :  { %5278 = vpow2.f32 %v3272_v17  ;;  %4937 = vmatpush3.msra.mxu1 %v3282_v26 }
0x1d3a   :  { %5202 = vmatprep.subr.bf16.mxu1 %v5454_v57 }
0x1d43   :  { %v5279_v46 = vpop.eup %5278 }
0x1d44   :  { %v3274_v49 = vsel %vm449_vm3, %v5279_v46, 0.0 }
0x1d45   :  { %3275 = vadd.xlane.f32.xlu0 %v3274_v49 }
0x1d5b   :  { %3652 = vrot.lane.b32.xlu0 %v5656_v29, %s5456_s0 }
0x1dd2   :  { %v3276_v51 = vpop.xlane.xlu0 %3275 }
0x1dd3   :  { %5280 = vrcp.f32 %v3276_v51 }
0x1dd6   :  { %v3653_v60 = vpop.permute.xlu0 %3652 }
0x1ddd   :  { %v5281_v30 = vpop.eup %5280 }
0x1dde   :  { %v3278_v32 = vmul.f32 %v5281_v30, %v5279_v46 }
0x1de0   :  { %3280 = vst.msk [vmem:[#allocation9 + $0x30] sm:$0xff] %vm449_vm3, %v3278_v32  ;;  %4939 = vmatmul.mubr.msk.f32.vlgmr.msra.gmra.mrb[38].mxu1 %vm449_vm3, %v3278_v32 }
0x1de1   :  { %5204 = vmatpush3.bf16.msra.mxu1 %v5963_v0  ;;  %4964 = vmatprep.mubr.msk.f32.mxu1 %vm5452_vm1, %v5451_v28 }
0x1de2   :  { %5205 = vmatprep.subr.bf16.mxu1 %v5454_v57 }
0x1de5   :  { %5207 = vmatpush3.bf16.msra.mxu1 %v5969_v4 }
0x1de6   :  { %5208 = vmatprep.subr.bf16.mxu1 %v5454_v57 }
0x1de9   :  { %5210 = vmatpush3.bf16.msra.mxu1 %v5979_v9 }
0x1dea   :  { %5211 = vmatprep.subr.bf16.mxu1 %v5454_v57 }
0x1ded   :  { %5213 = vmatpush3.bf16.msra.mxu1 %v5993_v23 }
0x1dee   :  { %5220 = vmatprep.subr.bf16.mxu1 %v5454_v57 }
0x1eb3   :  { %v3353_v29 = vpop.f32.mrb[38].mxu1 }
0x1eb4   :  { %v4940_v31 = vpop.f32.mrb[39].mxu1  ;;  %4946 = vmatmul.mubr.msk.f32.vlgmr.msra.gmra.mrb[30].mxu0 %vm372_vm2, %v3353_v29 }
0x1eb5   :  { %5216 = vmatpush3.bf16.msra.mxu0 %v6006_v35  ;;  %4975 = vmatprep.mubr.msk.f32.mxu0 %vm5452_vm1, %v5451_v28 }
0x1eb6   :  { %5217 = vmatprep.subr.bf16.mxu0 %v5454_v57 }
0x1eb9   :  { %5219 = vmatpush3.bf16.msra.mxu0 %v6012_v37 }
0x1eba   :  { %4978 = vmatprep.subr.mxu0 %v5451_v28 }
0x1f87   :  { %v3435_v0 = vpop.f32.mrb[30].mxu0 }
0x1f88   :  { %v3436_v4 = vadd.f32 %v6020_v39, %v3435_v0  ;;  %v4947_v9 = vpop.f32.mrb[31].mxu0  ;;  %v3651_v39 = vpop.permute.xlu1 %3650 }
0x1f8a   :  { %4965 = vmatmul.mubr.msk.f32.vlgmr.msra.gmra.mrb[40].mxu1 %vm112_vm0, %v3436_v4 }
0x1f8b   :  { %5222 = vmatpush3.bf16.msra.mxu1 %v6056_v15  ;;  %4992 = vmatprep.mubr.msk.f32.mxu1 %vm5452_vm1, %v5451_v28 }
0x1f8c   :  { %5235 = vmatprep.subr.bf16.mxu1 %v5454_v57 }
0x205d   :  { %v3523_v23 = vpop.f32.mrb[40].mxu1 }
0x205e   :  { %v3524_v35 = vadd.f32 %v6032_v43, %v3523_v23  ;;  %v4966_v54 = vpop.f32.mrb[41].mxu1 }
0x2060   :  { %v3527_v37 = vmax.f32 %v3524_v35, 0.0 }
0x2062   :  { %4976 = vmatmul.mubr.msk.f32.vlgmr.msra.gmra.mrb[32].mxu0 %vm717_vm4, %v3527_v37 }
0x2063   :  { %4979 = vmatpush3.xpose.msk.msra.mxu0 %vm372_vm2, %v3653_v60  ;;  %4980 = vmatprep.mubr.msk.f32.mxu0 %vm5452_vm1, %v5451_v28 }
0x2064   :  { %4983 = vmatprep.subr.mxu0 %v5451_v28 }
0x2066   :  { %4981 = vmatmul.mubr.msk.f32.vlgmr.msra.gmra.mrb[34].mxu0 %vm372_vm2, %v3651_v39 }
0x2067   :  { %4985 = vmatprep.mubr.msk.f32.mxu0 %vm5452_vm1, %v5451_v28 }
0x2135   :  { %v3608_v15 = vpop.f32.mrb[32].mxu0 }
0x2136   :  { %v4977_v43 = vpop.f32.mrb[33].mxu0 }
0x2139   :  { %v3724_v63 = vpop.f32.mrb[34].mxu0 }
0x213a   :  { %v4982_v3 = vpop.f32.mrb[35].mxu0  ;;  %v3728_v6 = vsel %vm449_vm3, %v3724_v63, -inf }
0x213b   :  { %3729 = vmax.xlane.f32.xlu1 %v3728_v6 }
0x214c   :  { %3741 = vrot.lane.b32.xlu1 %v5705_v55, %s5456_s0  ;;  %v4195_v55 = vld [vmem:[%s6504_s11] ss:$0 sm:$0xff]  ;;  %s5394_s0 = scalar_lea.vmem %s4166_s25, 1024 }
0x214d   :  { %v788_v18 = vadd.f32 %v4195_v55, %v5834_v48  ;;  %v2688_v52 = vadd.f32 %v4195_v55, %v6204_v47  ;;  %v4253_v48 = vld [vmem:[%s6504_s11 + $0x2] ss:$0 sm:$0xff]  ;;  %p5395_p10 = scmp.ne.s32.totalorder %s4166_s25, %s5394_s0  ;;  %p5400_p12 = scmp.lt.s32.totalorder %s5394_s0, %s5394_s0 }
0x214e   :  { %v1725_v38 = vadd.f32 %v4253_v48, %v6043_v53  ;;  %v3609_v47 = vadd.f32 %v4253_v48, %v3608_v15  ;;  %v2193_v53 = vadd.f32 %v4283_v40, %v6159_v62 }
0x214f   :  { %v6317_v19 = vadd.f32 %v788_v18, %v5785_v20  ;;  %v1265_v20 = vsel %vm112_vm0, %v6323_v13, 0.0  ;;  %v6332_v16 = vadd.f32 %v2688_v52, %v6187_v7  ;;  %p5401_p13 = por %p5400_p12, %p5399_p11 }
0x2150   :  { %v6337_v22 = vadd.f32 %v1725_v38, %v6023_v41  ;;  %v3612_v7 = vadd.f32 %v3609_v47, %v3436_v4  ;;  %v6347_v26 = vadd.f32 %v2193_v53, %v6133_v21 }
0x2151   :  { %v794_v24 = vsel %vm112_vm0, %v6317_v19, 0.0  ;;  %v2694_v25 = vsel %vm112_vm0, %v6332_v16, 0.0  ;;  %p5402_p0 = pnand %p5401_p13, %p5395_p10 }
0x2152   :  { %v1733_v44 = vsel %vm112_vm0, %v6337_v22, 0.0  ;;  %v3615_v17 = vsel %vm112_vm0, %v3612_v7, 0.0  ;;  %v2201_v41 = vsel %vm112_vm0, %v6347_v26, 0.0 }
0x2170   :  { %3156 = vadd.xlane.f32.xlu1 %v3155_v36 }
0x21c8   :  { %v3730_v59 = vpop.xlane.xlu1 %3729 }
0x21c9   :  { %v3731_v1 = vsub.f32 %v3724_v63, %v3730_v59 }
0x21cb   :  { %v3732_v8 = vmul.f32 1.442695, %v3731_v1 }
0x21cc   :  { %v3742_v14 = vpop.permute.xlu1 %3741 }
0x21cd   :  { %5282 = vpow2.f32 %v3732_v8  ;;  %4984 = vmatpush3.msra.mxu0 %v3742_v14 }
0x21ce   :  { %5223 = vmatprep.subr.bf16.mxu0 %v5454_v57 }
0x21d7   :  { %v5283_v61 = vpop.eup %5282 }
0x21d8   :  { %v3734_v10 = vsel %vm449_vm3, %v5283_v61, 0.0 }
0x21d9   :  { %3735 = vadd.xlane.f32.xlu0 %v3734_v10 }
0x21dd   :  { %795 = vadd.xlane.f32.xlu0 %v794_v24 }
0x21e1   :  { %1266 = vadd.xlane.f32.xlu0 %v1265_v20 }
0x21e5   :  { %2695 = vadd.xlane.f32.xlu0 %v2694_v25 }
0x21e9   :  { %1734 = vadd.xlane.f32.xlu0 %v1733_v44 }
0x21ed   :  { %3616 = vadd.xlane.f32.xlu0 %v3615_v17 }
0x21f1   :  { %2202 = vadd.xlane.f32.xlu0 %v2201_v41 }
0x21fd   :  { %v3157_v6 = vpop.xlane.xlu1 %3156 }
0x21fe   :  { %v3158_v56 = vmul.f32 0.015625, %v3157_v6 }
0x2200   :  { %v6393_v1 = vsub.f32 %v6305_v34, %v3158_v56 }
0x2266   :  { %v3736_v46 = vpop.xlane.xlu0 %3735 }
0x2267   :  { %5284 = vrcp.f32 %v3736_v46 }
0x226a   :  { %v796_v49 = vpop.xlane.xlu0 %795 }
0x226e   :  { %v1267_v51 = vpop.xlane.xlu0 %1266 }
0x2271   :  { %v5285_v62 = vpop.eup %5284 }
0x2272   :  { %v3738_v30 = vmul.f32 %v5285_v62, %v5283_v61  ;;  %v2696_v32 = vpop.xlane.xlu0 %2695 }
0x2273   :  { %v2697_v63 = vmul.f32 0.015625, %v2696_v32 }
0x2274   :  { %3740 = vst.msk [vmem:[#allocation9 + $0x38] sm:$0xff] %vm449_vm3, %v3738_v30  ;;  %4986 = vmatmul.mubr.msk.f32.vlgmr.msra.gmra.mrb[36].mxu0 %vm449_vm3, %v3738_v30 }
0x2275   :  { %5225 = vmatpush3.bf16.msra.mxu0 %v6073_v42  ;;  %5011 = vmatprep.mubr.msk.f32.mxu0 %vm5452_vm1, %v5451_v28  ;;  %v6387_v27 = vsub.f32 %v6332_v16, %v2697_v63 }
0x2276   :  { %v1735_v21 = vpop.xlane.xlu0 %1734  ;;  %5226 = vmatprep.subr.bf16.mxu0 %v5454_v57 }
0x2277   :  { %v1736_v8 = vmul.f32 0.015625, %v1735_v21  ;;  %v2699_v55 = vmul.f32 %v6387_v27, %v6387_v27 }
0x2279   :  { %5228 = vmatpush3.bf16.msra.mxu0 %v6079_v45  ;;  %v6399_v61 = vsub.f32 %v6337_v22, %v1736_v8  ;;  %v2700_v10 = vsel %vm112_vm0, %v2699_v55, 0.0 }
0x227a   :  { %v3617_v29 = vpop.xlane.xlu0 %3616  ;;  %5229 = vmatprep.subr.bf16.mxu0 %v5454_v57 }
0x227b   :  { %v3618_v31 = vmul.f32 0.015625, %v3617_v29  ;;  %v1738_v24 = vmul.f32 %v6399_v61, %v6399_v61 }
0x227d   :  { %v6359_v0 = vsub.f32 %v3612_v7, %v3618_v31  ;;  %5231 = vmatpush3.bf16.msra.mxu0 %v6089_v50 }
0x227e   :  { %5232 = vmatprep.subr.bf16.mxu0 %v5454_v57  ;;  %v2203_v18 = vpop.xlane.xlu0 %2202 }
0x227f   :  { %v3620_v42 = vmul.f32 %v6359_v0, %v6359_v0  ;;  %v2204_v2 = vmul.f32 0.015625, %v2203_v18 }
0x2281   :  { %v3621_v4 = vsel %vm112_vm0, %v3620_v42, 0.0  ;;  %5234 = vmatpush3.bf16.msra.mxu0 %v6103_v58  ;;  %v6405_v34 = vsub.f32 %v6347_v26, %v2204_v2 }
0x2282   :  { %3622 = vadd.xlane.f32.xlu1 %v3621_v4 }
0x2283   :  { %v2206_v48 = vmul.f32 %v6405_v34, %v6405_v34 }
0x2285   :  { %v2207_v38 = vsel %vm112_vm0, %v2206_v48, 0.0 }
0x2347   :  { %v3813_v9 = vpop.f32.mrb[36].mxu0 }
0x2348   :  { %v4987_v45 = vpop.f32.mrb[37].mxu0  ;;  %4993 = vmatmul.mubr.msk.f32.vlgmr.msra.gmra.mrb[42].mxu1 %vm372_vm2, %v3813_v9 }
0x2349   :  { %5237 = vmatpush3.bf16.msra.mxu1 %v6116_v5  ;;  %5022 = vmatprep.mubr.msk.f32.mxu1 %vm5452_vm1, %v5451_v28  ;;  %v798_v5 = vmul.f32 0.015625, %v796_v49 }
0x234a   :  { %5238 = vmatprep.subr.bf16.mxu1 %v5454_v57  ;;  %v1268_v57 = vmul.f32 0.015625, %v1267_v51 }
0x234b   :  { %v6378_v28 = vsub.f32 %v6317_v19, %v798_v5  ;;  %v3160_v19 = vmul.f32 %v6393_v1, %v6393_v1 }
0x234d   :  { %5240 = vmatpush3.bf16.msra.mxu1 %v6122_v11  ;;  %v3161_v52 = vsel %vm112_vm0, %v3160_v19, 0.0 }
0x241b   :  { %v3895_v50 = vpop.f32.mrb[42].mxu1 }
0x241c   :  { %v3896_v23 = vadd.f32 %v6130_v12, %v3895_v50  ;;  %v4994_v35 = vpop.f32.mrb[43].mxu1  ;;  %v6381_v12 = vsub.f32 %v6323_v13, %v1268_v57  ;;  %v1739_v13 = vsel %vm112_vm0, %v1738_v24, 0.0 }
0x241e   :  { %5012 = vmatmul.mubr.msk.f32.vlgmr.msra.gmra.mrb[38].mxu0 %vm112_vm0, %v3896_v23  ;;  %v1270_v59 = vmul.f32 %v6381_v12, %v6381_v12 }
0x2420   :  { %v1271_v14 = vsel %vm112_vm0, %v1270_v59, 0.0 }
0x24f1   :  { %v3983_v58 = vpop.f32.mrb[38].mxu0 }
0x24f2   :  { %v3984_v54 = vadd.f32 %v6144_v33, %v3983_v58  ;;  %v5013_v37 = vpop.f32.mrb[39].mxu0  ;;  %v800_v33 = vmul.f32 %v6378_v28, %v6378_v28 }
0x24f4   :  { %v3987_v60 = vmax.f32 %v3984_v54, 0.0  ;;  %v801_v36 = vsel %vm112_vm0, %v800_v33, 0.0 }
0x24f6   :  { %5023 = vmatmul.mubr.msk.f32.vlgmr.msra.gmra.mrb[44].mxu1 %vm717_vm4, %v3987_v60 }
0x25c9   :  { %v4068_v39 = vpop.f32.mrb[44].mxu1 }
0x25ca   :  { %v4069_v11 = vadd.f32 %v4283_v40, %v4068_v39  ;;  %v5024_v15 = vpop.f32.mrb[45].mxu1 }
0x25cc   :  { %v4072_v43 = vadd.f32 %v4069_v11, %v3896_v23 }
0x25ce   :  { %v4075_v3 = vsel %vm112_vm0, %v4072_v43, 0.0 }
0x25cf   :  { %4076 = vadd.xlane.f32.xlu0 %v4075_v3 }
0x25d3   :  { %802 = vadd.xlane.f32.xlu0 %v801_v36 }
0x25d7   :  { %1272 = vadd.xlane.f32.xlu0 %v1271_v14 }
0x25db   :  { %2701 = vadd.xlane.f32.xlu0 %v2700_v10 }
0x25df   :  { %3162 = vadd.xlane.f32.xlu0 %v3161_v52 }
0x25e3   :  { %1740 = vadd.xlane.f32.xlu0 %v1739_v13 }
0x25e7   :  { %2208 = vadd.xlane.f32.xlu0 %v2207_v38 }
0x265c   :  { %v4077_v20 = vpop.xlane.xlu0 %4076 }
0x265d   :  { %v4078_v16 = vmul.f32 0.015625, %v4077_v20  ;;  %v4197_v20 = vld [vmem:[%s6505_s12] ss:$0 sm:$0xff] }
0x265f   :  { %v6414_v47 = vsub.f32 %v4072_v43, %v4078_v16 }
0x2660   :  { %v803_v25 = vpop.xlane.xlu0 %802 }
0x2661   :  { %v805_v22 = vmul.f32 0.015873017, %v803_v25  ;;  %v4080_v40 = vmul.f32 %v6414_v47, %v6414_v47 }
0x2663   :  { %5286 = vrsqrt.f32 %v805_v22  ;;  %v4081_v53 = vsel %vm112_vm0, %v4080_v40, 0.0  ;;  %vm808_vm5 = vcmp.eq.f32.partialorder %v805_v22, inf  ;;  %v811_v45 = vand.u32 2147483648, %v805_v22  ;;  %v4198_v40 = vld [vmem:[%s6506_s13] ss:$0 sm:$0xff] }
0x2664   :  { %v1273_v44 = vpop.xlane.xlu0 %1272  ;;  %4082 = vadd.xlane.f32.xlu1 %v4081_v53  ;;  %vm810_vm8 = vcmp.eq.f32.partialorder %v805_v22, 0.0  ;;  %v4227_v53 = vld [vmem:[%s6505_s12 + $0x1] ss:$0 sm:$0xff] }
0x2665   :  { %v1274_v7 = vmul.f32 0.015873017, %v1273_v44 }
0x2667   :  { %5288 = vrsqrt.f32 %v1274_v7  ;;  %vm1277_vm6 = vcmp.eq.f32.partialorder %v1274_v7, inf  ;;  %v1280_v29 = vand.u32 2147483648, %v1274_v7  ;;  %vm1279_vm7 = vcmp.eq.f32.partialorder %v1274_v7, 0.0 }
0x2668   :  { %v2702_v17 = vpop.xlane.xlu0 %2701 }
0x2669   :  { %v2703_v26 = vmul.f32 0.015873017, %v2702_v17 }
0x266b   :  { %5290 = vrsqrt.f32 %v2703_v26  ;;  %vm2706_vm9 = vcmp.eq.f32.partialorder %v2703_v26, inf  ;;  %v2709_v37 = vand.u32 2147483648, %v2703_v26  ;;  %vm2708_vm10 = vcmp.eq.f32.partialorder %v2703_v26, 0.0 }
0x266c   :  { %v3163_v41 = vpop.xlane.xlu0 %3162 }
0x266d   :  { %v5287_v46 = vpop.eup %5286  ;;  %v3164_v49 = vmul.f32 0.015873017, %v3163_v41 }
0x266e   :  { %v807_v51 = vmul.f32 %v5287_v46, %v805_v22 }
0x266f   :  { %5292 = vrsqrt.f32 %v3164_v49  ;;  %vm3167_vm11 = vcmp.eq.f32.partialorder %v3164_v49, inf  ;;  %v3170_v43 = vand.u32 2147483648, %v3164_v49  ;;  %vm3169_vm12 = vcmp.eq.f32.partialorder %v3164_v49, 0.0 }
0x2670   :  { %v1741_v62 = vpop.xlane.xlu0 %1740  ;;  %v809_v31 = vsel %vm808_vm5, %v805_v22, %v807_v51 }
0x2671   :  { %v5289_v30 = vpop.eup %5288  ;;  %v1742_v32 = vmul.f32 0.015873017, %v1741_v62  ;;  %v812_v58 = vsel %vm810_vm8, %v811_v45, %v809_v31  ;;  %v4257_v62 = vld [vmem:[%s6505_s12 + $0x2] ss:$0 sm:$0xff] }
0x2672   :  { %v1276_v21 = vmul.f32 %v5289_v30, %v1274_v7  ;;  %v813_v57 = vadd.f32 1e-06, %v812_v58  ;;  %v5326_v58 = vld [vmem:[#allocation2] sm:$0xff] }
0x2673   :  { %5294 = vrsqrt.f32 %v1742_v32  ;;  %vm1745_vm13 = vcmp.eq.f32.partialorder %v1742_v32, inf  ;;  %v1748_v36 = vand.u32 2147483648, %v1742_v32  ;;  %vm1747_vm14 = vcmp.eq.f32.partialorder %v1742_v32, 0.0 }
0x2674   :  { %v1278_v42 = vsel %vm1277_vm6, %v1274_v7, %v1276_v21  ;;  %v2209_v4 = vpop.xlane.xlu0 %2208 }
0x2675   :  { %v5291_v9 = vpop.eup %5290  ;;  %v1281_v50 = vsel %vm1279_vm7, %v1280_v29, %v1278_v42  ;;  %v2210_v23 = vmul.f32 0.015873017, %v2209_v4  ;;  %v4287_v29 = vld [vmem:[%s6505_s12 + $0x3] ss:$0 sm:$0xff] }
0x2676   :  { %v2705_v35 = vmul.f32 %v5291_v9, %v2703_v26  ;;  %v1282_v54 = vadd.f32 1e-06, %v1281_v50  ;;  %v4288_v4 = vld [vmem:[%s6506_s13 + $0x3] ss:$0 sm:$0xff] }
0x2677   :  { %5296 = vrsqrt.f32 %v2210_v23  ;;  %vm2213_vm15 = vcmp.eq.f32.partialorder %v2210_v23, inf  ;;  %v2216_v2 = vand.u32 2147483648, %v2210_v23  ;;  %vm2215_vm1 = vcmp.eq.f32.partialorder %v2210_v23, 0.0 }
0x2678   :  { %v2707_v60 = vsel %vm2706_vm9, %v2703_v26, %v2705_v35  ;;  %5298 = vrcp.f32 %v1282_v54 }
0x2679   :  { %v5293_v5 = vpop.eup %5292  ;;  %v2710_v39 = vsel %vm2708_vm10, %v2709_v37, %v2707_v60  ;;  %v3623_v60 = vpop.xlane.xlu1 %3622 }
0x267a   :  { %v2711_v11 = vadd.f32 1e-06, %v2710_v39  ;;  %v3166_v15 = vmul.f32 %v5293_v5, %v3164_v49  ;;  %v3624_v5 = vmul.f32 0.015873017, %v3623_v60 }
0x267c   :  { %5300 = vrcp.f32 %v2711_v11  ;;  %v3168_v63 = vsel %vm3167_vm11, %v3164_v49, %v3166_v15  ;;  %vm3627_vm2 = vcmp.eq.f32.partialorder %v3624_v5, inf  ;;  %vm3629_vm3 = vcmp.eq.f32.partialorder %v3624_v5, 0.0 }
0x267d   :  { %v5295_v3 = vpop.eup %5294  ;;  %v3171_v33 = vsel %vm3169_vm12, %v3170_v43, %v3168_v63  ;;  %5302 = vrcp.f32 %v813_v57  ;;  %v3630_v43 = vand.u32 2147483648, %v3624_v5 }
0x267e   :  { %v3172_v6 = vadd.f32 1e-06, %v3171_v33  ;;  %v1744_v56 = vmul.f32 %v5295_v3, %v1742_v32 }
0x2680   :  { %5304 = vrcp.f32 %v3172_v6  ;;  %v1746_v59 = vsel %vm1745_vm13, %v1742_v32, %v1744_v56 }
0x2681   :  { %v5297_v8 = vpop.eup %5296  ;;  %v1749_v14 = vsel %vm1747_vm14, %v1748_v36, %v1746_v59 }
0x2682   :  { %v1750_v55 = vadd.f32 1e-06, %v1749_v14  ;;  %v2212_v18 = vmul.f32 %v5297_v8, %v2210_v23  ;;  %v5299_v19 = vpop.eup %5298 }
0x2683   :  { %v1284_v16 = vmul.f32 %v5299_v19, %v6381_v12  ;;  %v4228_v12 = vld [vmem:[%s6506_s13 + $0x1] ss:$0 sm:$0xff] }
0x2684   :  { %5306 = vrcp.f32 %v1750_v55  ;;  %v2214_v10 = vsel %vm2213_vm15, %v2210_v23, %v2212_v18 }
0x2685   :  { %v2217_v52 = vsel %vm2215_vm1, %v2216_v2, %v2214_v10  ;;  %v1291_v17 = vmul.f32 %v4227_v53, %v1284_v16 }
0x2686   :  { %v5301_v24 = vpop.eup %5300  ;;  %v2218_v13 = vadd.f32 1e-06, %v2217_v52 }
0x2687   :  { %v2713_v48 = vmul.f32 %v5301_v24, %v6387_v27  ;;  %v5303_v38 = vpop.eup %5302  ;;  %v1298_v30 = vadd.f32 %v4228_v12, %v1291_v17 }
0x2688   :  { %5308 = vrcp.f32 %v2218_v13  ;;  %v815_v27 = vmul.f32 %v5303_v38, %v6378_v28  ;;  %v5327_v38 = vld [vmem:[#allocation2 + $0x8] sm:$0xff] }
0x2689   :  { %v2720_v25 = vmul.f32 %v4197_v20, %v2713_v48  ;;  %5310 = vrsqrt.f32 %v3624_v5 }
0x268a   :  { %v5305_v22 = vpop.eup %5304  ;;  %v822_v46 = vmul.f32 %v4197_v20, %v815_v27 }
0x268b   :  { %v2727_v44 = vadd.f32 %v4198_v40, %v2720_v25  ;;  %v3174_v7 = vmul.f32 %v5305_v22, %v6393_v1  ;;  %v4258_v1 = vld [vmem:[%s6506_s13 + $0x2] ss:$0 sm:$0xff] }
0x268c   :  { %v829_v31 = vadd.f32 %v4198_v40, %v822_v46 }
0x268d   :  { %v3181_v26 = vmul.f32 %v4227_v53, %v3174_v7 }
0x268e   :  { %v5307_v41 = vpop.eup %5306  ;;  %v1299_v9 = vadd.f32 %v1298_v30, %v829_v31 }
0x268f   :  { %v1752_v49 = vmul.f32 %v5307_v41, %v6399_v61  ;;  %v3188_v51 = vadd.f32 %v4228_v12, %v3181_v26 }
0x2691   :  { %v1759_v28 = vmul.f32 %v4257_v62, %v1752_v49  ;;  %v3189_v32 = vadd.f32 %v3188_v51, %v2727_v44 }
0x2692   :  { %v5309_v21 = vpop.eup %5308 }
0x2693   :  { %v1766_v42 = vadd.f32 %v4258_v1, %v1759_v28  ;;  %v2220_v61 = vmul.f32 %v5309_v21, %v6405_v34  ;;  %v5311_v39 = vpop.eup %5310 }
0x2694   :  { %v3626_v57 = vmul.f32 %v5311_v39, %v3624_v5 }
0x2695   :  { %v2227_v45 = vmul.f32 %v4287_v29, %v2220_v61  ;;  %v1767_v50 = vadd.f32 %v1766_v42, %v1299_v9 }
0x2696   :  { %v3628_v15 = vsel %vm3627_vm2, %v3624_v5, %v3626_v57 }
0x2697   :  { %v2234_v23 = vadd.f32 %v4288_v4, %v2227_v45  ;;  %v3631_v63 = vsel %vm3629_vm3, %v3630_v43, %v3628_v15 }
0x2698   :  { %v3632_v3 = vadd.f32 1e-06, %v3631_v63 }
0x2699   :  { %v2235_v35 = vadd.f32 %v2234_v23, %v1767_v50 }
0x269b   :  { %v2236_v54 = vadd.f32 %v5326_v58, %v2235_v35 }
0x269d   :  { %v2239_v37 = vsel %vm112_vm0, %v2236_v54, 0.0 }
0x269e   :  { %2240 = vadd.xlane.f32.xlu0 %v2239_v37 }
0x26f1   :  { %v4083_v34 = vpop.xlane.xlu1 %4082 }
0x26f2   :  { %v4084_v11 = vmul.f32 0.015873017, %v4083_v34 }
0x26f4   :  { %5312 = vrsqrt.f32 %v4084_v11  ;;  %vm4087_vm4 = vcmp.eq.f32.partialorder %v4084_v11, inf  ;;  %v4090_v56 = vand.u32 2147483648, %v4084_v11  ;;  %vm4089_vm5 = vcmp.eq.f32.partialorder %v4084_v11, 0.0 }
0x26f5   :  { %5314 = vrcp.f32 %v3632_v3 }
0x26fe   :  { %v5313_v33 = vpop.eup %5312 }
0x26ff   :  { %v4086_v6 = vmul.f32 %v5313_v33, %v4084_v11  ;;  %v5315_v14 = vpop.eup %5314 }
0x2700   :  { %v3634_v55 = vmul.f32 %v5315_v14, %v6359_v0 }
0x2701   :  { %v4088_v36 = vsel %vm4087_vm4, %v4084_v11, %v4086_v6 }
0x2702   :  { %v4091_v59 = vsel %vm4089_vm5, %v4090_v56, %v4088_v36  ;;  %v3641_v18 = vmul.f32 %v4257_v62, %v3634_v55 }
0x2703   :  { %v4092_v8 = vadd.f32 1e-06, %v4091_v59 }
0x2704   :  { %v3648_v19 = vadd.f32 %v4258_v1, %v3641_v18  ;;  %v4290_v1 = vld [vmem:[%s6508_s15] ss:$0 sm:$0xff] }
0x2705   :  { %5316 = vrcp.f32 %v4092_v8 }
0x2706   :  { %v3649_v24 = vadd.f32 %v3648_v19, %v3189_v32  ;;  %v4289_v32 = vld [vmem:[%s6507_s14] ss:$0 sm:$0xff] }
0x270f   :  { %v5317_v2 = vpop.eup %5316 }
0x2710   :  { %v4094_v10 = vmul.f32 %v5317_v2, %v6414_v47 }
0x2712   :  { %v4101_v52 = vmul.f32 %v4287_v29, %v4094_v10 }
0x2714   :  { %v4108_v13 = vadd.f32 %v4288_v4, %v4101_v52 }
0x2716   :  { %v4109_v48 = vadd.f32 %v4108_v13, %v3649_v24 }
0x2718   :  { %v4110_v20 = vadd.f32 %v5327_v38, %v4109_v48 }
0x271a   :  { %v4113_v16 = vsel %vm112_vm0, %v4110_v20, 0.0 }
0x271b   :  { %4114 = vadd.xlane.f32.xlu1 %v4113_v16 }
0x272b   :  { %v2241_v25 = vpop.xlane.xlu0 %2240 }
0x272c   :  { %v2242_v22 = vmul.f32 0.015625, %v2241_v25 }
0x272e   :  { %v2243_v40 = vsub.f32 %v2236_v54, %v2242_v22 }
0x2730   :  { %v2244_v53 = vmul.f32 %v2243_v40, %v2243_v40 }
0x2732   :  { %v2245_v0 = vsel %vm112_vm0, %v2244_v53, 0.0 }
0x2733   :  { %2246 = vadd.xlane.f32.xlu0 %v2245_v0 }
0x27a8   :  { %v4115_v27 = vpop.xlane.xlu1 %4114 }
0x27a9   :  { %v4116_v44 = vmul.f32 0.015625, %v4115_v27 }
0x27ab   :  { %v4117_v47 = vsub.f32 %v4110_v20, %v4116_v44 }
0x27ad   :  { %v4118_v7 = vmul.f32 %v4117_v47, %v4117_v47 }
0x27af   :  { %v4119_v17 = vsel %vm112_vm0, %v4118_v7, 0.0 }
0x27b0   :  { %4120 = vadd.xlane.f32.xlu1 %v4119_v17 }
0x27c0   :  { %v2247_v26 = vpop.xlane.xlu0 %2246 }
0x27c1   :  { %v2248_v41 = vmul.f32 0.015873017, %v2247_v26 }
0x27c3   :  { %5318 = vrsqrt.f32 %v2248_v41  ;;  %vm2251_vm6 = vcmp.eq.f32.partialorder %v2248_v41, inf  ;;  %v2254_v49 = vand.u32 2147483648, %v2248_v41  ;;  %vm2253_vm7 = vcmp.eq.f32.partialorder %v2248_v41, 0.0 }
0x27cd   :  { %v5319_v12 = vpop.eup %5318 }
0x27ce   :  { %v2250_v46 = vmul.f32 %v5319_v12, %v2248_v41 }
0x27d0   :  { %v2252_v51 = vsel %vm2251_vm6, %v2248_v41, %v2250_v46 }
0x27d1   :  { %v2255_v62 = vsel %vm2253_vm7, %v2254_v49, %v2252_v51 }
0x27d2   :  { %v2256_v30 = vadd.f32 1e-06, %v2255_v62 }
0x27d4   :  { %5320 = vrcp.f32 %v2256_v30 }
0x27de   :  { %v5321_v28 = vpop.eup %5320 }
0x27df   :  { %v2258_v21 = vmul.f32 %v5321_v28, %v2243_v40 }
0x27e1   :  { %v2265_v29 = vmul.f32 %v4289_v32, %v2258_v21 }
0x27e3   :  { %v2272_v31 = vadd.f32 %v4290_v1, %v2265_v29 }
0x27e4   :  { %5405 = shalt.err (!%p5402_p0)
}
0x27e5   :  { %s5406_s14 = scalar_lea.hbm %s6510_s17, 1024 }
0x27e6   :  { %p5407_p1 = scmp.ne.s32.totalorder %s6510_s17, %s5406_s14  ;;  %p5410_p2 = scmp.lt.u32.totalorder %s5406_s14, %s6510_s17 }
0x27e8   :  { %p5412_p3 = pnand %p5410_p2, %p5407_p1 }
0x27ea   :  { %5415 = shalt.err (!%p5412_p3)
}
0x27eb   :  { %4171 = dma.vmem_to_hbm [thread:$0]  %s4166_s25, 1024, %s6510_s17, [#allocation10], %s5448_s22, %s5448_s22, %s5449_s23   ;;  %2273 = vst.msk [vmem:[#allocation8] sm:$0xff] %vm112_vm0, %v2272_v31 }
0x27ec   :  { %s5458_s19 = smov [#allocation8]  }
0x27ed   :  { %s4153_s16 = sshll.u32 %s5458_s19, 4  ;;  %s4154_s16 = int_to_ptr.vmem [resolvable:$true] %s4153_s16 }
0x27ee   :  { %s5416_s17 = scalar_lea.vmem %s4154_s16, 256  ;;  %p5421_p5 = scmp.lt.s32.totalorder %s4154_s16, %s4154_s16 }
0x27ef   :  { %p5417_p4 = scmp.ne.s32.totalorder %s4154_s16, %s5416_s17  ;;  %p5422_p6 = scmp.lt.s32.totalorder %s5416_s17, %s5416_s17 }
0x27f1   :  { %p5423_p7 = por %p5422_p6, %p5421_p5 }
0x27f3   :  { %p5424_p8 = pnand %p5423_p7, %p5417_p4 }
0x283d   :  { %v4121_v42 = vpop.xlane.xlu1 %4120 }
0x283e   :  { %v4122_v61 = vmul.f32 0.015873017, %v4121_v42 }
0x2840   :  { %5322 = vrsqrt.f32 %v4122_v61  ;;  %vm4125_vm8 = vcmp.eq.f32.partialorder %v4122_v61, inf  ;;  %v4128_v45 = vand.u32 2147483648, %v4122_v61  ;;  %vm4127_vm9 = vcmp.eq.f32.partialorder %v4122_v61, 0.0 }
0x284a   :  { %v5323_v4 = vpop.eup %5322 }
0x284b   :  { %v4124_v9 = vmul.f32 %v5323_v4, %v4122_v61 }
0x284d   :  { %v4126_v50 = vsel %vm4125_vm8, %v4122_v61, %v4124_v9 }
0x284e   :  { %v4129_v23 = vsel %vm4127_vm9, %v4128_v45, %v4126_v50 }
0x284f   :  { %v4130_v35 = vadd.f32 1e-06, %v4129_v23 }
0x2851   :  { %5324 = vrcp.f32 %v4130_v35 }
0x285b   :  { %v5325_v58 = vpop.eup %5324 }
0x285c   :  { %v4132_v54 = vmul.f32 %v5325_v58, %v4117_v47 }
0x285e   :  { %v4139_v37 = vmul.f32 %v4289_v32, %v4132_v54 }
0x2860   :  { %v4146_v60 = vadd.f32 %v4290_v1, %v4139_v37 }
0x2862   :  { %4147 = vst.msk [vmem:[#allocation8 + $0x8] sm:$0xff] %vm112_vm0, %v4146_v60 }
0x2863   :  { %5427 = shalt.err (!%p5424_p8)
}
0x2864   :  { %s6519_s26 = sld [smem:[#allocation17_spill]] }
0x286a   :  { %s5428_s1 = scalar_lea.hbm %s6519_s26, 256 }
0x286b   :  { %p5429_p9 = scmp.ne.s32.totalorder %s6519_s26, %s5428_s1  ;;  %p5432_p10 = scmp.lt.u32.totalorder %s5428_s1, %s6519_s26 }
0x286d   :  { %p5434_p11 = pnand %p5432_p10, %p5429_p9 }
0x286f   :  { %5437 = shalt.err (!%p5434_p11)
}
0x2870   :  { %4159 = dma.vmem_to_hbm [thread:$0]  %s4154_s16, 256, %s6519_s26, [#allocation4], %s5448_s22, %s5448_s22, %s5449_s23  }
0x2871   :  { %5442 = dma.done.wait [#allocation4], 256  }
0x2872   :  { %5443 = vsyncadd [#allocation4], 4294967040 }
0x2873   :  { %5444 = dma.done.wait [#allocation10], 1024  }
0x2874   :  { %5445 = vsyncadd [#allocation10], 4294966272 }
0x2875   :  { %4178 = vsyncpa [#allocation3], 1 }
0x2876   :  { %4179 = vsyncpa [#allocation6], 1 }
0x2877   :  { %4180 = vsyncpa [#allocation4], 1 }
0x2878   :  { %4181 = vsyncpa [#allocation10], 1 }

</bundles_post_ra>
